<compile_context>
chip_gen: v6e
topology: v6e:2x2x1
jax: 0.10.0
libtpu: 0.0.40
codegen_flags: <defaults>
</compile_context>

<pallas_src>
import jax
import jax.numpy as jnp
from jax import lax
from jax.experimental import pallas as pl
from jax.experimental.pallas import tpu as pltpu  # noqa: F401

# ----- model hyper-parameters (defaults of the PyTorch module) -----
B = 2            # batch size
S = 8            # num_features == transformer sequence length
D = 32           # embedding_dim / input_dim
H = 4            # num_heads
HD = D // H      # head_dim
FF = 64          # ff_dim
L = 3            # num_layers
C = 2            # num_classes
EPS = 1e-5
INV_SCALE = 1.0 / (float(HD) ** 0.5)
NEG_INF = -1e9

# rows inside the packed per-layer "small vectors" block (shape (16, 128))
(_R_BQ, _R_BK, _R_BV, _R_BFC, _R_G1, _R_BE1,
 _R_B1, _R_B2, _R_G2, _R_BE2) = range(10)
_VEC_ROWS = 16   # padded to a sublane multiple


def _layernorm(x, gamma, beta):
    mu = jnp.mean(x, axis=-1, keepdims=True)
    var = jnp.mean(jnp.square(x - mu), axis=-1, keepdims=True)
    return (x - mu) * lax.rsqrt(var + EPS) * gamma + beta


# ---------------------------------------------------------------------------
# Single fused kernel: feature embedding + L encoder layers + classifier MLP.
# Activations stay flattened and lane-dense as (B*S, D) = (16, 32).
# ---------------------------------------------------------------------------
def tab_transformer_kernel(xcol_ref, wemb_ref, bemb_ref,
                           wq_ref, wk_ref, wv_ref, wfc_ref, w1_ref, w2_ref, vec_ref,
                           hmask_ref, bmask_ref,
                           wcat_ref, cmask_ref, fold_ref, selb_ref,
                           bc1_ref, wc2_ref, bc2_ref,
                           o_ref):
    # feature embedding: emb[b*S+s, :] = x[b, s] * W_emb[s, :] + b_emb[s, :]
    # (w/b_emb were batch-tiled once at init)
    xf = xcol_ref[...] * wemb_ref[...] + bemb_ref[...]                 # (B*S, D)

    bmask = bmask_ref[...]                                             # (B*S, B*S)

    for l in range(L):                                                 # static unroll, L=3
        vec = vec_ref[l]                                               # (16, 128) packed
        bq  = vec[_R_BQ:_R_BQ + 1, :D]      # already scaled by 1/sqrt(HD) [5]
        bk  = vec[_R_BK:_R_BK + 1, :D]
        bv  = vec[_R_BV:_R_BV + 1, :D]
        bfc = vec[_R_BFC:_R_BFC + 1, :D]
        g1  = vec[_R_G1:_R_G1 + 1, :D]
        be1 = vec[_R_BE1:_R_BE1 + 1, :D]
        b1  = vec[_R_B1:_R_B1 + 1, :FF]
        b2  = vec[_R_B2:_R_B2 + 1, :D]
        g2  = vec[_R_G2:_R_G2 + 1, :D]
        be2 = vec[_R_BE2:_R_BE2 + 1, :D]

        # ---- multi-head self-attention on lane-dense (16, 32) tiles [3] ----
        q = jnp.dot(xf, wq_ref[l], preferred_element_type=jnp.float32) + bq
        k = jnp.dot(xf, wk_ref[l], preferred_element_type=jnp.float32) + bk
        v = jnp.dot(xf, wv_ref[l], preferred_element_type=jnp.float32) + bv

        attn = jnp.zeros((B * S, D), jnp.float32)
        for h in range(H):                                             # static unroll, H=4
            hm = hmask_ref[h:h + 1, :]                                 # (1, D) head mask
            e = lax.dot_general(q, k * hm, (((1,), (1,)), ((), ())),
                                preferred_element_type=jnp.float32)    # (B*S, B*S)
            e = e + bmask                                              # kill cross-batch keys
            e = e - jnp.max(e, axis=-1, keepdims=True)
            p = jnp.exp(e)
            p = p / jnp.sum(p, axis=-1, keepdims=True)                 # exact divide [4]
            attn = attn + jnp.dot(p, v * hm,
                                  preferred_element_type=jnp.float32)  # merged heads

        attn_out = jnp.dot(attn, wfc_ref[l], preferred_element_type=jnp.float32) + bfc

        # residual + layernorm 1
        h1 = _layernorm(xf + attn_out, g1, be1)

        # feed-forward (Linear -> ReLU -> Linear), dropout = identity
        ff = jnp.maximum(jnp.dot(h1, w1_ref[l], preferred_element_type=jnp.float32) + b1, 0.0)
        ff = jnp.dot(ff, w2_ref[l], preferred_element_type=jnp.float32) + b2

        # residual + layernorm 2
        xf = _layernorm(h1 + ff, g2, be2)

    # ---- fused classifier MLP, flatten-free [2] ----
    # h[b, f] = sum_{s,d} xf[b*S+s, d] * wc1[s*D+d, f]
    t = jnp.dot(xf, wcat_ref[...], preferred_element_type=jnp.float32)   # (B*S, S*FF)
    t = t * cmask_ref[...]                                               # keep own column block
    g = jnp.dot(t, fold_ref[...], preferred_element_type=jnp.float32)    # (B*S, FF)
    hc = jnp.dot(selb_ref[...], g, preferred_element_type=jnp.float32) + bc1_ref[...]  # (B, FF)
    hc = jnp.maximum(hc, 0.0)
    o_ref[...] = jnp.dot(hc, wc2_ref[...], preferred_element_type=jnp.float32) + bc2_ref[...]


# ---------------------------------------------------------------------------
# One-time parameter packing (hoisted out of the forward path) [1]
# ---------------------------------------------------------------------------
def pack_params(params):
    (w_emb, b_emb, layer_params, wc1, bc1, wc2, bc2) = params

    def row(v):
        return jnp.pad(v, (0, 128 - v.shape[0]))[None, :]

    wq_s, wk_s, wv_s, wfc_s, w1_s, w2_s, vec_s = [], [], [], [], [], [], []
    for (wq, bq, wk, bk, wv, bv, wfc, bfc,
         g1, be1, w1, b1, w2, b2, g2, be2) in layer_params:
        wq_s.append(wq * INV_SCALE)                                   # [5] fold QK scale
        wk_s.append(wk)
        wv_s.append(wv)
        wfc_s.append(wfc)
        w1_s.append(w1)
        w2_s.append(w2)
        block = jnp.concatenate(
            [row(bq * INV_SCALE), row(bk), row(bv), row(bfc), row(g1), row(be1),
             row(b1), row(b2), row(g2), row(be2)], axis=0)
        block = jnp.pad(block, ((0, _VEC_ROWS - block.shape[0]), (0, 0)))
        vec_s.append(block)                                           # (16, 128)

    # embedding params batch-tiled once at init [6]
    wemb_t = jnp.tile(w_emb, (B, 1))                                  # (B*S, D)
    bemb_t = jnp.tile(b_emb, (B, 1))

    # attention constants
    head_of = jnp.arange(D) // HD
    hmask = (head_of[None, :] == jnp.arange(H)[:, None]).astype(jnp.float32)   # (H, D)
    batch_of = jnp.arange(B * S) // S
    bmask = jnp.where(batch_of[:, None] == batch_of[None, :],
                      0.0, NEG_INF).astype(jnp.float32)                        # (B*S, B*S)

    # classifier constants for the flatten-free formulation [2]
    wcat = wc1.reshape(S, D, FF).transpose(1, 0, 2).reshape(D, S * FF)          # (D, S*FF)
    blk = jnp.arange(S * FF) // FF
    cmask = ((jnp.arange(B * S) % S)[:, None] == blk[None, :]).astype(jnp.float32)  # (B*S, S*FF)
    fold = jnp.tile(jnp.eye(FF, dtype=jnp.float32), (S, 1))                    # (S*FF, FF)
    selb = (jnp.arange(B)[:, None] == batch_of[None, :]).astype(jnp.float32)   # (B, B*S)

    packed = (wemb_t, bemb_t,
              jnp.stack(wq_s), jnp.stack(wk_s), jnp.stack(wv_s), jnp.stack(wfc_s),
              jnp.stack(w1_s), jnp.stack(w2_s), jnp.stack(vec_s),
              hmask, bmask, wcat, cmask, fold, selb,
              bc1.reshape(1, FF), wc2, bc2.reshape(1, C))

    # [7] everything stays resident in VMEM; this is < ~1 MiB, far under any
    # generation's VMEM (v5e/v6e 128 MiB, v7x 64 MiB physical / 32 MiB scoped).
    total_bytes = sum(a.size * a.dtype.itemsize for a in packed)
    assert total_bytes < 8 * 1024 * 1024, "model no longer fits the all-in-VMEM design"
    return packed


@jax.jit
def tab_transformer_forward(x, packed):
    """x: (B, S) raw tabular features -> (B, C) logits.  Single pallas_call."""
    x_col = x.reshape(B * S, 1)
    return pl.pallas_call(
        tab_transformer_kernel,
        out_shape=jax.ShapeDtypeStruct((B, C), jnp.float32),
    )(x_col, *packed)


# ---------------------------------------------------------------------------
# Deterministic synthetic parameters (Linear weights stored as (in, out)).
# ---------------------------------------------------------------------------
def make_params(key):
    scale = 0.1
    keys = iter(jax.random.split(key, 64))

    def nrm(shape):
        return scale * jax.random.normal(next(keys), shape, jnp.float32)

    w_emb = nrm((S, D))              # FeatureEmbedding: per-feature Linear(1, D) weights
    b_emb = nrm((S, D))              # per-feature Linear(1, D) biases

    layer_params = []
    for _ in range(L):
        wq, wk, wv, wfc = nrm((D, D)), nrm((D, D)), nrm((D, D)), nrm((D, D))
        bq, bk, bv, bfc = nrm((D,)), nrm((D,)), nrm((D,)), nrm((D,))
        g1, be1 = 1.0 + nrm((D,)), nrm((D,))
        w1, b1 = nrm((D, FF)), nrm((FF,))
        w2, b2 = nrm((FF, D)), nrm((D,))
        g2, be2 = 1.0 + nrm((D,)), nrm((D,))
        layer_params.append((wq, bq, wk, bk, wv, bv, wfc, bfc,
                             g1, be1, w1, b1, w2, b2, g2, be2))

    wc1, bc1 = nrm((S * D, FF)), nrm((FF,))
    wc2, bc2 = nrm((FF, C)), nrm((C,))
    return (w_emb, b_emb, tuple(layer_params), wc1, bc1, wc2, bc2)


def reference(x, params):
    """Plain-JAX forward matching the PyTorch module (dropout = identity)."""
    (w_emb, b_emb, layer_params, wc1, bc1, wc2, bc2) = params
    h = x[:, :, None] * w_emb[None, :, :] + b_emb[None, :, :]          # (B, S, D)
    for (wq, bq, wk, bk, wv, bv, wfc, bfc,
         g1, be1, w1, b1, w2, b2, g2, be2) in layer_params:
        q = (h @ wq + bq).reshape(B, S, H, HD).transpose(0, 2, 1, 3)
        k = (h @ wk + bk).reshape(B, S, H, HD).transpose(0, 2, 1, 3)
        v = (h @ wv + bv).reshape(B, S, H, HD).transpose(0, 2, 1, 3)
        e = jnp.einsum('bhqd,bhkd->bhqk', q, k) / (float(HD) ** 0.5)
        p = jax.nn.softmax(e, axis=-1)
        a = jnp.einsum('bhqk,bhkd->bhqd', p, v).transpose(0, 2, 1, 3).reshape(B, S, D)
        a = a @ wfc + bfc
        h1 = _layernorm(h + a, g1, be1)
        ff = jnp.maximum(h1 @ w1 + b1, 0.0) @ w2 + b2
        h = _layernorm(h1 + ff, g2, be2)
    flat = h.reshape(B, S * D)
    return jnp.maximum(flat @ wc1 + bc1, 0.0) @ wc2 + bc2


if __name__ == "__main__":
    key = jax.random.PRNGKey(0)
    kx, kp = jax.random.split(key)
    x = jax.random.normal(kx, (B, S), jnp.float32)        # (batch, num_features)
    params = make_params(kp)

    packed = pack_params(params)                          # one-time packing [1]
    out = jax.block_until_ready(tab_transformer_forward(x, packed))

    with jax.default_matmul_precision("float32"):
        ref = reference(x, params)

    assert out.shape == (B, C)
    err = float(jnp.max(jnp.abs(out - ref)))
    # exact softmax divide -> tolerance tightened vs the previous approx-recip version
    assert jnp.allclose(out, ref, rtol=5e-4, atol=5e-4), f"mismatch vs reference, max|diff|={err}"
    print("KERNEL_OK")
</pallas_src>

<mosaic_0001>
module attributes {stable_mosaic.version = 11 : i64} {
  func.func @tab_transformer_kernel(%arg0: memref<16x1xf32, #tpu.memory_space<vmem>>, %arg1: memref<16x32xf32, #tpu.memory_space<vmem>>, %arg2: memref<16x32xf32, #tpu.memory_space<vmem>>, %arg3: memref<3x32x32xf32, #tpu.memory_space<vmem>>, %arg4: memref<3x32x32xf32, #tpu.memory_space<vmem>>, %arg5: memref<3x32x32xf32, #tpu.memory_space<vmem>>, %arg6: memref<3x32x32xf32, #tpu.memory_space<vmem>>, %arg7: memref<3x32x64xf32, #tpu.memory_space<vmem>>, %arg8: memref<3x64x32xf32, #tpu.memory_space<vmem>>, %arg9: memref<3x16x128xf32, #tpu.memory_space<vmem>>, %arg10: memref<4x32xf32, #tpu.memory_space<vmem>>, %arg11: memref<16x16xf32, #tpu.memory_space<vmem>>, %arg12: memref<32x512xf32, #tpu.memory_space<vmem>>, %arg13: memref<16x512xf32, #tpu.memory_space<vmem>>, %arg14: memref<512x64xf32, #tpu.memory_space<vmem>>, %arg15: memref<2x16xf32, #tpu.memory_space<vmem>>, %arg16: memref<1x64xf32, #tpu.memory_space<vmem>>, %arg17: memref<64x2xf32, #tpu.memory_space<vmem>>, %arg18: memref<1x2xf32, #tpu.memory_space<vmem>>, %arg19: memref<2x2xf32, #tpu.memory_space<vmem>>) attributes {dimension_semantics = [], scalar_prefetch = 0 : i64, scratch_operands = 0 : i64, tpu.core_type = #tpu.core_type<tc>} {
    %c0 = arith.constant 0 : index
    %c0_0 = arith.constant 0 : index
    %0 = vector.load %arg0[%c0, %c0_0] : memref<16x1xf32, #tpu.memory_space<vmem>>, vector<16x1xf32>
    %c0_1 = arith.constant 0 : index
    %c0_2 = arith.constant 0 : index
    %1 = vector.load %arg1[%c0_1, %c0_2] : memref<16x32xf32, #tpu.memory_space<vmem>>, vector<16x32xf32>
    %2 = vector.broadcast %0 : vector<16x1xf32> to vector<16x32xf32>
    %3 = arith.mulf %2, %1 : vector<16x32xf32>
    %c0_3 = arith.constant 0 : index
    %c0_4 = arith.constant 0 : index
    %4 = vector.load %arg2[%c0_3, %c0_4] : memref<16x32xf32, #tpu.memory_space<vmem>>, vector<16x32xf32>
    %5 = arith.addf %3, %4 : vector<16x32xf32>
    %c0_5 = arith.constant 0 : index
    %c0_6 = arith.constant 0 : index
    %6 = vector.load %arg11[%c0_5, %c0_6] : memref<16x16xf32, #tpu.memory_space<vmem>>, vector<16x16xf32>
    %c0_7 = arith.constant 0 : index
    %c0_8 = arith.constant 0 : index
    %c0_9 = arith.constant 0 : index
    %7 = vector.load %arg9[%c0_7, %c0_8, %c0_9] : memref<3x16x128xf32, #tpu.memory_space<vmem>>, vector<1x16x128xf32>
    %8 = vector.shape_cast %7 : vector<1x16x128xf32> to vector<16x128xf32>
    %9 = vector.extract_strided_slice %8 {offsets = [0, 0], sizes = [1, 32], strides = [1, 1]} : vector<16x128xf32> to vector<1x32xf32>
    %10 = vector.extract_strided_slice %8 {offsets = [1, 0], sizes = [1, 32], strides = [1, 1]} : vector<16x128xf32> to vector<1x32xf32>
    %11 = vector.extract_strided_slice %8 {offsets = [2, 0], sizes = [1, 32], strides = [1, 1]} : vector<16x128xf32> to vector<1x32xf32>
    %12 = vector.extract_strided_slice %8 {offsets = [3, 0], sizes = [1, 32], strides = [1, 1]} : vector<16x128xf32> to vector<1x32xf32>
    %13 = vector.extract_strided_slice %8 {offsets = [4, 0], sizes = [1, 32], strides = [1, 1]} : vector<16x128xf32> to vector<1x32xf32>
    %14 = vector.extract_strided_slice %8 {offsets = [5, 0], sizes = [1, 32], strides = [1, 1]} : vector<16x128xf32> to vector<1x32xf32>
    %15 = vector.extract_strided_slice %8 {offsets = [6, 0], sizes = [1, 64], strides = [1, 1]} : vector<16x128xf32> to vector<1x64xf32>
    %16 = vector.extract_strided_slice %8 {offsets = [7, 0], sizes = [1, 32], strides = [1, 1]} : vector<16x128xf32> to vector<1x32xf32>
    %17 = vector.extract_strided_slice %8 {offsets = [8, 0], sizes = [1, 32], strides = [1, 1]} : vector<16x128xf32> to vector<1x32xf32>
    %18 = vector.extract_strided_slice %8 {offsets = [9, 0], sizes = [1, 32], strides = [1, 1]} : vector<16x128xf32> to vector<1x32xf32>
    %c0_10 = arith.constant 0 : index
    %c0_11 = arith.constant 0 : index
    %c0_12 = arith.constant 0 : index
    %19 = vector.load %arg3[%c0_10, %c0_11, %c0_12] : memref<3x32x32xf32, #tpu.memory_space<vmem>>, vector<1x32x32xf32>
    %20 = vector.shape_cast %19 : vector<1x32x32xf32> to vector<32x32xf32>
    %cst = arith.constant dense<0.000000e+00> : vector<16x32xf32>
    %21 = tpu.matmul %5, %20, %cst {dimension_numbers = #tpu.dot_dimension_numbers<[1], [0], [0], [1], [0, 0, 1, 1], [], []>} : vector<16x32xf32>, vector<32x32xf32>, vector<16x32xf32> -> vector<16x32xf32>
    %22 = vector.broadcast %9 : vector<1x32xf32> to vector<16x32xf32>
    %23 = arith.addf %21, %22 : vector<16x32xf32>
    %c0_13 = arith.constant 0 : index
    %c0_14 = arith.constant 0 : index
    %c0_15 = arith.constant 0 : index
    %24 = vector.load %arg4[%c0_13, %c0_14, %c0_15] : memref<3x32x32xf32, #tpu.memory_space<vmem>>, vector<1x32x32xf32>
    %25 = vector.shape_cast %24 : vector<1x32x32xf32> to vector<32x32xf32>
    %cst_16 = arith.constant dense<0.000000e+00> : vector<16x32xf32>
    %26 = tpu.matmul %5, %25, %cst_16 {dimension_numbers = #tpu.dot_dimension_numbers<[1], [0], [0], [1], [0, 0, 1, 1], [], []>} : vector<16x32xf32>, vector<32x32xf32>, vector<16x32xf32> -> vector<16x32xf32>
    %27 = vector.broadcast %10 : vector<1x32xf32> to vector<16x32xf32>
    %28 = arith.addf %26, %27 : vector<16x32xf32>
    %c0_17 = arith.constant 0 : index
    %c0_18 = arith.constant 0 : index
    %c0_19 = arith.constant 0 : index
    %29 = vector.load %arg5[%c0_17, %c0_18, %c0_19] : memref<3x32x32xf32, #tpu.memory_space<vmem>>, vector<1x32x32xf32>
    %30 = vector.shape_cast %29 : vector<1x32x32xf32> to vector<32x32xf32>
    %cst_20 = arith.constant dense<0.000000e+00> : vector<16x32xf32>
    %31 = tpu.matmul %5, %30, %cst_20 {dimension_numbers = #tpu.dot_dimension_numbers<[1], [0], [0], [1], [0, 0, 1, 1], [], []>} : vector<16x32xf32>, vector<32x32xf32>, vector<16x32xf32> -> vector<16x32xf32>
    %32 = vector.broadcast %11 : vector<1x32xf32> to vector<16x32xf32>
    %33 = arith.addf %31, %32 : vector<16x32xf32>
    %cst_21 = arith.constant 0.000000e+00 : f32
    %34 = vector.broadcast %cst_21 : f32 to vector<16x32xf32>
    %c0_22 = arith.constant 0 : index
    %c0_23 = arith.constant 0 : index
    %35 = vector.load %arg10[%c0_22, %c0_23] : memref<4x32xf32, #tpu.memory_space<vmem>>, vector<1x32xf32>
    %36 = vector.broadcast %35 : vector<1x32xf32> to vector<16x32xf32>
    %37 = arith.mulf %28, %36 : vector<16x32xf32>
    %cst_24 = arith.constant dense<0.000000e+00> : vector<16x16xf32>
    %38 = tpu.matmul %23, %37, %cst_24 {dimension_numbers = #tpu.dot_dimension_numbers<[1], [1], [0], [0], [0, 0, 1, 0], [], []>} : vector<16x32xf32>, vector<16x32xf32>, vector<16x16xf32> -> vector<16x16xf32>
    %39 = arith.addf %38, %6 : vector<16x16xf32>
    %cst_25 = arith.constant dense<0xFF800000> : vector<16xf32>
    %40 = vector.multi_reduction <maximumf>, %39, %cst_25 [1] : vector<16x16xf32> to vector<16xf32>
    %41 = vector.shape_cast %40 : vector<16xf32> to vector<16x1xf32>
    %42 = vector.broadcast %41 : vector<16x1xf32> to vector<16x16xf32>
    %43 = arith.subf %39, %42 : vector<16x16xf32>
    %44 = math.exp %43 : vector<16x16xf32>
    %cst_26 = arith.constant dense<0.000000e+00> : vector<16xf32>
    %45 = vector.multi_reduction <add>, %44, %cst_26 [1] : vector<16x16xf32> to vector<16xf32>
    %46 = vector.shape_cast %45 : vector<16xf32> to vector<16x1xf32>
    %47 = vector.broadcast %46 : vector<16x1xf32> to vector<16x16xf32>
    %48 = arith.divf %44, %47 : vector<16x16xf32>
    %49 = vector.broadcast %35 : vector<1x32xf32> to vector<16x32xf32>
    %50 = arith.mulf %33, %49 : vector<16x32xf32>
    %cst_27 = arith.constant dense<0.000000e+00> : vector<16x32xf32>
    %51 = tpu.matmul %48, %50, %cst_27 {dimension_numbers = #tpu.dot_dimension_numbers<[1], [0], [0], [1], [0, 0, 1, 1], [], []>} : vector<16x16xf32>, vector<16x32xf32>, vector<16x32xf32> -> vector<16x32xf32>
    %52 = arith.addf %34, %51 : vector<16x32xf32>
    %c1 = arith.constant 1 : index
    %c0_28 = arith.constant 0 : index
    %53 = vector.load %arg10[%c1, %c0_28] : memref<4x32xf32, #tpu.memory_space<vmem>>, vector<1x32xf32>
    %54 = vector.broadcast %53 : vector<1x32xf32> to vector<16x32xf32>
    %55 = arith.mulf %28, %54 : vector<16x32xf32>
    %cst_29 = arith.constant dense<0.000000e+00> : vector<16x16xf32>
    %56 = tpu.matmul %23, %55, %cst_29 {dimension_numbers = #tpu.dot_dimension_numbers<[1], [1], [0], [0], [0, 0, 1, 0], [], []>} : vector<16x32xf32>, vector<16x32xf32>, vector<16x16xf32> -> vector<16x16xf32>
    %57 = arith.addf %56, %6 : vector<16x16xf32>
    %cst_30 = arith.constant dense<0xFF800000> : vector<16xf32>
    %58 = vector.multi_reduction <maximumf>, %57, %cst_30 [1] : vector<16x16xf32> to vector<16xf32>
    %59 = vector.shape_cast %58 : vector<16xf32> to vector<16x1xf32>
    %60 = vector.broadcast %59 : vector<16x1xf32> to vector<16x16xf32>
    %61 = arith.subf %57, %60 : vector<16x16xf32>
    %62 = math.exp %61 : vector<16x16xf32>
    %cst_31 = arith.constant dense<0.000000e+00> : vector<16xf32>
    %63 = vector.multi_reduction <add>, %62, %cst_31 [1] : vector<16x16xf32> to vector<16xf32>
    %64 = vector.shape_cast %63 : vector<16xf32> to vector<16x1xf32>
    %65 = vector.broadcast %64 : vector<16x1xf32> to vector<16x16xf32>
    %66 = arith.divf %62, %65 : vector<16x16xf32>
    %67 = vector.broadcast %53 : vector<1x32xf32> to vector<16x32xf32>
    %68 = arith.mulf %33, %67 : vector<16x32xf32>
    %cst_32 = arith.constant dense<0.000000e+00> : vector<16x32xf32>
    %69 = tpu.matmul %66, %68, %cst_32 {dimension_numbers = #tpu.dot_dimension_numbers<[1], [0], [0], [1], [0, 0, 1, 1], [], []>} : vector<16x16xf32>, vector<16x32xf32>, vector<16x32xf32> -> vector<16x32xf32>
    %70 = arith.addf %52, %69 : vector<16x32xf32>
    %c2 = arith.constant 2 : index
    %c0_33 = arith.constant 0 : index
    %71 = vector.load %arg10[%c2, %c0_33] : memref<4x32xf32, #tpu.memory_space<vmem>>, vector<1x32xf32>
    %72 = vector.broadcast %71 : vector<1x32xf32> to vector<16x32xf32>
    %73 = arith.mulf %28, %72 : vector<16x32xf32>
    %cst_34 = arith.constant dense<0.000000e+00> : vector<16x16xf32>
    %74 = tpu.matmul %23, %73, %cst_34 {dimension_numbers = #tpu.dot_dimension_numbers<[1], [1], [0], [0], [0, 0, 1, 0], [], []>} : vector<16x32xf32>, vector<16x32xf32>, vector<16x16xf32> -> vector<16x16xf32>
    %75 = arith.addf %74, %6 : vector<16x16xf32>
    %cst_35 = arith.constant dense<0xFF800000> : vector<16xf32>
    %76 = vector.multi_reduction <maximumf>, %75, %cst_35 [1] : vector<16x16xf32> to vector<16xf32>
    %77 = vector.shape_cast %76 : vector<16xf32> to vector<16x1xf32>
    %78 = vector.broadcast %77 : vector<16x1xf32> to vector<16x16xf32>
    %79 = arith.subf %75, %78 : vector<16x16xf32>
    %80 = math.exp %79 : vector<16x16xf32>
    %cst_36 = arith.constant dense<0.000000e+00> : vector<16xf32>
    %81 = vector.multi_reduction <add>, %80, %cst_36 [1] : vector<16x16xf32> to vector<16xf32>
    %82 = vector.shape_cast %81 : vector<16xf32> to vector<16x1xf32>
    %83 = vector.broadcast %82 : vector<16x1xf32> to vector<16x16xf32>
    %84 = arith.divf %80, %83 : vector<16x16xf32>
    %85 = vector.broadcast %71 : vector<1x32xf32> to vector<16x32xf32>
    %86 = arith.mulf %33, %85 : vector<16x32xf32>
    %cst_37 = arith.constant dense<0.000000e+00> : vector<16x32xf32>
    %87 = tpu.matmul %84, %86, %cst_37 {dimension_numbers = #tpu.dot_dimension_numbers<[1], [0], [0], [1], [0, 0, 1, 1], [], []>} : vector<16x16xf32>, vector<16x32xf32>, vector<16x32xf32> -> vector<16x32xf32>
    %88 = arith.addf %70, %87 : vector<16x32xf32>
    %c3 = arith.constant 3 : index
    %c0_38 = arith.constant 0 : index
    %89 = vector.load %arg10[%c3, %c0_38] : memref<4x32xf32, #tpu.memory_space<vmem>>, vector<1x32xf32>
    %90 = vector.broadcast %89 : vector<1x32xf32> to vector<16x32xf32>
    %91 = arith.mulf %28, %90 : vector<16x32xf32>
    %cst_39 = arith.constant dense<0.000000e+00> : vector<16x16xf32>
    %92 = tpu.matmul %23, %91, %cst_39 {dimension_numbers = #tpu.dot_dimension_numbers<[1], [1], [0], [0], [0, 0, 1, 0], [], []>} : vector<16x32xf32>, vector<16x32xf32>, vector<16x16xf32> -> vector<16x16xf32>
    %93 = arith.addf %92, %6 : vector<16x16xf32>
    %cst_40 = arith.constant dense<0xFF800000> : vector<16xf32>
    %94 = vector.multi_reduction <maximumf>, %93, %cst_40 [1] : vector<16x16xf32> to vector<16xf32>
    %95 = vector.shape_cast %94 : vector<16xf32> to vector<16x1xf32>
    %96 = vector.broadcast %95 : vector<16x1xf32> to vector<16x16xf32>
    %97 = arith.subf %93, %96 : vector<16x16xf32>
    %98 = math.exp %97 : vector<16x16xf32>
    %cst_41 = arith.constant dense<0.000000e+00> : vector<16xf32>
    %99 = vector.multi_reduction <add>, %98, %cst_41 [1] : vector<16x16xf32> to vector<16xf32>
    %100 = vector.shape_cast %99 : vector<16xf32> to vector<16x1xf32>
    %101 = vector.broadcast %100 : vector<16x1xf32> to vector<16x16xf32>
    %102 = arith.divf %98, %101 : vector<16x16xf32>
    %103 = vector.broadcast %89 : vector<1x32xf32> to vector<16x32xf32>
    %104 = arith.mulf %33, %103 : vector<16x32xf32>
    %cst_42 = arith.constant dense<0.000000e+00> : vector<16x32xf32>
    %105 = tpu.matmul %102, %104, %cst_42 {dimension_numbers = #tpu.dot_dimension_numbers<[1], [0], [0], [1], [0, 0, 1, 1], [], []>} : vector<16x16xf32>, vector<16x32xf32>, vector<16x32xf32> -> vector<16x32xf32>
    %106 = arith.addf %88, %105 : vector<16x32xf32>
    %c0_43 = arith.constant 0 : index
    %c0_44 = arith.constant 0 : index
    %c0_45 = arith.constant 0 : index
    %107 = vector.load %arg6[%c0_43, %c0_44, %c0_45] : memref<3x32x32xf32, #tpu.memory_space<vmem>>, vector<1x32x32xf32>
    %108 = vector.shape_cast %107 : vector<1x32x32xf32> to vector<32x32xf32>
    %cst_46 = arith.constant dense<0.000000e+00> : vector<16x32xf32>
    %109 = tpu.matmul %106, %108, %cst_46 {dimension_numbers = #tpu.dot_dimension_numbers<[1], [0], [0], [1], [0, 0, 1, 1], [], []>} : vector<16x32xf32>, vector<32x32xf32>, vector<16x32xf32> -> vector<16x32xf32>
    %110 = vector.broadcast %12 : vector<1x32xf32> to vector<16x32xf32>
    %111 = arith.addf %109, %110 : vector<16x32xf32>
    %112 = arith.addf %5, %111 : vector<16x32xf32>
    %cst_47 = arith.constant dense<0.000000e+00> : vector<16xf32>
    %113 = vector.multi_reduction <add>, %112, %cst_47 [1] : vector<16x32xf32> to vector<16xf32>
    %114 = vector.shape_cast %113 : vector<16xf32> to vector<16x1xf32>
    %cst_48 = arith.constant 3.200000e+01 : f32
    %115 = vector.broadcast %cst_48 : f32 to vector<16x1xf32>
    %116 = arith.divf %114, %115 : vector<16x1xf32>
    %117 = vector.broadcast %116 : vector<16x1xf32> to vector<16x32xf32>
    %118 = arith.subf %112, %117 : vector<16x32xf32>
    %119 = arith.mulf %118, %118 : vector<16x32xf32>
    %cst_49 = arith.constant dense<0.000000e+00> : vector<16xf32>
    %120 = vector.multi_reduction <add>, %119, %cst_49 [1] : vector<16x32xf32> to vector<16xf32>
    %121 = vector.shape_cast %120 : vector<16xf32> to vector<16x1xf32>
    %cst_50 = arith.constant 3.200000e+01 : f32
    %122 = vector.broadcast %cst_50 : f32 to vector<16x1xf32>
    %123 = arith.divf %121, %122 : vector<16x1xf32>
    %124 = vector.broadcast %116 : vector<16x1xf32> to vector<16x32xf32>
    %125 = arith.subf %112, %124 : vector<16x32xf32>
    %cst_51 = arith.constant 9.99999974E-6 : f32
    %126 = vector.broadcast %cst_51 : f32 to vector<16x1xf32>
    %127 = arith.addf %123, %126 : vector<16x1xf32>
    %128 = math.rsqrt %127 : vector<16x1xf32>
    %129 = vector.broadcast %128 : vector<16x1xf32> to vector<16x32xf32>
    %130 = arith.mulf %125, %129 : vector<16x32xf32>
    %131 = vector.broadcast %13 : vector<1x32xf32> to vector<16x32xf32>
    %132 = arith.mulf %130, %131 : vector<16x32xf32>
    %133 = vector.broadcast %14 : vector<1x32xf32> to vector<16x32xf32>
    %134 = arith.addf %132, %133 : vector<16x32xf32>
    %c0_52 = arith.constant 0 : index
    %c0_53 = arith.constant 0 : index
    %c0_54 = arith.constant 0 : index
    %135 = vector.load %arg7[%c0_52, %c0_53, %c0_54] : memref<3x32x64xf32, #tpu.memory_space<vmem>>, vector<1x32x64xf32>
    %136 = vector.shape_cast %135 : vector<1x32x64xf32> to vector<32x64xf32>
    %cst_55 = arith.constant dense<0.000000e+00> : vector<16x64xf32>
    %137 = tpu.matmul %134, %136, %cst_55 {dimension_numbers = #tpu.dot_dimension_numbers<[1], [0], [0], [1], [0, 0, 1, 1], [], []>} : vector<16x32xf32>, vector<32x64xf32>, vector<16x64xf32> -> vector<16x64xf32>
    %138 = vector.broadcast %15 : vector<1x64xf32> to vector<16x64xf32>
    %139 = arith.addf %137, %138 : vector<16x64xf32>
    %cst_56 = arith.constant 0.000000e+00 : f32
    %140 = vector.broadcast %cst_56 : f32 to vector<16x64xf32>
    %141 = arith.maximumf %139, %140 : vector<16x64xf32>
    %c0_57 = arith.constant 0 : index
    %c0_58 = arith.constant 0 : index
    %c0_59 = arith.constant 0 : index
    %142 = vector.load %arg8[%c0_57, %c0_58, %c0_59] : memref<3x64x32xf32, #tpu.memory_space<vmem>>, vector<1x64x32xf32>
    %143 = vector.shape_cast %142 : vector<1x64x32xf32> to vector<64x32xf32>
    %cst_60 = arith.constant dense<0.000000e+00> : vector<16x32xf32>
    %144 = tpu.matmul %141, %143, %cst_60 {dimension_numbers = #tpu.dot_dimension_numbers<[1], [0], [0], [1], [0, 0, 1, 1], [], []>} : vector<16x64xf32>, vector<64x32xf32>, vector<16x32xf32> -> vector<16x32xf32>
    %145 = vector.broadcast %16 : vector<1x32xf32> to vector<16x32xf32>
    %146 = arith.addf %144, %145 : vector<16x32xf32>
    %147 = arith.addf %134, %146 : vector<16x32xf32>
    %cst_61 = arith.constant dense<0.000000e+00> : vector<16xf32>
    %148 = vector.multi_reduction <add>, %147, %cst_61 [1] : vector<16x32xf32> to vector<16xf32>
    %149 = vector.shape_cast %148 : vector<16xf32> to vector<16x1xf32>
    %cst_62 = arith.constant 3.200000e+01 : f32
    %150 = vector.broadcast %cst_62 : f32 to vector<16x1xf32>
    %151 = arith.divf %149, %150 : vector<16x1xf32>
    %152 = vector.broadcast %151 : vector<16x1xf32> to vector<16x32xf32>
    %153 = arith.subf %147, %152 : vector<16x32xf32>
    %154 = arith.mulf %153, %153 : vector<16x32xf32>
    %cst_63 = arith.constant dense<0.000000e+00> : vector<16xf32>
    %155 = vector.multi_reduction <add>, %154, %cst_63 [1] : vector<16x32xf32> to vector<16xf32>
    %156 = vector.shape_cast %155 : vector<16xf32> to vector<16x1xf32>
    %cst_64 = arith.constant 3.200000e+01 : f32
    %157 = vector.broadcast %cst_64 : f32 to vector<16x1xf32>
    %158 = arith.divf %156, %157 : vector<16x1xf32>
    %159 = vector.broadcast %151 : vector<16x1xf32> to vector<16x32xf32>
    %160 = arith.subf %147, %159 : vector<16x32xf32>
    %cst_65 = arith.constant 9.99999974E-6 : f32
    %161 = vector.broadcast %cst_65 : f32 to vector<16x1xf32>
    %162 = arith.addf %158, %161 : vector<16x1xf32>
    %163 = math.rsqrt %162 : vector<16x1xf32>
    %164 = vector.broadcast %163 : vector<16x1xf32> to vector<16x32xf32>
    %165 = arith.mulf %160, %164 : vector<16x32xf32>
    %166 = vector.broadcast %17 : vector<1x32xf32> to vector<16x32xf32>
    %167 = arith.mulf %165, %166 : vector<16x32xf32>
    %168 = vector.broadcast %18 : vector<1x32xf32> to vector<16x32xf32>
    %169 = arith.addf %167, %168 : vector<16x32xf32>
    %c1_66 = arith.constant 1 : index
    %c0_67 = arith.constant 0 : index
    %c0_68 = arith.constant 0 : index
    %170 = vector.load %arg9[%c1_66, %c0_67, %c0_68] : memref<3x16x128xf32, #tpu.memory_space<vmem>>, vector<1x16x128xf32>
    %171 = vector.shape_cast %170 : vector<1x16x128xf32> to vector<16x128xf32>
    %172 = vector.extract_strided_slice %171 {offsets = [0, 0], sizes = [1, 32], strides = [1, 1]} : vector<16x128xf32> to vector<1x32xf32>
    %173 = vector.extract_strided_slice %171 {offsets = [1, 0], sizes = [1, 32], strides = [1, 1]} : vector<16x128xf32> to vector<1x32xf32>
    %174 = vector.extract_strided_slice %171 {offsets = [2, 0], sizes = [1, 32], strides = [1, 1]} : vector<16x128xf32> to vector<1x32xf32>
    %175 = vector.extract_strided_slice %171 {offsets = [3, 0], sizes = [1, 32], strides = [1, 1]} : vector<16x128xf32> to vector<1x32xf32>
    %176 = vector.extract_strided_slice %171 {offsets = [4, 0], sizes = [1, 32], strides = [1, 1]} : vector<16x128xf32> to vector<1x32xf32>
    %177 = vector.extract_strided_slice %171 {offsets = [5, 0], sizes = [1, 32], strides = [1, 1]} : vector<16x128xf32> to vector<1x32xf32>
    %178 = vector.extract_strided_slice %171 {offsets = [6, 0], sizes = [1, 64], strides = [1, 1]} : vector<16x128xf32> to vector<1x64xf32>
    %179 = vector.extract_strided_slice %171 {offsets = [7, 0], sizes = [1, 32], strides = [1, 1]} : vector<16x128xf32> to vector<1x32xf32>
    %180 = vector.extract_strided_slice %171 {offsets = [8, 0], sizes = [1, 32], strides = [1, 1]} : vector<16x128xf32> to vector<1x32xf32>
    %181 = vector.extract_strided_slice %171 {offsets = [9, 0], sizes = [1, 32], strides = [1, 1]} : vector<16x128xf32> to vector<1x32xf32>
    %c1_69 = arith.constant 1 : index
    %c0_70 = arith.constant 0 : index
    %c0_71 = arith.constant 0 : index
    %182 = vector.load %arg3[%c1_69, %c0_70, %c0_71] : memref<3x32x32xf32, #tpu.memory_space<vmem>>, vector<1x32x32xf32>
    %183 = vector.shape_cast %182 : vector<1x32x32xf32> to vector<32x32xf32>
    %cst_72 = arith.constant dense<0.000000e+00> : vector<16x32xf32>
    %184 = tpu.matmul %169, %183, %cst_72 {dimension_numbers = #tpu.dot_dimension_numbers<[1], [0], [0], [1], [0, 0, 1, 1], [], []>} : vector<16x32xf32>, vector<32x32xf32>, vector<16x32xf32> -> vector<16x32xf32>
    %185 = vector.broadcast %172 : vector<1x32xf32> to vector<16x32xf32>
    %186 = arith.addf %184, %185 : vector<16x32xf32>
    %c1_73 = arith.constant 1 : index
    %c0_74 = arith.constant 0 : index
    %c0_75 = arith.constant 0 : index
    %187 = vector.load %arg4[%c1_73, %c0_74, %c0_75] : memref<3x32x32xf32, #tpu.memory_space<vmem>>, vector<1x32x32xf32>
    %188 = vector.shape_cast %187 : vector<1x32x32xf32> to vector<32x32xf32>
    %cst_76 = arith.constant dense<0.000000e+00> : vector<16x32xf32>
    %189 = tpu.matmul %169, %188, %cst_76 {dimension_numbers = #tpu.dot_dimension_numbers<[1], [0], [0], [1], [0, 0, 1, 1], [], []>} : vector<16x32xf32>, vector<32x32xf32>, vector<16x32xf32> -> vector<16x32xf32>
    %190 = vector.broadcast %173 : vector<1x32xf32> to vector<16x32xf32>
    %191 = arith.addf %189, %190 : vector<16x32xf32>
    %c1_77 = arith.constant 1 : index
    %c0_78 = arith.constant 0 : index
    %c0_79 = arith.constant 0 : index
    %192 = vector.load %arg5[%c1_77, %c0_78, %c0_79] : memref<3x32x32xf32, #tpu.memory_space<vmem>>, vector<1x32x32xf32>
    %193 = vector.shape_cast %192 : vector<1x32x32xf32> to vector<32x32xf32>
    %cst_80 = arith.constant dense<0.000000e+00> : vector<16x32xf32>
    %194 = tpu.matmul %169, %193, %cst_80 {dimension_numbers = #tpu.dot_dimension_numbers<[1], [0], [0], [1], [0, 0, 1, 1], [], []>} : vector<16x32xf32>, vector<32x32xf32>, vector<16x32xf32> -> vector<16x32xf32>
    %195 = vector.broadcast %174 : vector<1x32xf32> to vector<16x32xf32>
    %196 = arith.addf %194, %195 : vector<16x32xf32>
    %cst_81 = arith.constant 0.000000e+00 : f32
    %197 = vector.broadcast %cst_81 : f32 to vector<16x32xf32>
    %c0_82 = arith.constant 0 : index
    %c0_83 = arith.constant 0 : index
    %198 = vector.load %arg10[%c0_82, %c0_83] : memref<4x32xf32, #tpu.memory_space<vmem>>, vector<1x32xf32>
    %199 = vector.broadcast %198 : vector<1x32xf32> to vector<16x32xf32>
    %200 = arith.mulf %191, %199 : vector<16x32xf32>
    %cst_84 = arith.constant dense<0.000000e+00> : vector<16x16xf32>
    %201 = tpu.matmul %186, %200, %cst_84 {dimension_numbers = #tpu.dot_dimension_numbers<[1], [1], [0], [0], [0, 0, 1, 0], [], []>} : vector<16x32xf32>, vector<16x32xf32>, vector<16x16xf32> -> vector<16x16xf32>
    %202 = arith.addf %201, %6 : vector<16x16xf32>
    %cst_85 = arith.constant dense<0xFF800000> : vector<16xf32>
    %203 = vector.multi_reduction <maximumf>, %202, %cst_85 [1] : vector<16x16xf32> to vector<16xf32>
    %204 = vector.shape_cast %203 : vector<16xf32> to vector<16x1xf32>
    %205 = vector.broadcast %204 : vector<16x1xf32> to vector<16x16xf32>
    %206 = arith.subf %202, %205 : vector<16x16xf32>
    %207 = math.exp %206 : vector<16x16xf32>
    %cst_86 = arith.constant dense<0.000000e+00> : vector<16xf32>
    %208 = vector.multi_reduction <add>, %207, %cst_86 [1] : vector<16x16xf32> to vector<16xf32>
    %209 = vector.shape_cast %208 : vector<16xf32> to vector<16x1xf32>
    %210 = vector.broadcast %209 : vector<16x1xf32> to vector<16x16xf32>
    %211 = arith.divf %207, %210 : vector<16x16xf32>
    %212 = vector.broadcast %198 : vector<1x32xf32> to vector<16x32xf32>
    %213 = arith.mulf %196, %212 : vector<16x32xf32>
    %cst_87 = arith.constant dense<0.000000e+00> : vector<16x32xf32>
    %214 = tpu.matmul %211, %213, %cst_87 {dimension_numbers = #tpu.dot_dimension_numbers<[1], [0], [0], [1], [0, 0, 1, 1], [], []>} : vector<16x16xf32>, vector<16x32xf32>, vector<16x32xf32> -> vector<16x32xf32>
    %215 = arith.addf %197, %214 : vector<16x32xf32>
    %c1_88 = arith.constant 1 : index
    %c0_89 = arith.constant 0 : index
    %216 = vector.load %arg10[%c1_88, %c0_89] : memref<4x32xf32, #tpu.memory_space<vmem>>, vector<1x32xf32>
    %217 = vector.broadcast %216 : vector<1x32xf32> to vector<16x32xf32>
    %218 = arith.mulf %191, %217 : vector<16x32xf32>
    %cst_90 = arith.constant dense<0.000000e+00> : vector<16x16xf32>
    %219 = tpu.matmul %186, %218, %cst_90 {dimension_numbers = #tpu.dot_dimension_numbers<[1], [1], [0], [0], [0, 0, 1, 0], [], []>} : vector<16x32xf32>, vector<16x32xf32>, vector<16x16xf32> -> vector<16x16xf32>
    %220 = arith.addf %219, %6 : vector<16x16xf32>
    %cst_91 = arith.constant dense<0xFF800000> : vector<16xf32>
    %221 = vector.multi_reduction <maximumf>, %220, %cst_91 [1] : vector<16x16xf32> to vector<16xf32>
    %222 = vector.shape_cast %221 : vector<16xf32> to vector<16x1xf32>
    %223 = vector.broadcast %222 : vector<16x1xf32> to vector<16x16xf32>
    %224 = arith.subf %220, %223 : vector<16x16xf32>
    %225 = math.exp %224 : vector<16x16xf32>
    %cst_92 = arith.constant dense<0.000000e+00> : vector<16xf32>
    %226 = vector.multi_reduction <add>, %225, %cst_92 [1] : vector<16x16xf32> to vector<16xf32>
    %227 = vector.shape_cast %226 : vector<16xf32> to vector<16x1xf32>
    %228 = vector.broadcast %227 : vector<16x1xf32> to vector<16x16xf32>
    %229 = arith.divf %225, %228 : vector<16x16xf32>
    %230 = vector.broadcast %216 : vector<1x32xf32> to vector<16x32xf32>
    %231 = arith.mulf %196, %230 : vector<16x32xf32>
    %cst_93 = arith.constant dense<0.000000e+00> : vector<16x32xf32>
    %232 = tpu.matmul %229, %231, %cst_93 {dimension_numbers = #tpu.dot_dimension_numbers<[1], [0], [0], [1], [0, 0, 1, 1], [], []>} : vector<16x16xf32>, vector<16x32xf32>, vector<16x32xf32> -> vector<16x32xf32>
    %233 = arith.addf %215, %232 : vector<16x32xf32>
    %c2_94 = arith.constant 2 : index
    %c0_95 = arith.constant 0 : index
    %234 = vector.load %arg10[%c2_94, %c0_95] : memref<4x32xf32, #tpu.memory_space<vmem>>, vector<1x32xf32>
    %235 = vector.broadcast %234 : vector<1x32xf32> to vector<16x32xf32>
    %236 = arith.mulf %191, %235 : vector<16x32xf32>
    %cst_96 = arith.constant dense<0.000000e+00> : vector<16x16xf32>
    %237 = tpu.matmul %186, %236, %cst_96 {dimension_numbers = #tpu.dot_dimension_numbers<[1], [1], [0], [0], [0, 0, 1, 0], [], []>} : vector<16x32xf32>, vector<16x32xf32>, vector<16x16xf32> -> vector<16x16xf32>
    %238 = arith.addf %237, %6 : vector<16x16xf32>
    %cst_97 = arith.constant dense<0xFF800000> : vector<16xf32>
    %239 = vector.multi_reduction <maximumf>, %238, %cst_97 [1] : vector<16x16xf32> to vector<16xf32>
    %240 = vector.shape_cast %239 : vector<16xf32> to vector<16x1xf32>
    %241 = vector.broadcast %240 : vector<16x1xf32> to vector<16x16xf32>
    %242 = arith.subf %238, %241 : vector<16x16xf32>
    %243 = math.exp %242 : vector<16x16xf32>
    %cst_98 = arith.constant dense<0.000000e+00> : vector<16xf32>
    %244 = vector.multi_reduction <add>, %243, %cst_98 [1] : vector<16x16xf32> to vector<16xf32>
    %245 = vector.shape_cast %244 : vector<16xf32> to vector<16x1xf32>
    %246 = vector.broadcast %245 : vector<16x1xf32> to vector<16x16xf32>
    %247 = arith.divf %243, %246 : vector<16x16xf32>
    %248 = vector.broadcast %234 : vector<1x32xf32> to vector<16x32xf32>
    %249 = arith.mulf %196, %248 : vector<16x32xf32>
    %cst_99 = arith.constant dense<0.000000e+00> : vector<16x32xf32>
    %250 = tpu.matmul %247, %249, %cst_99 {dimension_numbers = #tpu.dot_dimension_numbers<[1], [0], [0], [1], [0, 0, 1, 1], [], []>} : vector<16x16xf32>, vector<16x32xf32>, vector<16x32xf32> -> vector<16x32xf32>
    %251 = arith.addf %233, %250 : vector<16x32xf32>
    %c3_100 = arith.constant 3 : index
    %c0_101 = arith.constant 0 : index
    %252 = vector.load %arg10[%c3_100, %c0_101] : memref<4x32xf32, #tpu.memory_space<vmem>>, vector<1x32xf32>
    %253 = vector.broadcast %252 : vector<1x32xf32> to vector<16x32xf32>
    %254 = arith.mulf %191, %253 : vector<16x32xf32>
    %cst_102 = arith.constant dense<0.000000e+00> : vector<16x16xf32>
    %255 = tpu.matmul %186, %254, %cst_102 {dimension_numbers = #tpu.dot_dimension_numbers<[1], [1], [0], [0], [0, 0, 1, 0], [], []>} : vector<16x32xf32>, vector<16x32xf32>, vector<16x16xf32> -> vector<16x16xf32>
    %256 = arith.addf %255, %6 : vector<16x16xf32>
    %cst_103 = arith.constant dense<0xFF800000> : vector<16xf32>
    %257 = vector.multi_reduction <maximumf>, %256, %cst_103 [1] : vector<16x16xf32> to vector<16xf32>
    %258 = vector.shape_cast %257 : vector<16xf32> to vector<16x1xf32>
    %259 = vector.broadcast %258 : vector<16x1xf32> to vector<16x16xf32>
    %260 = arith.subf %256, %259 : vector<16x16xf32>
    %261 = math.exp %260 : vector<16x16xf32>
    %cst_104 = arith.constant dense<0.000000e+00> : vector<16xf32>
    %262 = vector.multi_reduction <add>, %261, %cst_104 [1] : vector<16x16xf32> to vector<16xf32>
    %263 = vector.shape_cast %262 : vector<16xf32> to vector<16x1xf32>
    %264 = vector.broadcast %263 : vector<16x1xf32> to vector<16x16xf32>
    %265 = arith.divf %261, %264 : vector<16x16xf32>
    %266 = vector.broadcast %252 : vector<1x32xf32> to vector<16x32xf32>
    %267 = arith.mulf %196, %266 : vector<16x32xf32>
    %cst_105 = arith.constant dense<0.000000e+00> : vector<16x32xf32>
    %268 = tpu.matmul %265, %267, %cst_105 {dimension_numbers = #tpu.dot_dimension_numbers<[1], [0], [0], [1], [0, 0, 1, 1], [], []>} : vector<16x16xf32>, vector<16x32xf32>, vector<16x32xf32> -> vector<16x32xf32>
    %269 = arith.addf %251, %268 : vector<16x32xf32>
    %c1_106 = arith.constant 1 : index
    %c0_107 = arith.constant 0 : index
    %c0_108 = arith.constant 0 : index
    %270 = vector.load %arg6[%c1_106, %c0_107, %c0_108] : memref<3x32x32xf32, #tpu.memory_space<vmem>>, vector<1x32x32xf32>
    %271 = vector.shape_cast %270 : vector<1x32x32xf32> to vector<32x32xf32>
    %cst_109 = arith.constant dense<0.000000e+00> : vector<16x32xf32>
    %272 = tpu.matmul %269, %271, %cst_109 {dimension_numbers = #tpu.dot_dimension_numbers<[1], [0], [0], [1], [0, 0, 1, 1], [], []>} : vector<16x32xf32>, vector<32x32xf32>, vector<16x32xf32> -> vector<16x32xf32>
    %273 = vector.broadcast %175 : vector<1x32xf32> to vector<16x32xf32>
    %274 = arith.addf %272, %273 : vector<16x32xf32>
    %275 = arith.addf %169, %274 : vector<16x32xf32>
    %cst_110 = arith.constant dense<0.000000e+00> : vector<16xf32>
    %276 = vector.multi_reduction <add>, %275, %cst_110 [1] : vector<16x32xf32> to vector<16xf32>
    %277 = vector.shape_cast %276 : vector<16xf32> to vector<16x1xf32>
    %cst_111 = arith.constant 3.200000e+01 : f32
    %278 = vector.broadcast %cst_111 : f32 to vector<16x1xf32>
    %279 = arith.divf %277, %278 : vector<16x1xf32>
    %280 = vector.broadcast %279 : vector<16x1xf32> to vector<16x32xf32>
    %281 = arith.subf %275, %280 : vector<16x32xf32>
    %282 = arith.mulf %281, %281 : vector<16x32xf32>
    %cst_112 = arith.constant dense<0.000000e+00> : vector<16xf32>
    %283 = vector.multi_reduction <add>, %282, %cst_112 [1] : vector<16x32xf32> to vector<16xf32>
    %284 = vector.shape_cast %283 : vector<16xf32> to vector<16x1xf32>
    %cst_113 = arith.constant 3.200000e+01 : f32
    %285 = vector.broadcast %cst_113 : f32 to vector<16x1xf32>
    %286 = arith.divf %284, %285 : vector<16x1xf32>
    %287 = vector.broadcast %279 : vector<16x1xf32> to vector<16x32xf32>
    %288 = arith.subf %275, %287 : vector<16x32xf32>
    %cst_114 = arith.constant 9.99999974E-6 : f32
    %289 = vector.broadcast %cst_114 : f32 to vector<16x1xf32>
    %290 = arith.addf %286, %289 : vector<16x1xf32>
    %291 = math.rsqrt %290 : vector<16x1xf32>
    %292 = vector.broadcast %291 : vector<16x1xf32> to vector<16x32xf32>
    %293 = arith.mulf %288, %292 : vector<16x32xf32>
    %294 = vector.broadcast %176 : vector<1x32xf32> to vector<16x32xf32>
    %295 = arith.mulf %293, %294 : vector<16x32xf32>
    %296 = vector.broadcast %177 : vector<1x32xf32> to vector<16x32xf32>
    %297 = arith.addf %295, %296 : vector<16x32xf32>
    %c1_115 = arith.constant 1 : index
    %c0_116 = arith.constant 0 : index
    %c0_117 = arith.constant 0 : index
    %298 = vector.load %arg7[%c1_115, %c0_116, %c0_117] : memref<3x32x64xf32, #tpu.memory_space<vmem>>, vector<1x32x64xf32>
    %299 = vector.shape_cast %298 : vector<1x32x64xf32> to vector<32x64xf32>
    %cst_118 = arith.constant dense<0.000000e+00> : vector<16x64xf32>
    %300 = tpu.matmul %297, %299, %cst_118 {dimension_numbers = #tpu.dot_dimension_numbers<[1], [0], [0], [1], [0, 0, 1, 1], [], []>} : vector<16x32xf32>, vector<32x64xf32>, vector<16x64xf32> -> vector<16x64xf32>
    %301 = vector.broadcast %178 : vector<1x64xf32> to vector<16x64xf32>
    %302 = arith.addf %300, %301 : vector<16x64xf32>
    %cst_119 = arith.constant 0.000000e+00 : f32
    %303 = vector.broadcast %cst_119 : f32 to vector<16x64xf32>
    %304 = arith.maximumf %302, %303 : vector<16x64xf32>
    %c1_120 = arith.constant 1 : index
    %c0_121 = arith.constant 0 : index
    %c0_122 = arith.constant 0 : index
    %305 = vector.load %arg8[%c1_120, %c0_121, %c0_122] : memref<3x64x32xf32, #tpu.memory_space<vmem>>, vector<1x64x32xf32>
    %306 = vector.shape_cast %305 : vector<1x64x32xf32> to vector<64x32xf32>
    %cst_123 = arith.constant dense<0.000000e+00> : vector<16x32xf32>
    %307 = tpu.matmul %304, %306, %cst_123 {dimension_numbers = #tpu.dot_dimension_numbers<[1], [0], [0], [1], [0, 0, 1, 1], [], []>} : vector<16x64xf32>, vector<64x32xf32>, vector<16x32xf32> -> vector<16x32xf32>
    %308 = vector.broadcast %179 : vector<1x32xf32> to vector<16x32xf32>
    %309 = arith.addf %307, %308 : vector<16x32xf32>
    %310 = arith.addf %297, %309 : vector<16x32xf32>
    %cst_124 = arith.constant dense<0.000000e+00> : vector<16xf32>
    %311 = vector.multi_reduction <add>, %310, %cst_124 [1] : vector<16x32xf32> to vector<16xf32>
    %312 = vector.shape_cast %311 : vector<16xf32> to vector<16x1xf32>
    %cst_125 = arith.constant 3.200000e+01 : f32
    %313 = vector.broadcast %cst_125 : f32 to vector<16x1xf32>
    %314 = arith.divf %312, %313 : vector<16x1xf32>
    %315 = vector.broadcast %314 : vector<16x1xf32> to vector<16x32xf32>
    %316 = arith.subf %310, %315 : vector<16x32xf32>
    %317 = arith.mulf %316, %316 : vector<16x32xf32>
    %cst_126 = arith.constant dense<0.000000e+00> : vector<16xf32>
    %318 = vector.multi_reduction <add>, %317, %cst_126 [1] : vector<16x32xf32> to vector<16xf32>
    %319 = vector.shape_cast %318 : vector<16xf32> to vector<16x1xf32>
    %cst_127 = arith.constant 3.200000e+01 : f32
    %320 = vector.broadcast %cst_127 : f32 to vector<16x1xf32>
    %321 = arith.divf %319, %320 : vector<16x1xf32>
    %322 = vector.broadcast %314 : vector<16x1xf32> to vector<16x32xf32>
    %323 = arith.subf %310, %322 : vector<16x32xf32>
    %cst_128 = arith.constant 9.99999974E-6 : f32
    %324 = vector.broadcast %cst_128 : f32 to vector<16x1xf32>
    %325 = arith.addf %321, %324 : vector<16x1xf32>
    %326 = math.rsqrt %325 : vector<16x1xf32>
    %327 = vector.broadcast %326 : vector<16x1xf32> to vector<16x32xf32>
    %328 = arith.mulf %323, %327 : vector<16x32xf32>
    %329 = vector.broadcast %180 : vector<1x32xf32> to vector<16x32xf32>
    %330 = arith.mulf %328, %329 : vector<16x32xf32>
    %331 = vector.broadcast %181 : vector<1x32xf32> to vector<16x32xf32>
    %332 = arith.addf %330, %331 : vector<16x32xf32>
    %c2_129 = arith.constant 2 : index
    %c0_130 = arith.constant 0 : index
    %c0_131 = arith.constant 0 : index
    %333 = vector.load %arg9[%c2_129, %c0_130, %c0_131] : memref<3x16x128xf32, #tpu.memory_space<vmem>>, vector<1x16x128xf32>
    %334 = vector.shape_cast %333 : vector<1x16x128xf32> to vector<16x128xf32>
    %335 = vector.extract_strided_slice %334 {offsets = [0, 0], sizes = [1, 32], strides = [1, 1]} : vector<16x128xf32> to vector<1x32xf32>
    %336 = vector.extract_strided_slice %334 {offsets = [1, 0], sizes = [1, 32], strides = [1, 1]} : vector<16x128xf32> to vector<1x32xf32>
    %337 = vector.extract_strided_slice %334 {offsets = [2, 0], sizes = [1, 32], strides = [1, 1]} : vector<16x128xf32> to vector<1x32xf32>
    %338 = vector.extract_strided_slice %334 {offsets = [3, 0], sizes = [1, 32], strides = [1, 1]} : vector<16x128xf32> to vector<1x32xf32>
    %339 = vector.extract_strided_slice %334 {offsets = [4, 0], sizes = [1, 32], strides = [1, 1]} : vector<16x128xf32> to vector<1x32xf32>
    %340 = vector.extract_strided_slice %334 {offsets = [5, 0], sizes = [1, 32], strides = [1, 1]} : vector<16x128xf32> to vector<1x32xf32>
    %341 = vector.extract_strided_slice %334 {offsets = [6, 0], sizes = [1, 64], strides = [1, 1]} : vector<16x128xf32> to vector<1x64xf32>
    %342 = vector.extract_strided_slice %334 {offsets = [7, 0], sizes = [1, 32], strides = [1, 1]} : vector<16x128xf32> to vector<1x32xf32>
    %343 = vector.extract_strided_slice %334 {offsets = [8, 0], sizes = [1, 32], strides = [1, 1]} : vector<16x128xf32> to vector<1x32xf32>
    %344 = vector.extract_strided_slice %334 {offsets = [9, 0], sizes = [1, 32], strides = [1, 1]} : vector<16x128xf32> to vector<1x32xf32>
    %c2_132 = arith.constant 2 : index
    %c0_133 = arith.constant 0 : index
    %c0_134 = arith.constant 0 : index
    %345 = vector.load %arg3[%c2_132, %c0_133, %c0_134] : memref<3x32x32xf32, #tpu.memory_space<vmem>>, vector<1x32x32xf32>
    %346 = vector.shape_cast %345 : vector<1x32x32xf32> to vector<32x32xf32>
    %cst_135 = arith.constant dense<0.000000e+00> : vector<16x32xf32>
    %347 = tpu.matmul %332, %346, %cst_135 {dimension_numbers = #tpu.dot_dimension_numbers<[1], [0], [0], [1], [0, 0, 1, 1], [], []>} : vector<16x32xf32>, vector<32x32xf32>, vector<16x32xf32> -> vector<16x32xf32>
    %348 = vector.broadcast %335 : vector<1x32xf32> to vector<16x32xf32>
    %349 = arith.addf %347, %348 : vector<16x32xf32>
    %c2_136 = arith.constant 2 : index
    %c0_137 = arith.constant 0 : index
    %c0_138 = arith.constant 0 : index
    %350 = vector.load %arg4[%c2_136, %c0_137, %c0_138] : memref<3x32x32xf32, #tpu.memory_space<vmem>>, vector<1x32x32xf32>
    %351 = vector.shape_cast %350 : vector<1x32x32xf32> to vector<32x32xf32>
    %cst_139 = arith.constant dense<0.000000e+00> : vector<16x32xf32>
    %352 = tpu.matmul %332, %351, %cst_139 {dimension_numbers = #tpu.dot_dimension_numbers<[1], [0], [0], [1], [0, 0, 1, 1], [], []>} : vector<16x32xf32>, vector<32x32xf32>, vector<16x32xf32> -> vector<16x32xf32>
    %353 = vector.broadcast %336 : vector<1x32xf32> to vector<16x32xf32>
    %354 = arith.addf %352, %353 : vector<16x32xf32>
    %c2_140 = arith.constant 2 : index
    %c0_141 = arith.constant 0 : index
    %c0_142 = arith.constant 0 : index
    %355 = vector.load %arg5[%c2_140, %c0_141, %c0_142] : memref<3x32x32xf32, #tpu.memory_space<vmem>>, vector<1x32x32xf32>
    %356 = vector.shape_cast %355 : vector<1x32x32xf32> to vector<32x32xf32>
    %cst_143 = arith.constant dense<0.000000e+00> : vector<16x32xf32>
    %357 = tpu.matmul %332, %356, %cst_143 {dimension_numbers = #tpu.dot_dimension_numbers<[1], [0], [0], [1], [0, 0, 1, 1], [], []>} : vector<16x32xf32>, vector<32x32xf32>, vector<16x32xf32> -> vector<16x32xf32>
    %358 = vector.broadcast %337 : vector<1x32xf32> to vector<16x32xf32>
    %359 = arith.addf %357, %358 : vector<16x32xf32>
    %cst_144 = arith.constant 0.000000e+00 : f32
    %360 = vector.broadcast %cst_144 : f32 to vector<16x32xf32>
    %c0_145 = arith.constant 0 : index
    %c0_146 = arith.constant 0 : index
    %361 = vector.load %arg10[%c0_145, %c0_146] : memref<4x32xf32, #tpu.memory_space<vmem>>, vector<1x32xf32>
    %362 = vector.broadcast %361 : vector<1x32xf32> to vector<16x32xf32>
    %363 = arith.mulf %354, %362 : vector<16x32xf32>
    %cst_147 = arith.constant dense<0.000000e+00> : vector<16x16xf32>
    %364 = tpu.matmul %349, %363, %cst_147 {dimension_numbers = #tpu.dot_dimension_numbers<[1], [1], [0], [0], [0, 0, 1, 0], [], []>} : vector<16x32xf32>, vector<16x32xf32>, vector<16x16xf32> -> vector<16x16xf32>
    %365 = arith.addf %364, %6 : vector<16x16xf32>
    %cst_148 = arith.constant dense<0xFF800000> : vector<16xf32>
    %366 = vector.multi_reduction <maximumf>, %365, %cst_148 [1] : vector<16x16xf32> to vector<16xf32>
    %367 = vector.shape_cast %366 : vector<16xf32> to vector<16x1xf32>
    %368 = vector.broadcast %367 : vector<16x1xf32> to vector<16x16xf32>
    %369 = arith.subf %365, %368 : vector<16x16xf32>
    %370 = math.exp %369 : vector<16x16xf32>
    %cst_149 = arith.constant dense<0.000000e+00> : vector<16xf32>
    %371 = vector.multi_reduction <add>, %370, %cst_149 [1] : vector<16x16xf32> to vector<16xf32>
    %372 = vector.shape_cast %371 : vector<16xf32> to vector<16x1xf32>
    %373 = vector.broadcast %372 : vector<16x1xf32> to vector<16x16xf32>
    %374 = arith.divf %370, %373 : vector<16x16xf32>
    %375 = vector.broadcast %361 : vector<1x32xf32> to vector<16x32xf32>
    %376 = arith.mulf %359, %375 : vector<16x32xf32>
    %cst_150 = arith.constant dense<0.000000e+00> : vector<16x32xf32>
    %377 = tpu.matmul %374, %376, %cst_150 {dimension_numbers = #tpu.dot_dimension_numbers<[1], [0], [0], [1], [0, 0, 1, 1], [], []>} : vector<16x16xf32>, vector<16x32xf32>, vector<16x32xf32> -> vector<16x32xf32>
    %378 = arith.addf %360, %377 : vector<16x32xf32>
    %c1_151 = arith.constant 1 : index
    %c0_152 = arith.constant 0 : index
    %379 = vector.load %arg10[%c1_151, %c0_152] : memref<4x32xf32, #tpu.memory_space<vmem>>, vector<1x32xf32>
    %380 = vector.broadcast %379 : vector<1x32xf32> to vector<16x32xf32>
    %381 = arith.mulf %354, %380 : vector<16x32xf32>
    %cst_153 = arith.constant dense<0.000000e+00> : vector<16x16xf32>
    %382 = tpu.matmul %349, %381, %cst_153 {dimension_numbers = #tpu.dot_dimension_numbers<[1], [1], [0], [0], [0, 0, 1, 0], [], []>} : vector<16x32xf32>, vector<16x32xf32>, vector<16x16xf32> -> vector<16x16xf32>
    %383 = arith.addf %382, %6 : vector<16x16xf32>
    %cst_154 = arith.constant dense<0xFF800000> : vector<16xf32>
    %384 = vector.multi_reduction <maximumf>, %383, %cst_154 [1] : vector<16x16xf32> to vector<16xf32>
    %385 = vector.shape_cast %384 : vector<16xf32> to vector<16x1xf32>
    %386 = vector.broadcast %385 : vector<16x1xf32> to vector<16x16xf32>
    %387 = arith.subf %383, %386 : vector<16x16xf32>
    %388 = math.exp %387 : vector<16x16xf32>
    %cst_155 = arith.constant dense<0.000000e+00> : vector<16xf32>
    %389 = vector.multi_reduction <add>, %388, %cst_155 [1] : vector<16x16xf32> to vector<16xf32>
    %390 = vector.shape_cast %389 : vector<16xf32> to vector<16x1xf32>
    %391 = vector.broadcast %390 : vector<16x1xf32> to vector<16x16xf32>
    %392 = arith.divf %388, %391 : vector<16x16xf32>
    %393 = vector.broadcast %379 : vector<1x32xf32> to vector<16x32xf32>
    %394 = arith.mulf %359, %393 : vector<16x32xf32>
    %cst_156 = arith.constant dense<0.000000e+00> : vector<16x32xf32>
    %395 = tpu.matmul %392, %394, %cst_156 {dimension_numbers = #tpu.dot_dimension_numbers<[1], [0], [0], [1], [0, 0, 1, 1], [], []>} : vector<16x16xf32>, vector<16x32xf32>, vector<16x32xf32> -> vector<16x32xf32>
    %396 = arith.addf %378, %395 : vector<16x32xf32>
    %c2_157 = arith.constant 2 : index
    %c0_158 = arith.constant 0 : index
    %397 = vector.load %arg10[%c2_157, %c0_158] : memref<4x32xf32, #tpu.memory_space<vmem>>, vector<1x32xf32>
    %398 = vector.broadcast %397 : vector<1x32xf32> to vector<16x32xf32>
    %399 = arith.mulf %354, %398 : vector<16x32xf32>
    %cst_159 = arith.constant dense<0.000000e+00> : vector<16x16xf32>
    %400 = tpu.matmul %349, %399, %cst_159 {dimension_numbers = #tpu.dot_dimension_numbers<[1], [1], [0], [0], [0, 0, 1, 0], [], []>} : vector<16x32xf32>, vector<16x32xf32>, vector<16x16xf32> -> vector<16x16xf32>
    %401 = arith.addf %400, %6 : vector<16x16xf32>
    %cst_160 = arith.constant dense<0xFF800000> : vector<16xf32>
    %402 = vector.multi_reduction <maximumf>, %401, %cst_160 [1] : vector<16x16xf32> to vector<16xf32>
    %403 = vector.shape_cast %402 : vector<16xf32> to vector<16x1xf32>
    %404 = vector.broadcast %403 : vector<16x1xf32> to vector<16x16xf32>
    %405 = arith.subf %401, %404 : vector<16x16xf32>
    %406 = math.exp %405 : vector<16x16xf32>
    %cst_161 = arith.constant dense<0.000000e+00> : vector<16xf32>
    %407 = vector.multi_reduction <add>, %406, %cst_161 [1] : vector<16x16xf32> to vector<16xf32>
    %408 = vector.shape_cast %407 : vector<16xf32> to vector<16x1xf32>
    %409 = vector.broadcast %408 : vector<16x1xf32> to vector<16x16xf32>
    %410 = arith.divf %406, %409 : vector<16x16xf32>
    %411 = vector.broadcast %397 : vector<1x32xf32> to vector<16x32xf32>
    %412 = arith.mulf %359, %411 : vector<16x32xf32>
    %cst_162 = arith.constant dense<0.000000e+00> : vector<16x32xf32>
    %413 = tpu.matmul %410, %412, %cst_162 {dimension_numbers = #tpu.dot_dimension_numbers<[1], [0], [0], [1], [0, 0, 1, 1], [], []>} : vector<16x16xf32>, vector<16x32xf32>, vector<16x32xf32> -> vector<16x32xf32>
    %414 = arith.addf %396, %413 : vector<16x32xf32>
    %c3_163 = arith.constant 3 : index
    %c0_164 = arith.constant 0 : index
    %415 = vector.load %arg10[%c3_163, %c0_164] : memref<4x32xf32, #tpu.memory_space<vmem>>, vector<1x32xf32>
    %416 = vector.broadcast %415 : vector<1x32xf32> to vector<16x32xf32>
    %417 = arith.mulf %354, %416 : vector<16x32xf32>
    %cst_165 = arith.constant dense<0.000000e+00> : vector<16x16xf32>
    %418 = tpu.matmul %349, %417, %cst_165 {dimension_numbers = #tpu.dot_dimension_numbers<[1], [1], [0], [0], [0, 0, 1, 0], [], []>} : vector<16x32xf32>, vector<16x32xf32>, vector<16x16xf32> -> vector<16x16xf32>
    %419 = arith.addf %418, %6 : vector<16x16xf32>
    %cst_166 = arith.constant dense<0xFF800000> : vector<16xf32>
    %420 = vector.multi_reduction <maximumf>, %419, %cst_166 [1] : vector<16x16xf32> to vector<16xf32>
    %421 = vector.shape_cast %420 : vector<16xf32> to vector<16x1xf32>
    %422 = vector.broadcast %421 : vector<16x1xf32> to vector<16x16xf32>
    %423 = arith.subf %419, %422 : vector<16x16xf32>
    %424 = math.exp %423 : vector<16x16xf32>
    %cst_167 = arith.constant dense<0.000000e+00> : vector<16xf32>
    %425 = vector.multi_reduction <add>, %424, %cst_167 [1] : vector<16x16xf32> to vector<16xf32>
    %426 = vector.shape_cast %425 : vector<16xf32> to vector<16x1xf32>
    %427 = vector.broadcast %426 : vector<16x1xf32> to vector<16x16xf32>
    %428 = arith.divf %424, %427 : vector<16x16xf32>
    %429 = vector.broadcast %415 : vector<1x32xf32> to vector<16x32xf32>
    %430 = arith.mulf %359, %429 : vector<16x32xf32>
    %cst_168 = arith.constant dense<0.000000e+00> : vector<16x32xf32>
    %431 = tpu.matmul %428, %430, %cst_168 {dimension_numbers = #tpu.dot_dimension_numbers<[1], [0], [0], [1], [0, 0, 1, 1], [], []>} : vector<16x16xf32>, vector<16x32xf32>, vector<16x32xf32> -> vector<16x32xf32>
    %432 = arith.addf %414, %431 : vector<16x32xf32>
    %c2_169 = arith.constant 2 : index
    %c0_170 = arith.constant 0 : index
    %c0_171 = arith.constant 0 : index
    %433 = vector.load %arg6[%c2_169, %c0_170, %c0_171] : memref<3x32x32xf32, #tpu.memory_space<vmem>>, vector<1x32x32xf32>
    %434 = vector.shape_cast %433 : vector<1x32x32xf32> to vector<32x32xf32>
    %cst_172 = arith.constant dense<0.000000e+00> : vector<16x32xf32>
    %435 = tpu.matmul %432, %434, %cst_172 {dimension_numbers = #tpu.dot_dimension_numbers<[1], [0], [0], [1], [0, 0, 1, 1], [], []>} : vector<16x32xf32>, vector<32x32xf32>, vector<16x32xf32> -> vector<16x32xf32>
    %436 = vector.broadcast %338 : vector<1x32xf32> to vector<16x32xf32>
    %437 = arith.addf %435, %436 : vector<16x32xf32>
    %438 = arith.addf %332, %437 : vector<16x32xf32>
    %cst_173 = arith.constant dense<0.000000e+00> : vector<16xf32>
    %439 = vector.multi_reduction <add>, %438, %cst_173 [1] : vector<16x32xf32> to vector<16xf32>
    %440 = vector.shape_cast %439 : vector<16xf32> to vector<16x1xf32>
    %cst_174 = arith.constant 3.200000e+01 : f32
    %441 = vector.broadcast %cst_174 : f32 to vector<16x1xf32>
    %442 = arith.divf %440, %441 : vector<16x1xf32>
    %443 = vector.broadcast %442 : vector<16x1xf32> to vector<16x32xf32>
    %444 = arith.subf %438, %443 : vector<16x32xf32>
    %445 = arith.mulf %444, %444 : vector<16x32xf32>
    %cst_175 = arith.constant dense<0.000000e+00> : vector<16xf32>
    %446 = vector.multi_reduction <add>, %445, %cst_175 [1] : vector<16x32xf32> to vector<16xf32>
    %447 = vector.shape_cast %446 : vector<16xf32> to vector<16x1xf32>
    %cst_176 = arith.constant 3.200000e+01 : f32
    %448 = vector.broadcast %cst_176 : f32 to vector<16x1xf32>
    %449 = arith.divf %447, %448 : vector<16x1xf32>
    %450 = vector.broadcast %442 : vector<16x1xf32> to vector<16x32xf32>
    %451 = arith.subf %438, %450 : vector<16x32xf32>
    %cst_177 = arith.constant 9.99999974E-6 : f32
    %452 = vector.broadcast %cst_177 : f32 to vector<16x1xf32>
    %453 = arith.addf %449, %452 : vector<16x1xf32>
    %454 = math.rsqrt %453 : vector<16x1xf32>
    %455 = vector.broadcast %454 : vector<16x1xf32> to vector<16x32xf32>
    %456 = arith.mulf %451, %455 : vector<16x32xf32>
    %457 = vector.broadcast %339 : vector<1x32xf32> to vector<16x32xf32>
    %458 = arith.mulf %456, %457 : vector<16x32xf32>
    %459 = vector.broadcast %340 : vector<1x32xf32> to vector<16x32xf32>
    %460 = arith.addf %458, %459 : vector<16x32xf32>
    %c2_178 = arith.constant 2 : index
    %c0_179 = arith.constant 0 : index
    %c0_180 = arith.constant 0 : index
    %461 = vector.load %arg7[%c2_178, %c0_179, %c0_180] : memref<3x32x64xf32, #tpu.memory_space<vmem>>, vector<1x32x64xf32>
    %462 = vector.shape_cast %461 : vector<1x32x64xf32> to vector<32x64xf32>
    %cst_181 = arith.constant dense<0.000000e+00> : vector<16x64xf32>
    %463 = tpu.matmul %460, %462, %cst_181 {dimension_numbers = #tpu.dot_dimension_numbers<[1], [0], [0], [1], [0, 0, 1, 1], [], []>} : vector<16x32xf32>, vector<32x64xf32>, vector<16x64xf32> -> vector<16x64xf32>
    %464 = vector.broadcast %341 : vector<1x64xf32> to vector<16x64xf32>
    %465 = arith.addf %463, %464 : vector<16x64xf32>
    %cst_182 = arith.constant 0.000000e+00 : f32
    %466 = vector.broadcast %cst_182 : f32 to vector<16x64xf32>
    %467 = arith.maximumf %465, %466 : vector<16x64xf32>
    %c2_183 = arith.constant 2 : index
    %c0_184 = arith.constant 0 : index
    %c0_185 = arith.constant 0 : index
    %468 = vector.load %arg8[%c2_183, %c0_184, %c0_185] : memref<3x64x32xf32, #tpu.memory_space<vmem>>, vector<1x64x32xf32>
    %469 = vector.shape_cast %468 : vector<1x64x32xf32> to vector<64x32xf32>
    %cst_186 = arith.constant dense<0.000000e+00> : vector<16x32xf32>
    %470 = tpu.matmul %467, %469, %cst_186 {dimension_numbers = #tpu.dot_dimension_numbers<[1], [0], [0], [1], [0, 0, 1, 1], [], []>} : vector<16x64xf32>, vector<64x32xf32>, vector<16x32xf32> -> vector<16x32xf32>
    %471 = vector.broadcast %342 : vector<1x32xf32> to vector<16x32xf32>
    %472 = arith.addf %470, %471 : vector<16x32xf32>
    %473 = arith.addf %460, %472 : vector<16x32xf32>
    %cst_187 = arith.constant dense<0.000000e+00> : vector<16xf32>
    %474 = vector.multi_reduction <add>, %473, %cst_187 [1] : vector<16x32xf32> to vector<16xf32>
    %475 = vector.shape_cast %474 : vector<16xf32> to vector<16x1xf32>
    %cst_188 = arith.constant 3.200000e+01 : f32
    %476 = vector.broadcast %cst_188 : f32 to vector<16x1xf32>
    %477 = arith.divf %475, %476 : vector<16x1xf32>
    %478 = vector.broadcast %477 : vector<16x1xf32> to vector<16x32xf32>
    %479 = arith.subf %473, %478 : vector<16x32xf32>
    %480 = arith.mulf %479, %479 : vector<16x32xf32>
    %cst_189 = arith.constant dense<0.000000e+00> : vector<16xf32>
    %481 = vector.multi_reduction <add>, %480, %cst_189 [1] : vector<16x32xf32> to vector<16xf32>
    %482 = vector.shape_cast %481 : vector<16xf32> to vector<16x1xf32>
    %cst_190 = arith.constant 3.200000e+01 : f32
    %483 = vector.broadcast %cst_190 : f32 to vector<16x1xf32>
    %484 = arith.divf %482, %483 : vector<16x1xf32>
    %485 = vector.broadcast %477 : vector<16x1xf32> to vector<16x32xf32>
    %486 = arith.subf %473, %485 : vector<16x32xf32>
    %cst_191 = arith.constant 9.99999974E-6 : f32
    %487 = vector.broadcast %cst_191 : f32 to vector<16x1xf32>
    %488 = arith.addf %484, %487 : vector<16x1xf32>
    %489 = math.rsqrt %488 : vector<16x1xf32>
    %490 = vector.broadcast %489 : vector<16x1xf32> to vector<16x32xf32>
    %491 = arith.mulf %486, %490 : vector<16x32xf32>
    %492 = vector.broadcast %343 : vector<1x32xf32> to vector<16x32xf32>
    %493 = arith.mulf %491, %492 : vector<16x32xf32>
    %494 = vector.broadcast %344 : vector<1x32xf32> to vector<16x32xf32>
    %495 = arith.addf %493, %494 : vector<16x32xf32>
    %c0_192 = arith.constant 0 : index
    %c0_193 = arith.constant 0 : index
    %496 = vector.load %arg12[%c0_192, %c0_193] : memref<32x512xf32, #tpu.memory_space<vmem>>, vector<32x512xf32>
    %cst_194 = arith.constant dense<0.000000e+00> : vector<16x512xf32>
    %497 = tpu.matmul %495, %496, %cst_194 {dimension_numbers = #tpu.dot_dimension_numbers<[1], [0], [0], [1], [0, 0, 1, 1], [], []>} : vector<16x32xf32>, vector<32x512xf32>, vector<16x512xf32> -> vector<16x512xf32>
    %c0_195 = arith.constant 0 : index
    %c0_196 = arith.constant 0 : index
    %498 = vector.load %arg13[%c0_195, %c0_196] : memref<16x512xf32, #tpu.memory_space<vmem>>, vector<16x512xf32>
    %499 = arith.mulf %497, %498 : vector<16x512xf32>
    %c0_197 = arith.constant 0 : index
    %c0_198 = arith.constant 0 : index
    %500 = vector.load %arg14[%c0_197, %c0_198] : memref<512x64xf32, #tpu.memory_space<vmem>>, vector<512x64xf32>
    %cst_199 = arith.constant dense<0.000000e+00> : vector<16x64xf32>
    %501 = tpu.matmul %499, %500, %cst_199 {dimension_numbers = #tpu.dot_dimension_numbers<[1], [0], [0], [1], [0, 0, 1, 1], [], []>} : vector<16x512xf32>, vector<512x64xf32>, vector<16x64xf32> -> vector<16x64xf32>
    %c0_200 = arith.constant 0 : index
    %c0_201 = arith.constant 0 : index
    %502 = vector.load %arg15[%c0_200, %c0_201] : memref<2x16xf32, #tpu.memory_space<vmem>>, vector<2x16xf32>
    %cst_202 = arith.constant dense<0.000000e+00> : vector<2x64xf32>
    %503 = tpu.matmul %502, %501, %cst_202 {dimension_numbers = #tpu.dot_dimension_numbers<[1], [0], [0], [1], [0, 0, 1, 1], [], []>} : vector<2x16xf32>, vector<16x64xf32>, vector<2x64xf32> -> vector<2x64xf32>
    %c0_203 = arith.constant 0 : index
    %c0_204 = arith.constant 0 : index
    %504 = vector.load %arg16[%c0_203, %c0_204] : memref<1x64xf32, #tpu.memory_space<vmem>>, vector<1x64xf32>
    %505 = vector.broadcast %504 : vector<1x64xf32> to vector<2x64xf32>
    %506 = arith.addf %503, %505 : vector<2x64xf32>
    %cst_205 = arith.constant 0.000000e+00 : f32
    %507 = vector.broadcast %cst_205 : f32 to vector<2x64xf32>
    %508 = arith.maximumf %506, %507 : vector<2x64xf32>
    %c0_206 = arith.constant 0 : index
    %c0_207 = arith.constant 0 : index
    %509 = vector.load %arg17[%c0_206, %c0_207] : memref<64x2xf32, #tpu.memory_space<vmem>>, vector<64x2xf32>
    %cst_208 = arith.constant dense<0.000000e+00> : vector<2x2xf32>
    %510 = tpu.matmul %508, %509, %cst_208 {dimension_numbers = #tpu.dot_dimension_numbers<[1], [0], [0], [1], [0, 0, 1, 1], [], []>} : vector<2x64xf32>, vector<64x2xf32>, vector<2x2xf32> -> vector<2x2xf32>
    %c0_209 = arith.constant 0 : index
    %c0_210 = arith.constant 0 : index
    %511 = vector.load %arg18[%c0_209, %c0_210] : memref<1x2xf32, #tpu.memory_space<vmem>>, vector<1x2xf32>
    %512 = vector.broadcast %511 : vector<1x2xf32> to vector<2x2xf32>
    %513 = arith.addf %510, %512 : vector<2x2xf32>
    %c0_211 = arith.constant 0 : index
    %c0_212 = arith.constant 0 : index
    %514 = vector.load %arg19[%c0_211, %c0_212] : memref<2x2xf32, #tpu.memory_space<vmem>>, vector<2x2xf32>
    tpu.vector_store %arg19[%c0_211, %c0_212], %513 {strides = array<i32>} : memref<2x2xf32, #tpu.memory_space<vmem>>, vector<2x2xf32>,
    return
  }
}

</mosaic_0001>

<bundles_post_ra>
// kernel: tab_transformer_forward.1
= control target key start
LH: loop header
LB: loop body
LE: loop exit
PB: predicated region body
PF: predicated region fallthrough
CT: control target
= control target key end

     0   :  { %s7186_s0 = inlined_call_operand.vmem [shape: f32[16,1], index: 0, kind: input, shape index: {}]   ;;  %s7187_s1 = inlined_call_operand.vmem [shape: f32[16,32], index: 1, kind: input, shape index: {}]   ;;  %s7188_s2 = inlined_call_operand.vmem [shape: f32[16,32], index: 2, kind: input, shape index: {}]   ;;  %s7189_s3 = inlined_call_operand.vmem [shape: f32[3,32,32], index: 3, kind: input, shape index: {}]   ;;  %s7190_s4 = inlined_call_operand.vmem [shape: f32[3,32,32], index: 4, kind: input, shape index: {}]   ;;  %s7191_s5 = inlined_call_operand.vmem [shape: f32[3,32,32], index: 5, kind: input, shape index: {}]   ;;  %s7192_s6 = inlined_call_operand.vmem [shape: f32[3,32,32], index: 6, kind: input, shape index: {}]   ;;  %s7193_s7 = inlined_call_operand.vmem [shape: f32[3,32,64], index: 7, kind: input, shape index: {}]   ;;  %s7194_s8 = inlined_call_operand.vmem [shape: f32[3,64,32], index: 8, kind: input, shape index: {}]   ;;  %s7195_s9 = inlined_call_operand.vmem [shape: f32[3,16,128], index: 9, kind: input, shape index: {}]   ;;  %s7196_s10 = inlined_call_operand.vmem [shape: f32[4,32], index: 10, kind: input, shape index: {}]   ;;  %s7197_s11 = inlined_call_operand.vmem [shape: f32[16,16], index: 11, kind: input, shape index: {}]   ;;  %s7198_s12 = inlined_call_operand.vmem [shape: f32[32,512], index: 12, kind: input, shape index: {}]   ;;  %s7199_s13 = inlined_call_operand.vmem [shape: f32[16,512], index: 13, kind: input, shape index: {}]   ;;  %s7200_s14 = inlined_call_operand.vmem [shape: f32[512,64], index: 14, kind: input, shape index: {}]   ;;  %s7201_s15 = inlined_call_operand.vmem [shape: f32[2,16], index: 15, kind: input, shape index: {}]   ;;  %s7202_s16 = inlined_call_operand.vmem [shape: f32[1,64], index: 16, kind: input, shape index: {}]   ;;  %s7203_s17 = inlined_call_operand.vmem [shape: f32[64,2], index: 17, kind: input, shape index: {}]   ;;  %s7204_s18 = inlined_call_operand.vmem [shape: f32[1,2], index: 18, kind: input, shape index: {}]   ;;  %s7205_s19 = inlined_call_operand.hbm [shape: f32[2,2], index: 19, kind: output, shape index: {}]  }
   0x1   :  { %7211 = sst [smem:[#allocation5_spill]] %s7186_s0 }
   0x2   :  { %7212 = sst [smem:[#allocation6_spill]] %s7187_s1 }
   0x3   :  { %7213 = sst [smem:[#allocation7_spill]] %s7188_s2 }
   0x4   :  { %7214 = sst [smem:[#allocation8_spill]] %s7189_s3 }
   0x5   :  { %7215 = sst [smem:[#allocation9_spill]] %s7199_s13 }
   0x6   :  { %s7216_s20 = sld [smem:[#allocation5_spill]]  ;;  %v5884_v2 = vmov 0   ;;  %v180_v3 = vld [vmem:[%s7190_s4 + $0x18] sm:$0xff]  ;;  %v179_v5 = vld [vmem:[%s7190_s4 + $0x10] sm:$0xff]  ;;  %v178_v8 = vld [vmem:[%s7190_s4 + $0x8] sm:$0xff] }
   0x7   :  { %s7217_s13 = sld [smem:[#allocation8_spill]]  ;;  %5735 = vset.pattern.permute.xlu0 %v5884_v2  ;;  %5326 = vmatprep.subr.mxu1 %v180_v3 }
   0x8   :  { %5327 = vmatpush3.msra.mxu1 %v180_v3 }
   0x9   :  { %5328 = vmatprep.subr.mxu1 %v179_v5 }
   0xc   :  { %v63_v0 = vld [vmem:[%s7216_s20] sm:$0xff]  ;;  %v64_v7 = vld [vmem:[%s7216_s20 + $0x8] sm:$0xff] }
   0xd   :  { %v90_v1 = vld [vmem:[%s7217_s13 + $0x18] sm:$0xff]  ;;  %69 = vperm.xlu0 %5735, %v63_v0   ;;  %v89_v4 = vld [vmem:[%s7217_s13 + $0x10] sm:$0xff]  ;;  %v88_v6 = vld [vmem:[%s7217_s13 + $0x8] sm:$0xff] }
   0xe   :  { %5315 = vmatprep.subr.mxu0 %v90_v1  ;;  %v87_v9 = vld [vmem:[%s7217_s13] sm:$0xff] }
   0xf   :  { %5316 = vmatpush3.msra.mxu0 %v90_v1 }
  0x10   :  { %5317 = vmatprep.subr.mxu0 %v89_v4 }
  0x11   :  { %5318 = vmatpush3.msra.mxu0 %v89_v4 }
  0x12   :  { %5319 = vmatprep.subr.mxu0 %v88_v6 }
  0x13   :  { %24 = vsyncpa [#allocation3], 0  ;;  %74 = vperm.xlu0 %5735, %v64_v7   ;;  %5329 = vmatpush3.msra.mxu1 %v179_v5  ;;  %v177_v10 = vld [vmem:[%s7190_s4] sm:$0xff]  ;;  %v263_v11 = vld [vmem:[%s7191_s5 + $0x18] sm:$0xff]  ;;  %s7218_s3 = sld [smem:[#allocation6_spill]]  ;;  %vm95_vm0 = vcmask 261120   ;;  %v91_v25 = vlaneseq }
  0x14   :  { %5320 = vmatpush3.msra.mxu0 %v88_v6  ;;  %5330 = vmatprep.subr.mxu1 %v178_v8  ;;  %s7219_s28 = sld [smem:[#allocation7_spill]]  ;;  %v262_v22 = vld [vmem:[%s7191_s5 + $0x10] sm:$0xff]  ;;  %v261_v23 = vld [vmem:[%s7191_s5 + $0x8] sm:$0xff]  ;;  %v260_v24 = vld [vmem:[%s7191_s5] sm:$0xff]  ;;  %vm437_vm1 = vcmask 130048   ;;  %vm1359_vm2 = vcmask 523264  }
  0x15   :  { %5321 = vmatprep.subr.mxu0 %v87_v9  ;;  %5331 = vmatpush3.msra.mxu1 %v178_v8  ;;  %v6058_v26 = vshrl.u32 %v91_v25, 7  ;;  %v6066_v28 = vld [vmem:[%s7195_s9] sm:$0xff]  ;;  %v6155_v61 = vld [vmem:[%s7197_s11 + $0x8] sm:$0xff]  ;;  %vm5886_vm3 = vmmov 0   ;;  %s5887_s20 = smov [#allocation2]   ;;  %vm4815_vm4 = vcmask 9216  }
  0x16   :  { %5322 = vmatpush3.msra.mxu0 %v87_v9  ;;  %5332 = vmatprep.subr.mxu1 %v177_v10  ;;  %v6076_v33 = vld [vmem:[%s7196_s10] ss:$0 sm:$0xff]  ;;  %v6081_v34 = vld [vmem:[%s7196_s10 + $0x1] ss:$0 sm:$0xff]  ;;  %v6133_v56 = vld [vmem:[%s7196_s10 + $0x2] ss:$0 sm:$0xff] }
  0x17   :  { %5333 = vmatpush3.msra.mxu1 %v177_v10  ;;  %5337 = vmatprep.subr.mxu0 %v263_v11  ;;  %v6061_v27 = vsub.s32 1, %v6058_v26  ;;  %v6069_v29 = vsub.s32 0, %v6058_v26  ;;  %v6088_v37 = vsub.s32 2, %v6058_v26  ;;  %v6150_v60 = vld [vmem:[%s7197_s11] sm:$0xff]  ;;  %s4823_s23 = sshll.u32 %s5887_s20, 4  ;;  %s4824_s23 = int_to_ptr.vmem [resolvable:$true] %s4823_s23 }
  0x18   :  { %p5867_p1 = scmp.lt.s32.totalorder %s4824_s23, %s4824_s23 }
  0x19   :  { %v65_v12 = vld [vmem:[%s7218_s3] sm:$0xff]  ;;  %v66_v16 = vld [vmem:[%s7218_s3 + $0x8] sm:$0xff]  ;;  %v184_v30 = vrot.slane %v6066_v28, %v6061_v27  ;;  %v94_v35 = vrot.slane %v6066_v28, %v6069_v29  ;;  %v267_v44 = vrot.slane %v6066_v28, %v6088_v37 }
  0x1a   :  { %v79_v13 = vld [vmem:[%s7219_s28] sm:$0xff]  ;;  %v80_v18 = vld [vmem:[%s7219_s28 + $0x8] sm:$0xff] }
  0x88   :  { %v70_v14 = vpop.permute.xlu0 %69 }
  0x89   :  { %v77_v15 = vmul.f32 %v70_v14, %v65_v12 }
  0x8b   :  { %v6030_v17 = vadd.f32 %v79_v13, %v77_v15 }
  0x8d   :  { %5323 = vmatprep.mubr.msk.f32.mxu0 %vm95_vm0, %v6030_v17  ;;  %5334 = vmatprep.mubr.msk.f32.mxu1 %vm95_vm0, %v6030_v17 }
  0x8e   :  { %v75_v19 = vpop.permute.xlu0 %74 }
  0x8f   :  { %v78_v20 = vmul.f32 %v75_v19, %v66_v16 }
  0x91   :  { %v6039_v21 = vadd.f32 %v80_v18, %v78_v20 }
  0x93   :  { %5324 = vmatmul.mubr.msk.f32.vlgmr.msra.gmra.mxu0 %vm95_vm0, %v6039_v21  ;;  %5335 = vmatmul.mubr.msk.f32.vlgmr.msra.gmra.mxu1 %vm95_vm0, %v6039_v21 }
  0x94   :  { %5338 = vmatpush3.msra.mxu0 %v263_v11  ;;  %5345 = vmatprep.mubr.msk.f32.mxu0 %vm95_vm0, %v6030_v17 }
  0x95   :  { %5339 = vmatprep.subr.mxu0 %v262_v22 }
  0x96   :  { %5340 = vmatpush3.msra.mxu0 %v262_v22 }
  0x97   :  { %5341 = vmatprep.subr.mxu0 %v261_v23 }
  0x98   :  { %5342 = vmatpush3.msra.mxu0 %v261_v23 }
  0x99   :  { %5343 = vmatprep.subr.mxu0 %v260_v24 }
  0x9a   :  { %5344 = vmatpush3.msra.mxu0 %v260_v24 }
  0x9b   :  { %5346 = vmatmul.mubr.msk.f32.vlgmr.msra.gmra.mxu0 %vm95_vm0, %v6039_v21 }
 0x153   :  { %v5325_v31 = vpop.f32.mrf.mxu0  ;;  %v5336_v32 = vpop.f32.mrf.mxu1 }
 0x154   :  { %v6085_v36 = vadd.f32 %v5336_v32, %v184_v30  ;;  %v6124_v53 = vadd.f32 %v5325_v31, %v94_v35  ;;  %v6178_v32 = vld [vmem:[%s7196_s10 + $0x3] ss:$0 sm:$0xff] }
 0x155   :  { %v168_v38 = vpop.f32.mrf.mxu0  ;;  %v251_v39 = vpop.f32.mrf.mxu1 }
 0x156   :  { %v6090_v40 = vadd.f32 %v168_v38, %v94_v35  ;;  %v6092_v41 = vadd.f32 %v251_v39, %v184_v30  ;;  %v349_v42 = vmul.f32 %v6076_v33, %v6085_v36  ;;  %v468_v43 = vmul.f32 %v6081_v34, %v6085_v36 }
 0x157   :  { %v742_v57 = vmul.f32 %v6133_v56, %v6085_v36 }
 0x158   :  { %5348 = vmatprep.subr.msk.mxu1 %vm95_vm0, %v349_v42  ;;  %5352 = vmatprep.mubr.msk.f32.mxu1 %vm95_vm0, %v6090_v40  ;;  %v348_v45 = vmul.f32 %v6076_v33, %v6092_v41  ;;  %v467_v46 = vmul.f32 %v6081_v34, %v6092_v41  ;;  %v741_v31 = vmul.f32 %v6133_v56, %v6092_v41 }
 0x159   :  { %5355 = vmatprep.subr.msk.mxu0 %vm95_vm0, %v468_v43  ;;  %5359 = vmatprep.mubr.msk.f32.mxu0 %vm95_vm0, %v6090_v40 }
 0x15a   :  { %5349 = vmatpush3.xpose.msk.msra.mxu1 %vm95_vm0, %v349_v42  ;;  %5356 = vmatpush3.xpose.msk.msra.mxu0 %vm95_vm0, %v468_v43 }
 0x15b   :  { %v5347_v47 = vpop.f32.mrf.mxu0  ;;  %5350 = vmatprep.subr.msk.mxu1 %vm95_vm0, %v348_v45  ;;  %5357 = vmatprep.subr.msk.mxu0 %vm95_vm0, %v467_v46 }
 0x15c   :  { %v6114_v48 = vadd.f32 %v5347_v47, %v267_v44 }
 0x15d   :  { %v334_v49 = vpop.f32.mrf.mxu0 }
 0x15e   :  { %v6116_v50 = vadd.f32 %v334_v49, %v267_v44  ;;  %5351 = vmatpush3.xpose.msk.msra.mxu1 %vm95_vm0, %v348_v45  ;;  %5358 = vmatpush3.xpose.msk.msra.mxu0 %vm95_vm0, %v467_v46  ;;  %v573_v51 = vmul.f32 %v6081_v34, %v6114_v48  ;;  %v461_v52 = vmul.f32 %v6076_v33, %v6114_v48 }
 0x15f   :  { %v6143_v58 = vmul.f32 %v6133_v56, %v6114_v48  ;;  %v1042_v35 = vmul.f32 %v6178_v32, %v6114_v48 }
 0x160   :  { %5362 = vmatprep.subr.mxu0 %v573_v51  ;;  %5369 = vmatprep.subr.mxu1 %v461_v52  ;;  %v572_v54 = vmul.f32 %v6081_v34, %v6116_v50  ;;  %v460_v55 = vmul.f32 %v6076_v33, %v6116_v50  ;;  %v1041_v38 = vmul.f32 %v6178_v32, %v6116_v50 }
 0x161   :  { %5353 = vmatmul.mubr.msk.f32.vlgmr.msra.gmra.mxu1 %vm95_vm0, %v6124_v53  ;;  %5360 = vmatmul.mubr.msk.f32.vlgmr.msra.gmra.mxu0 %vm95_vm0, %v6124_v53 }
 0x162   :  { %5363 = vmatpush3.msra.mxu0 %v573_v51  ;;  %5370 = vmatpush3.msra.mxu1 %v461_v52 }
 0x163   :  { %5364 = vmatprep.subr.mxu0 %v572_v54  ;;  %5371 = vmatprep.subr.mxu1 %v460_v55 }
 0x164   :  { %5365 = vmatpush3.msra.mxu0 %v572_v54  ;;  %5372 = vmatpush3.msra.mxu1 %v460_v55 }
 0x165   :  { %5376 = vmatprep.subr.msk.mxu0 %vm95_vm0, %v742_v57  ;;  %5383 = vmatprep.subr.mxu1 %v6143_v58 }
 0x221   :  { %v5361_v59 = vpop.f32.mrf.mxu0  ;;  %v5354_v9 = vpop.f32.mrf.mxu1 }
 0x222   :  { %v547_v0 = vadd.f32 %v5361_v59, %v6155_v61  ;;  %v434_v16 = vadd.f32 %v5354_v9, %v6155_v61 }
 0x223   :  { %v541_v62 = vpop.f32.mrf.mxu0  ;;  %v428_v12 = vpop.f32.mrf.mxu1 }
 0x224   :  { %v542_v63 = vadd.f32 %v541_v62, %v6150_v60  ;;  %v553_v2 = vsel %vm437_vm1, %v547_v0, -inf  ;;  %v429_v14 = vadd.f32 %v428_v12, %v6150_v60  ;;  %v441_v19 = vsel %vm437_vm1, %v434_v16, -inf }
 0x226   :  { %v550_v1 = vsel %vm437_vm1, %v542_v63, -inf  ;;  %v438_v18 = vsel %vm437_vm1, %v429_v14, -inf }
 0x227   :  { %551 = vmax.xlane.f32.xlu1 %v550_v1 }
 0x22b   :  { %554 = vmax.xlane.f32.xlu1 %v553_v2 }
 0x2b0   :  { %v552_v3 = vpop.xlane.xlu1 %551 }
 0x2b1   :  { %v556_v4 = vsub.f32 %v542_v63, %v552_v3 }
 0x2b3   :  { %v558_v5 = vmul.f32 1.442695, %v556_v4 }
 0x2b4   :  { %v555_v6 = vpop.xlane.xlu1 %554 }
 0x2b5   :  { %5736 = vpow2.f32 %v558_v5  ;;  %v557_v7 = vsub.f32 %v547_v0, %v555_v6 }
 0x2b7   :  { %v560_v8 = vmul.f32 1.442695, %v557_v7 }
 0x2b9   :  { %5738 = vpow2.f32 %v560_v8 }
 0x2c2   :  { %v5737_v10 = vpop.eup %5736 }
 0x2c3   :  { %v562_v11 = vsel %vm437_vm1, %v5737_v10, 0.0 }
 0x2c4   :  { %563 = vadd.xlane.f32.xlu0 %v562_v11 }
 0x2c6   :  { %v5739_v13 = vpop.eup %5738 }
 0x2c7   :  { %v565_v15 = vsel %vm437_vm1, %v5739_v13, 0.0 }
 0x2c8   :  { %566 = vadd.xlane.f32.xlu1 %v565_v15 }
 0x2cc   :  { %439 = vmax.xlane.f32.xlu1 %v438_v18  ;;  %v846_v18 = vmul.f32 %v6133_v56, %v6116_v50  ;;  %v936_v50 = vmul.f32 %v6178_v32, %v6092_v41 }
 0x2d0   :  { %442 = vmax.xlane.f32.xlu1 %v441_v19  ;;  %v937_v19 = vmul.f32 %v6178_v32, %v6085_v36 }
 0x34d   :  { %v564_v20 = vpop.xlane.xlu0 %563 }
 0x34e   :  { %5740 = vrcp.f32 %v564_v20 }
 0x351   :  { %v567_v22 = vpop.xlane.xlu1 %566 }
 0x352   :  { %5742 = vrcp.f32 %v567_v22 }
 0x355   :  { %v440_v39 = vpop.xlane.xlu1 %439 }
 0x356   :  { %v444_v42 = vsub.f32 %v429_v14, %v440_v39 }
 0x358   :  { %v446_v44 = vmul.f32 1.442695, %v444_v42 }
 0x359   :  { %v443_v43 = vpop.xlane.xlu1 %442 }
 0x35a   :  { %v445_v45 = vsub.f32 %v434_v16, %v443_v43  ;;  %5744 = vpow2.f32 %v446_v44 }
 0x35b   :  { %v5741_v23 = vpop.eup %5740 }
 0x35c   :  { %v569_v24 = vmul.f32 %v5741_v23, %v5737_v10  ;;  %v448_v47 = vmul.f32 1.442695, %v445_v45 }
 0x35e   :  { %5366 = vmatprep.mubr.msk.f32.mxu0 %vm437_vm1, %v569_v24  ;;  %5746 = vpow2.f32 %v448_v47 }
 0x35f   :  { %v5743_v25 = vpop.eup %5742 }
 0x360   :  { %v571_v30 = vmul.f32 %v5743_v25, %v5739_v13 }
 0x362   :  { %5367 = vmatmul.mubr.msk.f32.vlgmr.msra.gmra.mxu0 %vm437_vm1, %v571_v30 }
 0x363   :  { %5377 = vmatpush3.xpose.msk.msra.mxu0 %vm95_vm0, %v742_v57  ;;  %5380 = vmatprep.mubr.msk.f32.mxu0 %vm95_vm0, %v6090_v40 }
 0x364   :  { %5378 = vmatprep.subr.msk.mxu0 %vm95_vm0, %v741_v31 }
 0x367   :  { %5379 = vmatpush3.xpose.msk.msra.mxu0 %vm95_vm0, %v741_v31  ;;  %v5745_v59 = vpop.eup %5744 }
 0x368   :  { %5397 = vmatprep.subr.mxu0 %v1042_v35  ;;  %v450_v62 = vsel %vm437_vm1, %v5745_v59, 0.0 }
 0x36a   :  { %5381 = vmatmul.mubr.msk.f32.vlgmr.msra.gmra.mxu0 %vm95_vm0, %v6124_v53 }
 0x36b   :  { %5398 = vmatpush3.msra.mxu0 %v1042_v35  ;;  %v5747_v63 = vpop.eup %5746 }
 0x36c   :  { %5399 = vmatprep.subr.mxu0 %v1041_v38  ;;  %v453_v0 = vsel %vm437_vm1, %v5747_v63, 0.0 }
 0x36d   :  { %5400 = vmatpush3.msra.mxu0 %v1041_v38 }
 0x422   :  { %v6187_v46 = vpop.f32.mrf.mxu0 }
 0x424   :  { %v6189_v48 = vpop.f32.mrf.mxu0 }
 0x42a   :  { %v5382_v49 = vpop.f32.mrf.mxu0 }
 0x42b   :  { %v821_v54 = vadd.f32 %v5382_v49, %v6155_v61 }
 0x42c   :  { %v815_v51 = vpop.f32.mrf.mxu0 }
 0x42d   :  { %v816_v52 = vadd.f32 %v815_v51, %v6150_v60  ;;  %v827_v57 = vsel %vm437_vm1, %v821_v54, -inf }
 0x42f   :  { %v824_v55 = vsel %vm437_vm1, %v816_v52, -inf }
 0x430   :  { %825 = vmax.xlane.f32.xlu1 %v824_v55 }
 0x434   :  { %828 = vmax.xlane.f32.xlu1 %v827_v57 }
 0x438   :  { %451 = vadd.xlane.f32.xlu1 %v450_v62  ;;  %v1129_v62 = vld [vmem:[%s7192_s6 + $0x18] sm:$0xff] }
 0x439   :  { %5404 = vmatprep.subr.mxu0 %v1129_v62 }
 0x43c   :  { %454 = vadd.xlane.f32.xlu1 %v453_v0 }
 0x4b9   :  { %v826_v1 = vpop.xlane.xlu1 %825 }
 0x4ba   :  { %v830_v2 = vsub.f32 %v816_v52, %v826_v1 }
 0x4bc   :  { %v832_v3 = vmul.f32 1.442695, %v830_v2 }
 0x4bd   :  { %v829_v4 = vpop.xlane.xlu1 %828 }
 0x4be   :  { %5748 = vpow2.f32 %v832_v3  ;;  %v831_v5 = vsub.f32 %v821_v54, %v829_v4 }
 0x4c0   :  { %v834_v6 = vmul.f32 1.442695, %v831_v5  ;;  %v1128_v5 = vld [vmem:[%s7192_s6 + $0x10] sm:$0xff] }
 0x4c1   :  { %v452_v7 = vpop.xlane.xlu1 %451 }
 0x4c2   :  { %5750 = vpow2.f32 %v834_v6  ;;  %v1127_v6 = vld [vmem:[%s7192_s6 + $0x8] sm:$0xff] }
 0x4c3   :  { %5752 = vrcp.f32 %v452_v7  ;;  %v1126_v7 = vld [vmem:[%s7192_s6] sm:$0xff] }
 0x4c5   :  { %v455_v8 = vpop.xlane.xlu1 %454 }
 0x4c6   :  { %5754 = vrcp.f32 %v455_v8 }
 0x4cb   :  { %v5749_v9 = vpop.eup %5748 }
 0x4cc   :  { %v836_v10 = vsel %vm437_vm1, %v5749_v9, 0.0 }
 0x4cd   :  { %837 = vadd.xlane.f32.xlu1 %v836_v10 }
 0x4cf   :  { %v5751_v11 = vpop.eup %5750 }
 0x4d0   :  { %v5753_v12 = vpop.eup %5752  ;;  %v839_v13 = vsel %vm437_vm1, %v5751_v11, 0.0 }
 0x4d1   :  { %840 = vadd.xlane.f32.xlu0 %v839_v13  ;;  %v457_v14 = vmul.f32 %v5753_v12, %v5745_v59 }
 0x4d3   :  { %v5755_v15 = vpop.eup %5754  ;;  %5373 = vmatprep.mubr.msk.f32.mxu1 %vm437_vm1, %v457_v14  ;;  %v6243_v14 = vsub.s32 3, %v6058_v26 }
 0x4d4   :  { %v459_v16 = vmul.f32 %v5755_v15, %v5747_v63 }
 0x4d5   :  { %v1133_v15 = vrot.slane %v6066_v28, %v6243_v14 }
 0x4d6   :  { %5374 = vmatmul.mubr.msk.f32.vlgmr.msra.gmra.mxu1 %vm437_vm1, %v459_v16 }
 0x4d7   :  { %5384 = vmatpush3.msra.mxu1 %v6143_v58 }
 0x4d8   :  { %5385 = vmatprep.subr.mxu1 %v846_v18 }
 0x4d9   :  { %5386 = vmatpush3.msra.mxu1 %v846_v18 }
 0x4da   :  { %5390 = vmatprep.subr.msk.mxu1 %vm95_vm0, %v937_v19 }
 0x556   :  { %v838_v20 = vpop.xlane.xlu1 %837 }
 0x557   :  { %5756 = vrcp.f32 %v838_v20 }
 0x55a   :  { %v841_v22 = vpop.xlane.xlu0 %840 }
 0x55b   :  { %5758 = vrcp.f32 %v841_v22 }
 0x564   :  { %v5757_v23 = vpop.eup %5756 }
 0x565   :  { %v843_v24 = vmul.f32 %v5757_v23, %v5749_v9 }
 0x567   :  { %5387 = vmatprep.mubr.msk.f32.mxu1 %vm437_vm1, %v843_v24 }
 0x568   :  { %v5759_v25 = vpop.eup %5758 }
 0x569   :  { %v845_v30 = vmul.f32 %v5759_v25, %v5751_v11 }
 0x56b   :  { %5388 = vmatmul.mubr.msk.f32.vlgmr.msra.gmra.mxu1 %vm437_vm1, %v845_v30 }
 0x56c   :  { %5391 = vmatpush3.xpose.msk.msra.mxu1 %vm95_vm0, %v937_v19  ;;  %5394 = vmatprep.mubr.msk.f32.mxu1 %vm95_vm0, %v6090_v40 }
 0x56d   :  { %5392 = vmatprep.subr.msk.mxu1 %vm95_vm0, %v936_v50 }
 0x570   :  { %5393 = vmatpush3.xpose.msk.msra.mxu1 %vm95_vm0, %v936_v50 }
 0x573   :  { %5395 = vmatmul.mubr.msk.f32.vlgmr.msra.gmra.mxu1 %vm95_vm0, %v6124_v53 }
 0x596   :  { %v5375_v36 = vpop.f32.mrf.mxu1 }
 0x597   :  { %v733_v31 = vadd.f32 %v5375_v36, %v6187_v46 }
 0x598   :  { %v727_v58 = vpop.f32.mrf.mxu1 }
 0x599   :  { %v728_v8 = vadd.f32 %v727_v58, %v6189_v48 }
 0x62b   :  { %v5389_v35 = vpop.f32.mrf.mxu1 }
 0x62c   :  { %v930_v38 = vadd.f32 %v5389_v35, %v733_v31 }
 0x62d   :  { %v920_v39 = vpop.f32.mrf.mxu1 }
 0x62e   :  { %v929_v10 = vadd.f32 %v920_v39, %v728_v8  ;;  %v1349_v8 = vld [vmem:[%s7194_s8 + $0x10] sm:$0xff] }
 0x633   :  { %v5396_v41 = vpop.f32.mrf.mxu1 }
 0x634   :  { %v1016_v42 = vadd.f32 %v5396_v41, %v6155_v61  ;;  %v1258_v41 = vld [vmem:[%s7193_s7 + $0x10] sm:$0xff] }
 0x635   :  { %v1010_v43 = vpop.f32.mrf.mxu1 }
 0x636   :  { %v1011_v40 = vadd.f32 %v1010_v43, %v6150_v60  ;;  %v1022_v44 = vsel %vm437_vm1, %v1016_v42, -inf  ;;  %v1256_v43 = vld [vmem:[%s7193_s7] sm:$0xff] }
 0x637   :  { %1023 = vmax.xlane.f32.xlu0 %v1022_v44  ;;  %v1353_v44 = vld [vmem:[%s7194_s8 + $0x30] sm:$0xff] }
 0x638   :  { %v1019_v45 = vsel %vm437_vm1, %v1011_v40, -inf }
 0x639   :  { %1020 = vmax.xlane.f32.xlu1 %v1019_v45  ;;  %v1352_v45 = vld [vmem:[%s7194_s8 + $0x28] sm:$0xff] }
 0x6c0   :  { %v1024_v53 = vpop.xlane.xlu0 %1023 }
 0x6c1   :  { %v1026_v47 = vsub.f32 %v1016_v42, %v1024_v53  ;;  %v1257_v42 = vld [vmem:[%s7193_s7 + $0x8] sm:$0xff]  ;;  %v1351_v53 = vld [vmem:[%s7194_s8 + $0x20] sm:$0xff] }
 0x6c2   :  { %v1021_v49 = vpop.xlane.xlu1 %1020 }
 0x6c3   :  { %v1029_v51 = vmul.f32 1.442695, %v1026_v47  ;;  %v1025_v46 = vsub.f32 %v1011_v40, %v1021_v49  ;;  %v1354_v40 = vld [vmem:[%s7194_s8 + $0x38] sm:$0xff] }
 0x6c5   :  { %5760 = vpow2.f32 %v1029_v51  ;;  %v1027_v52 = vmul.f32 1.442695, %v1025_v46 }
 0x6c7   :  { %5762 = vpow2.f32 %v1027_v52 }
 0x6d2   :  { %v5761_v54 = vpop.eup %5760 }
 0x6d3   :  { %v1034_v55 = vsel %vm437_vm1, %v5761_v54, 0.0 }
 0x6d4   :  { %v5763_v57 = vpop.eup %5762  ;;  %1035 = vadd.xlane.f32.xlu0 %v1034_v55  ;;  %v6278_v55 = vsub.s32 4, %v6058_v26 }
 0x6d5   :  { %v1031_v59 = vsel %vm437_vm1, %v5763_v57, 0.0 }
 0x6d6   :  { %1032 = vadd.xlane.f32.xlu1 %v1031_v59  ;;  %v1247_v59 = vrot.slane %v6066_v28, %v6278_v55 }
 0x75d   :  { %v1036_v63 = vpop.xlane.xlu0 %1035 }
 0x75e   :  { %5764 = vrcp.f32 %v1036_v63 }
 0x75f   :  { %v1033_v0 = vpop.xlane.xlu1 %1032 }
 0x760   :  { %5766 = vrcp.f32 %v1033_v0 }
 0x76b   :  { %v5765_v1 = vpop.eup %5764 }
 0x76c   :  { %v1040_v4 = vmul.f32 %v5765_v1, %v5761_v54 }
 0x76d   :  { %v5767_v2 = vpop.eup %5766 }
 0x76e   :  { %v1038_v3 = vmul.f32 %v5767_v2, %v5763_v57 }
 0x770   :  { %5401 = vmatprep.mubr.msk.f32.mxu0 %vm437_vm1, %v1038_v3 }
 0x771   :  { %5402 = vmatmul.mubr.msk.f32.vlgmr.msra.gmra.mxu0 %vm437_vm1, %v1040_v4 }
 0x772   :  { %5405 = vmatpush3.msra.mxu0 %v1129_v62  ;;  %v6283_v62 = vsub.s32 5, %v6058_v26 }
 0x773   :  { %5406 = vmatprep.subr.mxu0 %v1128_v5 }
 0x774   :  { %5407 = vmatpush3.msra.mxu0 %v1128_v5  ;;  %v1253_v3 = vrot.slane %v6066_v28, %v6283_v62 }
 0x775   :  { %5408 = vmatprep.subr.mxu0 %v1127_v6 }
 0x776   :  { %5409 = vmatpush3.msra.mxu0 %v1127_v6 }
 0x777   :  { %5410 = vmatprep.subr.mxu0 %v1126_v7 }
 0x778   :  { %5411 = vmatpush3.msra.mxu0 %v1126_v7  ;;  %v1350_v7 = vld [vmem:[%s7194_s8 + $0x18] sm:$0xff] }
 0x779   :  { %5426 = vmatprep.subr.mxu0 %v1354_v40 }
 0x831   :  { %v5403_v9 = vpop.f32.mrf.mxu0 }
 0x832   :  { %v1125_v13 = vadd.f32 %v5403_v9, %v930_v38  ;;  %v1348_v9 = vld [vmem:[%s7194_s8 + $0x8] sm:$0xff] }
 0x833   :  { %v1115_v11 = vpop.f32.mrf.mxu0 }
 0x834   :  { %v1124_v12 = vadd.f32 %v1115_v11, %v929_v10  ;;  %v1347_v10 = vld [vmem:[%s7194_s8] sm:$0xff]  ;;  %v6302_v11 = vsub.s32 6, %v6058_v26 }
 0x836   :  { %5412 = vmatprep.mubr.msk.f32.mxu0 %vm95_vm0, %v1124_v12  ;;  %v1263_v12 = vrot.slane %v6066_v28, %v6302_v11 }
 0x837   :  { %5413 = vmatmul.mubr.msk.f32.vlgmr.msra.gmra.mxu0 %vm95_vm0, %v1125_v13 }
 0x838   :  { %5427 = vmatpush3.msra.mxu0 %v1354_v40  ;;  %v4876_v40 = vld [vmem:[%s7217_s13 + $0x38] sm:$0xff] }
 0x839   :  { %5428 = vmatprep.subr.mxu0 %v1353_v44 }
 0x83a   :  { %5429 = vmatpush3.msra.mxu0 %v1353_v44  ;;  %v4888_v44 = vld [vmem:[%s7191_s5 + $0x38] sm:$0xff] }
 0x83b   :  { %5430 = vmatprep.subr.mxu0 %v1352_v45 }
 0x83c   :  { %5431 = vmatpush3.msra.mxu0 %v1352_v45  ;;  %v4875_v45 = vld [vmem:[%s7217_s13 + $0x30] sm:$0xff] }
 0x83d   :  { %5432 = vmatprep.subr.mxu0 %v1351_v53 }
 0x83e   :  { %5433 = vmatpush3.msra.mxu0 %v1351_v53  ;;  %v4887_v53 = vld [vmem:[%s7191_s5 + $0x30] sm:$0xff] }
 0x83f   :  { %5434 = vmatprep.subr.mxu0 %v1350_v7 }
 0x840   :  { %5435 = vmatpush3.msra.mxu0 %v1350_v7 }
 0x841   :  { %5436 = vmatprep.subr.mxu0 %v1349_v8 }
 0x842   :  { %5437 = vmatpush3.msra.mxu0 %v1349_v8 }
 0x843   :  { %5438 = vmatprep.subr.mxu0 %v1348_v9 }
 0x844   :  { %5439 = vmatpush3.msra.mxu0 %v1348_v9 }
 0x845   :  { %5440 = vmatprep.subr.mxu0 %v1347_v10 }
 0x846   :  { %5441 = vmatpush3.msra.mxu0 %v1347_v10 }
 0x847   :  { %5467 = vmatprep.subr.mxu0 %v4888_v44 }
 0x8f7   :  { %v5414_v16 = vpop.f32.mrf.mxu0 }
 0x8f8   :  { %v1212_v18 = vadd.f32 %v5414_v16, %v1133_v15 }
 0x8f9   :  { %v1206_v19 = vpop.f32.mrf.mxu0 }
 0x8fa   :  { %v1207_v20 = vadd.f32 %v1206_v19, %v1133_v15  ;;  %v1216_v48 = vadd.f32 %v1212_v18, %v6039_v21 }
 0x8fc   :  { %v1220_v22 = vsel %vm95_vm0, %v1216_v48, 0.0  ;;  %v1215_v23 = vadd.f32 %v1207_v20, %v6030_v17  ;;  %v1259_v17 = vld [vmem:[%s7193_s7 + $0x18] sm:$0xff] }
 0x8fd   :  { %1221 = vadd.xlane.f32.xlu0 %v1220_v22  ;;  %5415 = vmatprep.subr.mxu1 %v1259_v17 }
 0x8fe   :  { %v1217_v24 = vsel %vm95_vm0, %v1215_v23, 0.0  ;;  %5416 = vmatpush3.msra.mxu1 %v1259_v17 }
 0x8ff   :  { %1218 = vadd.xlane.f32.xlu1 %v1217_v24  ;;  %5417 = vmatprep.subr.mxu1 %v1258_v41 }
 0x900   :  { %5418 = vmatpush3.msra.mxu1 %v1258_v41 }
 0x901   :  { %5419 = vmatprep.subr.mxu1 %v1257_v42 }
 0x902   :  { %5420 = vmatpush3.msra.mxu1 %v1257_v42 }
 0x903   :  { %5421 = vmatprep.subr.mxu1 %v1256_v43 }
 0x904   :  { %5422 = vmatpush3.msra.mxu1 %v1256_v43 }
 0x905   :  { %5445 = vmatprep.subr.mxu1 %v4876_v40 }
 0x986   :  { %v1222_v25 = vpop.xlane.xlu0 %1221 }
 0x987   :  { %v1225_v30 = vmul.f32 0.03125, %v1222_v25 }
 0x988   :  { %v1219_v50 = vpop.xlane.xlu1 %1218 }
 0x989   :  { %v1227_v36 = vsub.f32 %v1216_v48, %v1225_v30  ;;  %v1224_v58 = vmul.f32 0.03125, %v1219_v50  ;;  %v6309_v48 = vsub.s32 7, %v6058_v26 }
 0x98b   :  { %v1226_v31 = vsub.f32 %v1215_v23, %v1224_v58  ;;  %v1229_v35 = vmul.f32 %v1227_v36, %v1227_v36  ;;  %v1358_v22 = vrot.slane %v6066_v28, %v6309_v48 }
 0x98d   :  { %v1233_v38 = vsel %vm95_vm0, %v1229_v35, 0.0  ;;  %v1228_v39 = vmul.f32 %v1226_v31, %v1226_v31 }
 0x98e   :  { %1234 = vadd.xlane.f32.xlu0 %v1233_v38 }
 0x98f   :  { %v1230_v21 = vsel %vm95_vm0, %v1228_v39, 0.0 }
 0x990   :  { %1231 = vadd.xlane.f32.xlu1 %v1230_v21 }
 0xa17   :  { %v1235_v47 = vpop.xlane.xlu0 %1234 }
 0xa18   :  { %v1237_v49 = vmul.f32 0.03125, %v1235_v47  ;;  %v4874_v47 = vld [vmem:[%s7217_s13 + $0x28] sm:$0xff] }
 0xa19   :  { %v1232_v51 = vpop.xlane.xlu1 %1231 }
 0xa1a   :  { %v1239_v46 = vadd.f32 1e-05, %v1237_v49  ;;  %v1236_v52 = vmul.f32 0.03125, %v1232_v51  ;;  %v4886_v49 = vld [vmem:[%s7191_s5 + $0x28] sm:$0xff]  ;;  %v4873_v51 = vld [vmem:[%s7217_s13 + $0x20] sm:$0xff] }
 0xa1c   :  { %5768 = vrsqrt.f32 %v1239_v46  ;;  %v1238_v54 = vadd.f32 1e-05, %v1236_v52  ;;  %v4885_v46 = vld [vmem:[%s7191_s5 + $0x20] sm:$0xff]  ;;  %v4882_v52 = vld [vmem:[%s7190_s4 + $0x38] sm:$0xff] }
 0xa1e   :  { %5770 = vrsqrt.f32 %v1238_v54 }
 0xa29   :  { %v5769_v57 = vpop.eup %5768 }
 0xa2a   :  { %v1243_v63 = vmul.f32 %v5769_v57, %v1227_v36 }
 0xa2b   :  { %v5771_v0 = vpop.eup %5770 }
 0xa2c   :  { %v1242_v1 = vmul.f32 %v5771_v0, %v1226_v31  ;;  %v1249_v2 = vmul.f32 %v1247_v59, %v1243_v63 }
 0xa2e   :  { %v1248_v4 = vmul.f32 %v1247_v59, %v1242_v1  ;;  %v1255_v6 = vadd.f32 %v1253_v3, %v1249_v2  ;;  %v86_v2 = vld [vmem:[%s7195_s9 + $0x8] sm:$0xff] }
 0xa2f   :  { %v1478_v9 = vrot.slane %v86_v2, %v6061_v27 }
 0xa30   :  { %v1254_v5 = vadd.f32 %v1253_v3, %v1248_v4  ;;  %v1472_v4 = vrot.slane %v86_v2, %v6069_v29 }
 0xa32   :  { %5423 = vmatprep.mubr.msk.f32.mxu1 %vm95_vm0, %v1254_v5 }
 0xa33   :  { %5424 = vmatmul.mubr.msk.f32.vlgmr.msra.gmra.mxu1 %vm95_vm0, %v1255_v6 }
 0xa34   :  { %5446 = vmatpush3.msra.mxu1 %v4876_v40 }
 0xa35   :  { %5447 = vmatprep.subr.mxu1 %v4875_v45 }
 0xa36   :  { %5448 = vmatpush3.msra.mxu1 %v4875_v45 }
 0xa37   :  { %5449 = vmatprep.subr.mxu1 %v4874_v47 }
 0xa38   :  { %5450 = vmatpush3.msra.mxu1 %v4874_v47 }
 0xa39   :  { %5451 = vmatprep.subr.mxu1 %v4873_v51 }
 0xa3a   :  { %5452 = vmatpush3.msra.mxu1 %v4873_v51 }
 0xa3b   :  { %5456 = vmatprep.subr.mxu1 %v4882_v52 }
 0xaf3   :  { %v5425_v13 = vpop.f32.mrf.mxu1 }
 0xaf4   :  { %v1342_v15 = vadd.f32 %v5425_v13, %v1263_v12 }
 0xaf5   :  { %v1336_v16 = vpop.f32.mrf.mxu1 }
 0xaf6   :  { %v1337_v18 = vadd.f32 %v1336_v16, %v1263_v12  ;;  %v1346_v20 = vmax.f32 %v1342_v15, 0.0  ;;  %v4881_v15 = vld [vmem:[%s7190_s4 + $0x30] sm:$0xff]  ;;  %v4880_v16 = vld [vmem:[%s7190_s4 + $0x28] sm:$0xff] }
 0xaf8   :  { %v1345_v19 = vmax.f32 %v1337_v18, 0.0  ;;  %v4879_v18 = vld [vmem:[%s7190_s4 + $0x20] sm:$0xff] }
 0xafa   :  { %5442 = vmatprep.mubr.msk.f32.mxu0 %vm1359_vm2, %v1345_v19  ;;  %v6377_v19 = vld [vmem:[%s7195_s9 + $0x10] sm:$0xff] }
 0xafb   :  { %5443 = vmatmul.mubr.msk.f32.vlgmr.msra.gmra.mxu0 %vm1359_vm2, %v1346_v20 }
 0xafc   :  { %5468 = vmatpush3.msra.mxu0 %v4888_v44 }
 0xafd   :  { %5469 = vmatprep.subr.mxu0 %v4887_v53 }
 0xafe   :  { %5470 = vmatpush3.msra.mxu0 %v4887_v53 }
 0xaff   :  { %5471 = vmatprep.subr.mxu0 %v4886_v49 }
 0xb00   :  { %5472 = vmatpush3.msra.mxu0 %v4886_v49 }
 0xb01   :  { %5473 = vmatprep.subr.mxu0 %v4885_v46 }
 0xb02   :  { %5474 = vmatpush3.msra.mxu0 %v4885_v46 }
 0xbbb   :  { %v5444_v23 = vpop.f32.mrf.mxu0 }
 0xbbc   :  { %v1438_v24 = vadd.f32 %v5444_v23, %v1358_v22 }
 0xbbd   :  { %v1432_v25 = vpop.f32.mrf.mxu0 }
 0xbbe   :  { %v1433_v30 = vadd.f32 %v1432_v25, %v1358_v22  ;;  %v1442_v50 = vadd.f32 %v1438_v24, %v1255_v6  ;;  %v1492_v22 = vrot.slane %v6377_v19, %v6069_v29  ;;  %v1582_v25 = vrot.slane %v6377_v19, %v6061_v27 }
 0xbc0   :  { %v1446_v36 = vsel %vm95_vm0, %v1442_v50, 0.0  ;;  %v1441_v58 = vadd.f32 %v1433_v30, %v1254_v5 }
 0xbc1   :  { %1447 = vadd.xlane.f32.xlu0 %v1446_v36 }
 0xbc2   :  { %v1443_v31 = vsel %vm95_vm0, %v1441_v58, 0.0 }
 0xbc3   :  { %1444 = vadd.xlane.f32.xlu1 %v1443_v31 }
 0xc4a   :  { %v1448_v35 = vpop.xlane.xlu0 %1447 }
 0xc4b   :  { %v1450_v38 = vmul.f32 0.03125, %v1448_v35 }
 0xc4c   :  { %v1445_v39 = vpop.xlane.xlu1 %1444 }
 0xc4d   :  { %v1452_v26 = vsub.f32 %v1442_v50, %v1450_v38  ;;  %v1449_v21 = vmul.f32 0.03125, %v1445_v39  ;;  %v1666_v50 = vrot.slane %v6377_v19, %v6088_v37 }
 0xc4f   :  { %v1451_v17 = vsub.f32 %v1441_v58, %v1449_v21  ;;  %v1454_v41 = vmul.f32 %v1452_v26, %v1452_v26 }
 0xc51   :  { %v1458_v28 = vsel %vm95_vm0, %v1454_v41, 0.0  ;;  %v1453_v42 = vmul.f32 %v1451_v17, %v1451_v17 }
 0xc52   :  { %1459 = vadd.xlane.f32.xlu0 %v1458_v28 }
 0xc53   :  { %v1455_v43 = vsel %vm95_vm0, %v1453_v42, 0.0 }
 0xc54   :  { %1456 = vadd.xlane.f32.xlu1 %v1455_v43 }
 0xcdb   :  { %v1460_v54 = vpop.xlane.xlu0 %1459 }
 0xcdc   :  { %v1462_v57 = vmul.f32 0.03125, %v1460_v54 }
 0xcdd   :  { %v1457_v59 = vpop.xlane.xlu1 %1456 }
 0xcde   :  { %v1464_v63 = vadd.f32 1e-05, %v1462_v57  ;;  %v1461_v0 = vmul.f32 0.03125, %v1457_v59 }
 0xce0   :  { %5772 = vrsqrt.f32 %v1464_v63  ;;  %v1463_v1 = vadd.f32 1e-05, %v1461_v0 }
 0xce2   :  { %5774 = vrsqrt.f32 %v1463_v1 }
 0xced   :  { %v5773_v3 = vpop.eup %5772 }
 0xcee   :  { %v1468_v5 = vmul.f32 %v5773_v3, %v1452_v26 }
 0xcef   :  { %v5775_v6 = vpop.eup %5774 }
 0xcf0   :  { %v1467_v7 = vmul.f32 %v5775_v6, %v1451_v17  ;;  %v1474_v8 = vmul.f32 %v1472_v4, %v1468_v5 }
 0xcf2   :  { %v1473_v10 = vmul.f32 %v1472_v4, %v1467_v7  ;;  %v6351_v13 = vadd.f32 %v1478_v9, %v1474_v8 }
 0xcf4   :  { %v6349_v12 = vadd.f32 %v1478_v9, %v1473_v10 }
 0xcf6   :  { %5453 = vmatprep.mubr.msk.f32.mxu1 %vm95_vm0, %v6349_v12  ;;  %5475 = vmatprep.mubr.msk.f32.mxu0 %vm95_vm0, %v6349_v12 }
 0xcf7   :  { %5454 = vmatmul.mubr.msk.f32.vlgmr.msra.gmra.mxu1 %vm95_vm0, %v6351_v13  ;;  %5476 = vmatmul.mubr.msk.f32.vlgmr.msra.gmra.mxu0 %vm95_vm0, %v6351_v13 }
 0xcf8   :  { %5457 = vmatpush3.msra.mxu1 %v4882_v52  ;;  %5464 = vmatprep.mubr.msk.f32.mxu1 %vm95_vm0, %v6349_v12 }
 0xcf9   :  { %5458 = vmatprep.subr.mxu1 %v4881_v15 }
 0xcfa   :  { %5459 = vmatpush3.msra.mxu1 %v4881_v15 }
 0xcfb   :  { %5460 = vmatprep.subr.mxu1 %v4880_v16 }
 0xcfc   :  { %5461 = vmatpush3.msra.mxu1 %v4880_v16 }
 0xcfd   :  { %5462 = vmatprep.subr.mxu1 %v4879_v18 }
 0xcfe   :  { %5463 = vmatpush3.msra.mxu1 %v4879_v18 }
 0xcff   :  { %5465 = vmatmul.mubr.msk.f32.vlgmr.msra.gmra.mxu1 %vm95_vm0, %v6351_v13 }
 0xdb7   :  { %v5455_v20 = vpop.f32.mrf.mxu1  ;;  %v5477_v58 = vpop.f32.mrf.mxu0 }
 0xdb8   :  { %v6399_v26 = vadd.f32 %v5477_v58, %v1666_v50  ;;  %v6419_v40 = vadd.f32 %v5455_v20, %v1492_v22 }
 0xdb9   :  { %v1565_v23 = vpop.f32.mrf.mxu1  ;;  %v1733_v41 = vpop.f32.mrf.mxu0 }
 0xdba   :  { %v6381_v24 = vadd.f32 %v1565_v23, %v1492_v22  ;;  %v6411_v28 = vadd.f32 %v1733_v41, %v1666_v50  ;;  %v1961_v42 = vmul.f32 %v6081_v34, %v6399_v26  ;;  %v6435_v53 = vmul.f32 %v6076_v33, %v6399_v26 }
 0xdbc   :  { %5482 = vmatprep.mubr.msk.f32.mxu1 %vm95_vm0, %v6381_v24  ;;  %5489 = vmatprep.mubr.msk.f32.mxu0 %vm95_vm0, %v6381_v24  ;;  %v1960_v44 = vmul.f32 %v6081_v34, %v6411_v28 }
 0xdbf   :  { %v5466_v30 = vpop.f32.mrf.mxu1 }
 0xdc0   :  { %v6391_v36 = vadd.f32 %v5466_v30, %v1582_v25 }
 0xdc1   :  { %v1649_v31 = vpop.f32.mrf.mxu1 }
 0xdc2   :  { %v6393_v35 = vadd.f32 %v1649_v31, %v1582_v25  ;;  %v1743_v38 = vmul.f32 %v6076_v33, %v6391_v36  ;;  %v1856_v39 = vmul.f32 %v6081_v34, %v6391_v36  ;;  %v2125_v43 = vmul.f32 %v6133_v56, %v6391_v36 }
 0xdc4   :  { %5478 = vmatprep.subr.msk.mxu1 %vm95_vm0, %v1743_v38  ;;  %5485 = vmatprep.subr.msk.mxu0 %vm95_vm0, %v1856_v39  ;;  %v1742_v21 = vmul.f32 %v6076_v33, %v6393_v35  ;;  %v1855_v17 = vmul.f32 %v6081_v34, %v6393_v35  ;;  %v2124_v45 = vmul.f32 %v6133_v56, %v6393_v35 }
 0xdc5   :  { %5479 = vmatpush3.xpose.msk.msra.mxu1 %vm95_vm0, %v1743_v38  ;;  %5486 = vmatpush3.xpose.msk.msra.mxu0 %vm95_vm0, %v1856_v39  ;;  %v2420_v34 = vmul.f32 %v6178_v32, %v6399_v26  ;;  %v2419_v56 = vmul.f32 %v6178_v32, %v6411_v28 }
 0xdc6   :  { %5480 = vmatprep.subr.msk.mxu1 %vm95_vm0, %v1742_v21  ;;  %5487 = vmatprep.subr.msk.mxu0 %vm95_vm0, %v1855_v17 }
 0xdc9   :  { %5481 = vmatpush3.xpose.msk.msra.mxu1 %vm95_vm0, %v1742_v21  ;;  %5488 = vmatpush3.xpose.msk.msra.mxu0 %vm95_vm0, %v1855_v17 }
 0xdca   :  { %5492 = vmatprep.subr.mxu1 %v1961_v42  ;;  %5506 = vmatprep.subr.msk.mxu0 %vm95_vm0, %v2125_v43 }
 0xdcc   :  { %5483 = vmatmul.mubr.msk.f32.vlgmr.msra.gmra.mxu1 %vm95_vm0, %v6419_v40  ;;  %5490 = vmatmul.mubr.msk.f32.vlgmr.msra.gmra.mxu0 %vm95_vm0, %v6419_v40 }
 0xdcd   :  { %5493 = vmatpush3.msra.mxu1 %v1961_v42  ;;  %5507 = vmatpush3.xpose.msk.msra.mxu0 %vm95_vm0, %v2125_v43 }
 0xdce   :  { %5510 = vmatprep.mubr.msk.f32.mxu0 %vm95_vm0, %v6381_v24  ;;  %5494 = vmatprep.subr.mxu1 %v1960_v44 }
 0xdcf   :  { %5508 = vmatprep.subr.msk.mxu0 %vm95_vm0, %v2124_v45  ;;  %5495 = vmatpush3.msra.mxu1 %v1960_v44 }
 0xdd0   :  { %5499 = vmatprep.subr.mxu1 %v6435_v53 }
 0xdd1   :  { %5509 = vmatpush3.xpose.msk.msra.mxu0 %vm95_vm0, %v2124_v45 }
 0xdd2   :  { %5527 = vmatprep.subr.mxu0 %v2420_v34 }
 0xdd4   :  { %5511 = vmatmul.mubr.msk.f32.vlgmr.msra.gmra.mxu0 %vm95_vm0, %v6419_v40 }
 0xdd5   :  { %5528 = vmatpush3.msra.mxu0 %v2420_v34 }
 0xdd6   :  { %5529 = vmatprep.subr.mxu0 %v2419_v56 }
 0xdd7   :  { %5530 = vmatpush3.msra.mxu0 %v2419_v56 }
 0xe8c   :  { %v5484_v33 = vpop.f32.mrf.mxu1  ;;  %v5491_v47 = vpop.f32.mrf.mxu0 }
 0xe8d   :  { %v1935_v49 = vadd.f32 %v5491_v47, %v6155_v61  ;;  %v1828_v52 = vadd.f32 %v5484_v33, %v6155_v61 }
 0xe8e   :  { %v1822_v51 = vpop.f32.mrf.mxu1  ;;  %v1929_v46 = vpop.f32.mrf.mxu0 }
 0xe8f   :  { %v1930_v54 = vadd.f32 %v1929_v46, %v6150_v60  ;;  %v1941_v57 = vsel %vm437_vm1, %v1935_v49, -inf  ;;  %v1823_v59 = vadd.f32 %v1822_v51, %v6150_v60  ;;  %v1834_v0 = vsel %vm437_vm1, %v1828_v52, -inf }
 0xe90   :  { %1942 = vmax.xlane.f32.xlu0 %v1941_v57 }
 0xe91   :  { %v1938_v63 = vsel %vm437_vm1, %v1930_v54, -inf  ;;  %v1831_v3 = vsel %vm437_vm1, %v1823_v59, -inf }
 0xe92   :  { %1939 = vmax.xlane.f32.xlu1 %v1938_v63 }
 0xe94   :  { %v5512_v1 = vpop.f32.mrf.mxu0  ;;  %1835 = vmax.xlane.f32.xlu0 %v1834_v0 }
 0xe95   :  { %v2204_v2 = vadd.f32 %v5512_v1, %v6155_v61 }
 0xe96   :  { %v2198_v4 = vpop.f32.mrf.mxu0  ;;  %1832 = vmax.xlane.f32.xlu1 %v1831_v3 }
 0xe97   :  { %v2199_v5 = vadd.f32 %v2198_v4, %v6150_v60  ;;  %v2210_v6 = vsel %vm437_vm1, %v2204_v2, -inf }
 0xe98   :  { %2211 = vmax.xlane.f32.xlu0 %v2210_v6 }
 0xe99   :  { %v2207_v7 = vsel %vm437_vm1, %v2199_v5, -inf }
 0xe9a   :  { %2208 = vmax.xlane.f32.xlu1 %v2207_v7 }
 0xf19   :  { %v1943_v8 = vpop.xlane.xlu0 %1942 }
 0xf1a   :  { %v1945_v9 = vsub.f32 %v1935_v49, %v1943_v8  ;;  %v6477_v8 = vld [vmem:[%s7196_s10 + $0x2] ss:$0 sm:$0xff] }
 0xf1b   :  { %v1940_v10 = vpop.xlane.xlu1 %1939 }
 0xf1c   :  { %v1948_v15 = vmul.f32 1.442695, %v1945_v9  ;;  %v1944_v16 = vsub.f32 %v1930_v54, %v1940_v10  ;;  %v2230_v9 = vmul.f32 %v6477_v8, %v6399_v26  ;;  %v2314_v26 = vmul.f32 %v6178_v32, %v6393_v35 }
 0xf1d   :  { %v1836_v18 = vpop.xlane.xlu0 %1835 }
 0xf1e   :  { %5776 = vpow2.f32 %v1948_v15  ;;  %v1946_v61 = vmul.f32 1.442695, %v1944_v16  ;;  %v1838_v20 = vsub.f32 %v1828_v52, %v1836_v18 }
 0xf1f   :  { %v1833_v22 = vpop.xlane.xlu1 %1832 }
 0xf20   :  { %5778 = vpow2.f32 %v1946_v61  ;;  %v1841_v23 = vmul.f32 1.442695, %v1838_v20  ;;  %v1837_v25 = vsub.f32 %v1823_v59, %v1833_v22  ;;  %v2315_v61 = vmul.f32 %v6178_v32, %v6391_v36 }
 0xf21   :  { %v2212_v60 = vpop.xlane.xlu0 %2211 }
 0xf22   :  { %5780 = vpow2.f32 %v1841_v23  ;;  %v1839_v30 = vmul.f32 1.442695, %v1837_v25  ;;  %v2214_v50 = vsub.f32 %v2204_v2, %v2212_v60 }
 0xf23   :  { %v2209_v58 = vpop.xlane.xlu1 %2208 }
 0xf24   :  { %5782 = vpow2.f32 %v1839_v30  ;;  %v2217_v31 = vmul.f32 1.442695, %v2214_v50  ;;  %v2213_v38 = vsub.f32 %v2199_v5, %v2209_v58  ;;  %v6469_v5 = vld [vmem:[%s7196_s10] ss:$0 sm:$0xff] }
 0xf25   :  { %v1853_v6 = vmul.f32 %v6469_v5, %v6411_v28 }
 0xf26   :  { %5784 = vpow2.f32 %v2217_v31  ;;  %v2215_v39 = vmul.f32 1.442695, %v2213_v38 }
 0xf28   :  { %5786 = vpow2.f32 %v2215_v39 }
 0xf2b   :  { %v5777_v21 = vpop.eup %5776 }
 0xf2c   :  { %v1953_v17 = vsel %vm437_vm1, %v5777_v21, 0.0 }
 0xf2d   :  { %v5779_v41 = vpop.eup %5778  ;;  %1954 = vadd.xlane.f32.xlu0 %v1953_v17 }
 0xf2e   :  { %v1950_v42 = vsel %vm437_vm1, %v5779_v41, 0.0 }
 0xf2f   :  { %v5781_v43 = vpop.eup %5780  ;;  %1951 = vadd.xlane.f32.xlu1 %v1950_v42 }
 0xf30   :  { %v1846_v44 = vsel %vm437_vm1, %v5781_v43, 0.0 }
 0xf31   :  { %v5783_v45 = vpop.eup %5782  ;;  %1847 = vadd.xlane.f32.xlu0 %v1846_v44 }
 0xf32   :  { %v1843_v34 = vsel %vm437_vm1, %v5783_v45, 0.0 }
 0xf33   :  { %v5785_v56 = vpop.eup %5784  ;;  %1844 = vadd.xlane.f32.xlu1 %v1843_v34 }
 0xf34   :  { %v2222_v33 = vsel %vm437_vm1, %v5785_v56, 0.0 }
 0xf35   :  { %v5787_v47 = vpop.eup %5786  ;;  %2223 = vadd.xlane.f32.xlu0 %v2222_v33 }
 0xf36   :  { %v2219_v49 = vsel %vm437_vm1, %v5787_v47, 0.0 }
 0xf37   :  { %2220 = vadd.xlane.f32.xlu1 %v2219_v49 }
 0xfb6   :  { %v1955_v51 = vpop.xlane.xlu0 %1954 }
 0xfb7   :  { %5788 = vrcp.f32 %v1955_v51  ;;  %v4918_v51 = vld [vmem:[%s7192_s6 + $0x38] sm:$0xff] }
 0xfb8   :  { %v1952_v46 = vpop.xlane.xlu1 %1951  ;;  %5534 = vmatprep.subr.mxu0 %v4918_v51 }
 0xfb9   :  { %5790 = vrcp.f32 %v1952_v46 }
 0xfba   :  { %v1848_v52 = vpop.xlane.xlu0 %1847 }
 0xfbb   :  { %5792 = vrcp.f32 %v1848_v52 }
 0xfbc   :  { %v1845_v54 = vpop.xlane.xlu1 %1844 }
 0xfbd   :  { %5794 = vrcp.f32 %v1845_v54 }
 0xfbe   :  { %v2224_v57 = vpop.xlane.xlu0 %2223 }
 0xfbf   :  { %5796 = vrcp.f32 %v2224_v57 }
 0xfc0   :  { %v2221_v59 = vpop.xlane.xlu1 %2220 }
 0xfc1   :  { %5798 = vrcp.f32 %v2221_v59 }
 0xfc4   :  { %v5789_v63 = vpop.eup %5788 }
 0xfc5   :  { %v1959_v2 = vmul.f32 %v5789_v63, %v5777_v21 }
 0xfc6   :  { %v5791_v0 = vpop.eup %5790 }
 0xfc7   :  { %v1957_v1 = vmul.f32 %v5791_v0, %v5779_v41  ;;  %v4917_v0 = vld [vmem:[%s7192_s6 + $0x30] sm:$0xff] }
 0xfc8   :  { %v5793_v3 = vpop.eup %5792 }
 0xfc9   :  { %5496 = vmatprep.mubr.msk.f32.mxu1 %vm437_vm1, %v1957_v1  ;;  %v1852_v10 = vmul.f32 %v5793_v3, %v5781_v43  ;;  %v4916_v1 = vld [vmem:[%s7192_s6 + $0x28] sm:$0xff] }
 0xfca   :  { %v5795_v4 = vpop.eup %5794  ;;  %5497 = vmatmul.mubr.msk.f32.vlgmr.msra.gmra.mxu1 %vm437_vm1, %v1959_v2  ;;  %v4915_v2 = vld [vmem:[%s7192_s6 + $0x20] sm:$0xff] }
 0xfcb   :  { %5500 = vmatpush3.msra.mxu1 %v6435_v53  ;;  %v1850_v7 = vmul.f32 %v5795_v4, %v5783_v45  ;;  %v2229_v53 = vmul.f32 %v6477_v8, %v6411_v28 }
 0xfcc   :  { %5501 = vmatprep.subr.mxu1 %v1853_v6  ;;  %v5797_v15 = vpop.eup %5796 }
 0xfcd   :  { %5502 = vmatpush3.msra.mxu1 %v1853_v6  ;;  %5503 = vmatprep.mubr.msk.f32.mxu1 %vm437_vm1, %v1850_v7  ;;  %v2228_v20 = vmul.f32 %v5797_v15, %v5785_v56 }
 0xfce   :  { %v5799_v16 = vpop.eup %5798  ;;  %5513 = vmatprep.subr.mxu1 %v2230_v9  ;;  %5504 = vmatmul.mubr.msk.f32.vlgmr.msra.gmra.mxu1 %vm437_vm1, %v1852_v10 }
 0xfcf   :  { %5514 = vmatpush3.msra.mxu1 %v2230_v9  ;;  %v2226_v18 = vmul.f32 %v5799_v16, %v5787_v47  ;;  %v2512_v9 = vrot.slane %v6377_v19, %v6243_v14 }
 0xfd0   :  { %5515 = vmatprep.subr.mxu1 %v2229_v53 }
 0xfd1   :  { %5516 = vmatpush3.msra.mxu1 %v2229_v53  ;;  %5517 = vmatprep.mubr.msk.f32.mxu1 %vm437_vm1, %v2226_v18 }
 0xfd2   :  { %5520 = vmatprep.subr.msk.mxu1 %vm95_vm0, %v2315_v61  ;;  %5518 = vmatmul.mubr.msk.f32.vlgmr.msra.gmra.mxu1 %vm437_vm1, %v2228_v20 }
 0xfd3   :  { %5521 = vmatpush3.xpose.msk.msra.mxu1 %vm95_vm0, %v2315_v61  ;;  %5524 = vmatprep.mubr.msk.f32.mxu1 %vm95_vm0, %v6381_v24  ;;  %v6502_v24 = vld [vmem:[%s7197_s11 + $0x8] sm:$0xff] }
 0xfd4   :  { %5522 = vmatprep.subr.msk.mxu1 %vm95_vm0, %v2314_v26 }
 0xfd7   :  { %5523 = vmatpush3.xpose.msk.msra.mxu1 %vm95_vm0, %v2314_v26 }
 0xfda   :  { %5525 = vmatmul.mubr.msk.f32.vlgmr.msra.gmra.mxu1 %vm95_vm0, %v6419_v40  ;;  %v6508_v40 = vld [vmem:[%s7197_s11] sm:$0xff] }
0x108a   :  { %v5498_v36 = vpop.f32.mrf.mxu1 }
0x108c   :  { %v2034_v28 = vpop.f32.mrf.mxu1 }
0x108e   :  { %v5505_v22 = vpop.f32.mrf.mxu1 }
0x108f   :  { %v2121_v23 = vadd.f32 %v5505_v22, %v5498_v36 }
0x1090   :  { %v2115_v25 = vpop.f32.mrf.mxu1 }
0x1091   :  { %v2116_v60 = vadd.f32 %v2115_v25, %v2034_v28 }
0x1092   :  { %v5519_v30 = vpop.f32.mrf.mxu1 }
0x1093   :  { %v2313_v32 = vadd.f32 %v5519_v30, %v2121_v23 }
0x1094   :  { %v2303_v35 = vpop.f32.mrf.mxu1 }
0x1095   :  { %v2312_v50 = vadd.f32 %v2303_v35, %v2116_v60 }
0x109a   :  { %v5526_v58 = vpop.f32.mrf.mxu1 }
0x109b   :  { %v2394_v31 = vadd.f32 %v6502_v24, %v5526_v58  ;;  %v4922_v58 = vld [vmem:[%s7193_s7 + $0x28] sm:$0xff] }
0x109c   :  { %v2388_v38 = vpop.f32.mrf.mxu1 }
0x109d   :  { %v2389_v39 = vadd.f32 %v6508_v40, %v2388_v38  ;;  %v2400_v21 = vsel %vm437_vm1, %v2394_v31, -inf  ;;  %v4934_v38 = vld [vmem:[%s7194_s8 + $0x78] sm:$0xff] }
0x109e   :  { %2401 = vmax.xlane.f32.xlu0 %v2400_v21  ;;  %v4932_v21 = vld [vmem:[%s7194_s8 + $0x68] sm:$0xff] }
0x109f   :  { %v2397_v17 = vsel %vm437_vm1, %v2389_v39, -inf }
0x10a0   :  { %2398 = vmax.xlane.f32.xlu1 %v2397_v17  ;;  %v4931_v17 = vld [vmem:[%s7194_s8 + $0x60] sm:$0xff] }
0x1127   :  { %v2402_v41 = vpop.xlane.xlu0 %2401 }
0x1128   :  { %v2404_v42 = vsub.f32 %v2394_v31, %v2402_v41  ;;  %v4921_v31 = vld [vmem:[%s7193_s7 + $0x20] sm:$0xff] }
0x1129   :  { %v2399_v43 = vpop.xlane.xlu1 %2398 }
0x112a   :  { %v2407_v44 = vmul.f32 1.442695, %v2404_v42  ;;  %v2403_v45 = vsub.f32 %v2389_v39, %v2399_v43  ;;  %v4933_v39 = vld [vmem:[%s7194_s8 + $0x70] sm:$0xff] }
0x112c   :  { %5800 = vpow2.f32 %v2407_v44  ;;  %v2405_v34 = vmul.f32 1.442695, %v2403_v45 }
0x112e   :  { %5802 = vpow2.f32 %v2405_v34 }
0x1139   :  { %v5801_v56 = vpop.eup %5800 }
0x113a   :  { %v2412_v33 = vsel %vm437_vm1, %v5801_v56, 0.0 }
0x113b   :  { %v5803_v47 = vpop.eup %5802  ;;  %2413 = vadd.xlane.f32.xlu0 %v2412_v33  ;;  %v2625_v33 = vrot.slane %v6377_v19, %v6278_v55 }
0x113c   :  { %v2409_v49 = vsel %vm437_vm1, %v5803_v47, 0.0 }
0x113d   :  { %2410 = vadd.xlane.f32.xlu1 %v2409_v49 }
0x11c4   :  { %v2414_v46 = vpop.xlane.xlu0 %2413 }
0x11c5   :  { %5804 = vrcp.f32 %v2414_v46 }
0x11c6   :  { %v2411_v52 = vpop.xlane.xlu1 %2410 }
0x11c7   :  { %5806 = vrcp.f32 %v2411_v52  ;;  %v2631_v52 = vrot.slane %v6377_v19, %v6283_v62 }
0x11d2   :  { %v5805_v54 = vpop.eup %5804 }
0x11d3   :  { %v2418_v63 = vmul.f32 %v5805_v54, %v5801_v56 }
0x11d4   :  { %v5807_v57 = vpop.eup %5806 }
0x11d5   :  { %v2416_v59 = vmul.f32 %v5807_v57, %v5803_v47 }
0x11d7   :  { %5531 = vmatprep.mubr.msk.f32.mxu0 %vm437_vm1, %v2416_v59 }
0x11d8   :  { %5532 = vmatmul.mubr.msk.f32.vlgmr.msra.gmra.mxu0 %vm437_vm1, %v2418_v63  ;;  %v4930_v63 = vld [vmem:[%s7194_s8 + $0x58] sm:$0xff] }
0x11d9   :  { %5535 = vmatpush3.msra.mxu0 %v4918_v51 }
0x11da   :  { %5536 = vmatprep.subr.mxu0 %v4917_v0 }
0x11db   :  { %5537 = vmatpush3.msra.mxu0 %v4917_v0  ;;  %v4929_v0 = vld [vmem:[%s7194_s8 + $0x50] sm:$0xff] }
0x11dc   :  { %5538 = vmatprep.subr.mxu0 %v4916_v1 }
0x11dd   :  { %5539 = vmatpush3.msra.mxu0 %v4916_v1  ;;  %v4928_v1 = vld [vmem:[%s7194_s8 + $0x48] sm:$0xff] }
0x11de   :  { %5540 = vmatprep.subr.mxu0 %v4915_v2 }
0x11df   :  { %5541 = vmatpush3.msra.mxu0 %v4915_v2  ;;  %v4927_v2 = vld [vmem:[%s7194_s8 + $0x40] sm:$0xff] }
0x11e0   :  { %5556 = vmatprep.subr.mxu0 %v4934_v38 }
0x1298   :  { %v5533_v3 = vpop.f32.mrf.mxu0 }
0x1299   :  { %v2503_v7 = vadd.f32 %v5533_v3, %v2313_v32  ;;  %v2642_v3 = vrot.slane %v6377_v19, %v6302_v11 }
0x129a   :  { %v2493_v4 = vpop.f32.mrf.mxu0 }
0x129b   :  { %v2502_v6 = vadd.f32 %v2493_v4, %v2312_v50  ;;  %v4923_v50 = vld [vmem:[%s7193_s7 + $0x30] sm:$0xff] }
0x129d   :  { %5542 = vmatprep.mubr.msk.f32.mxu0 %vm95_vm0, %v2502_v6 }
0x129e   :  { %5543 = vmatmul.mubr.msk.f32.vlgmr.msra.gmra.mxu0 %vm95_vm0, %v2503_v7 }
0x129f   :  { %5557 = vmatpush3.msra.mxu0 %v4934_v38  ;;  %v4941_v38 = vld [vmem:[%s7217_s13 + $0x50] sm:$0xff] }
0x12a0   :  { %5558 = vmatprep.subr.mxu0 %v4933_v39 }
0x12a1   :  { %5559 = vmatpush3.msra.mxu0 %v4933_v39  ;;  %v4953_v39 = vld [vmem:[%s7191_s5 + $0x50] sm:$0xff] }
0x12a2   :  { %5560 = vmatprep.subr.mxu0 %v4932_v21 }
0x12a3   :  { %5561 = vmatpush3.msra.mxu0 %v4932_v21  ;;  %v4940_v21 = vld [vmem:[%s7217_s13 + $0x48] sm:$0xff] }
0x12a4   :  { %5562 = vmatprep.subr.mxu0 %v4931_v17 }
0x12a5   :  { %5563 = vmatpush3.msra.mxu0 %v4931_v17  ;;  %v4952_v17 = vld [vmem:[%s7191_s5 + $0x48] sm:$0xff] }
0x12a6   :  { %5564 = vmatprep.subr.mxu0 %v4930_v63 }
0x12a7   :  { %5565 = vmatpush3.msra.mxu0 %v4930_v63 }
0x12a8   :  { %5566 = vmatprep.subr.mxu0 %v4929_v0 }
0x12a9   :  { %5567 = vmatpush3.msra.mxu0 %v4929_v0 }
0x12aa   :  { %5568 = vmatprep.subr.mxu0 %v4928_v1 }
0x12ab   :  { %5569 = vmatpush3.msra.mxu0 %v4928_v1 }
0x12ac   :  { %5570 = vmatprep.subr.mxu0 %v4927_v2 }
0x12ad   :  { %5571 = vmatpush3.msra.mxu0 %v4927_v2 }
0x135e   :  { %v5544_v10 = vpop.f32.mrf.mxu0 }
0x135f   :  { %v2591_v15 = vadd.f32 %v5544_v10, %v2512_v9 }
0x1360   :  { %v2585_v16 = vpop.f32.mrf.mxu0 }
0x1361   :  { %v2586_v53 = vadd.f32 %v2585_v16, %v2512_v9  ;;  %v2595_v18 = vadd.f32 %v2591_v15, %v6351_v13  ;;  %v2738_v16 = vrot.slane %v6377_v19, %v6309_v48 }
0x1363   :  { %v2599_v61 = vsel %vm95_vm0, %v2595_v18, 0.0  ;;  %v2594_v20 = vadd.f32 %v2586_v53, %v6349_v12  ;;  %v4924_v12 = vld [vmem:[%s7193_s7 + $0x38] sm:$0xff] }
0x1364   :  { %2600 = vadd.xlane.f32.xlu0 %v2599_v61  ;;  %5545 = vmatprep.subr.mxu1 %v4924_v12 }
0x1365   :  { %v2596_v26 = vsel %vm95_vm0, %v2594_v20, 0.0  ;;  %5546 = vmatpush3.msra.mxu1 %v4924_v12 }
0x1366   :  { %2597 = vadd.xlane.f32.xlu1 %v2596_v26  ;;  %5547 = vmatprep.subr.mxu1 %v4923_v50 }
0x1367   :  { %5548 = vmatpush3.msra.mxu1 %v4923_v50 }
0x1368   :  { %5549 = vmatprep.subr.mxu1 %v4922_v58 }
0x1369   :  { %5550 = vmatpush3.msra.mxu1 %v4922_v58  ;;  %v4942_v58 = vld [vmem:[%s7217_s13 + $0x58] sm:$0xff] }
0x136a   :  { %5551 = vmatprep.subr.mxu1 %v4921_v31 }
0x136b   :  { %5552 = vmatpush3.msra.mxu1 %v4921_v31  ;;  %v4954_v31 = vld [vmem:[%s7191_s5 + $0x58] sm:$0xff] }
0x136c   :  { %5575 = vmatprep.subr.mxu1 %v4942_v58  ;;  %5597 = vmatprep.subr.mxu0 %v4954_v31 }
0x13ed   :  { %v2601_v36 = vpop.xlane.xlu0 %2600 }
0x13ee   :  { %v2603_v28 = vmul.f32 0.03125, %v2601_v36 }
0x13ef   :  { %v2598_v22 = vpop.xlane.xlu1 %2597 }
0x13f0   :  { %v2605_v23 = vsub.f32 %v2595_v18, %v2603_v28  ;;  %v2602_v25 = vmul.f32 0.03125, %v2598_v22 }
0x13f2   :  { %v2604_v60 = vsub.f32 %v2594_v20, %v2602_v25  ;;  %v2607_v30 = vmul.f32 %v2605_v23, %v2605_v23 }
0x13f4   :  { %v2611_v32 = vsel %vm95_vm0, %v2607_v30, 0.0  ;;  %v2606_v35 = vmul.f32 %v2604_v60, %v2604_v60 }
0x13f5   :  { %2612 = vadd.xlane.f32.xlu0 %v2611_v32 }
0x13f6   :  { %v2608_v13 = vsel %vm95_vm0, %v2606_v35, 0.0 }
0x13f7   :  { %2609 = vadd.xlane.f32.xlu1 %v2608_v13 }
0x147e   :  { %v2613_v41 = vpop.xlane.xlu0 %2612 }
0x147f   :  { %v2615_v42 = vmul.f32 0.03125, %v2613_v41  ;;  %v4939_v41 = vld [vmem:[%s7217_s13 + $0x40] sm:$0xff] }
0x1480   :  { %v2610_v43 = vpop.xlane.xlu1 %2609 }
0x1481   :  { %v2617_v44 = vadd.f32 1e-05, %v2615_v42  ;;  %v2614_v45 = vmul.f32 0.03125, %v2610_v43  ;;  %v4951_v42 = vld [vmem:[%s7191_s5 + $0x40] sm:$0xff]  ;;  %v4948_v43 = vld [vmem:[%s7190_s4 + $0x58] sm:$0xff]  ;;  %s7220_s5 = sld [smem:[#allocation9_spill]] }
0x1483   :  { %5808 = vrsqrt.f32 %v2617_v44  ;;  %v2616_v34 = vadd.f32 1e-05, %v2614_v45 }
0x1485   :  { %5810 = vrsqrt.f32 %v2616_v34 }
0x1490   :  { %v5809_v56 = vpop.eup %5808 }
0x1491   :  { %v2621_v47 = vmul.f32 %v5809_v56, %v2605_v23 }
0x1492   :  { %v5811_v49 = vpop.eup %5810 }
0x1493   :  { %v2620_v51 = vmul.f32 %v5811_v49, %v2604_v60  ;;  %v2627_v46 = vmul.f32 %v2625_v33, %v2621_v47  ;;  %v4872_v49 = vld [vmem:[%s7195_s9 + $0x18] sm:$0xff] }
0x1494   :  { %v2857_v63 = vrot.slane %v4872_v49, %v6061_v27 }
0x1495   :  { %v2626_v54 = vmul.f32 %v2625_v33, %v2620_v51  ;;  %v2633_v59 = vadd.f32 %v2631_v52, %v2627_v46  ;;  %v2851_v46 = vrot.slane %v4872_v49, %v6069_v29 }
0x1497   :  { %v2632_v57 = vadd.f32 %v2631_v52, %v2626_v54 }
0x1499   :  { %5553 = vmatprep.mubr.msk.f32.mxu1 %vm95_vm0, %v2632_v57 }
0x149a   :  { %5554 = vmatmul.mubr.msk.f32.vlgmr.msra.gmra.mxu1 %vm95_vm0, %v2633_v59 }
0x149b   :  { %5576 = vmatpush3.msra.mxu1 %v4942_v58 }
0x149c   :  { %5577 = vmatprep.subr.mxu1 %v4941_v38 }
0x149d   :  { %5578 = vmatpush3.msra.mxu1 %v4941_v38  ;;  %v6715_v38 = vld [vmem:[%s7196_s10 + $0x3] ss:$0 sm:$0xff] }
0x149e   :  { %5579 = vmatprep.subr.mxu1 %v4940_v21 }
0x149f   :  { %5580 = vmatpush3.msra.mxu1 %v4940_v21 }
0x14a0   :  { %5581 = vmatprep.subr.mxu1 %v4939_v41 }
0x14a1   :  { %5582 = vmatpush3.msra.mxu1 %v4939_v41 }
0x14a2   :  { %5586 = vmatprep.subr.mxu1 %v4948_v43 }
0x155a   :  { %v5555_v4 = vpop.f32.mrf.mxu1 }
0x155b   :  { %v2721_v6 = vadd.f32 %v5555_v4, %v2642_v3  ;;  %v4946_v4 = vld [vmem:[%s7190_s4 + $0x48] sm:$0xff] }
0x155c   :  { %v2715_v7 = vpop.f32.mrf.mxu1 }
0x155d   :  { %v2716_v9 = vadd.f32 %v2715_v7, %v2642_v3  ;;  %v2725_v15 = vmax.f32 %v2721_v6, 0.0  ;;  %v4947_v3 = vld [vmem:[%s7190_s4 + $0x50] sm:$0xff]  ;;  %v4945_v6 = vld [vmem:[%s7190_s4 + $0x40] sm:$0xff] }
0x155e   :  { %v6651_v7 = vld [vmem:[%s7195_s9 + $0x20] sm:$0xff] }
0x155f   :  { %v2724_v10 = vmax.f32 %v2716_v9, 0.0 }
0x1561   :  { %5572 = vmatprep.mubr.msk.f32.mxu0 %vm1359_vm2, %v2724_v10  ;;  %v2871_v10 = vrot.slane %v6651_v7, %v6069_v29 }
0x1562   :  { %5573 = vmatmul.mubr.msk.f32.vlgmr.msra.gmra.mxu0 %vm1359_vm2, %v2725_v15 }
0x1563   :  { %5598 = vmatpush3.msra.mxu0 %v4954_v31 }
0x1564   :  { %5599 = vmatprep.subr.mxu0 %v4953_v39 }
0x1565   :  { %5600 = vmatpush3.msra.mxu0 %v4953_v39 }
0x1566   :  { %5601 = vmatprep.subr.mxu0 %v4952_v17 }
0x1567   :  { %5602 = vmatpush3.msra.mxu0 %v4952_v17 }
0x1568   :  { %5603 = vmatprep.subr.mxu0 %v4951_v42 }
0x1569   :  { %5604 = vmatpush3.msra.mxu0 %v4951_v42 }
0x1622   :  { %v5574_v53 = vpop.f32.mrf.mxu0 }
0x1623   :  { %v2817_v18 = vadd.f32 %v5574_v53, %v2738_v16  ;;  %v2961_v53 = vrot.slane %v6651_v7, %v6061_v27 }
0x1624   :  { %v2811_v61 = vpop.f32.mrf.mxu0 }
0x1625   :  { %v2812_v20 = vadd.f32 %v2811_v61, %v2738_v16  ;;  %v2821_v26 = vadd.f32 %v2817_v18, %v2633_v59  ;;  %v3045_v61 = vrot.slane %v6651_v7, %v6088_v37 }
0x1627   :  { %v2825_v36 = vsel %vm95_vm0, %v2821_v26, 0.0  ;;  %v2820_v28 = vadd.f32 %v2812_v20, %v2632_v57 }
0x1628   :  { %2826 = vadd.xlane.f32.xlu0 %v2825_v36 }
0x1629   :  { %v2822_v22 = vsel %vm95_vm0, %v2820_v28, 0.0 }
0x162a   :  { %2823 = vadd.xlane.f32.xlu1 %v2822_v22 }
0x16b1   :  { %v2827_v23 = vpop.xlane.xlu0 %2826 }
0x16b2   :  { %v2829_v25 = vmul.f32 0.03125, %v2827_v23  ;;  %v5860_v23 = vld [vmem:[%s7196_s10 + $0x1] ss:$0 sm:$0xff] }
0x16b3   :  { %v2824_v60 = vpop.xlane.xlu1 %2823 }
0x16b4   :  { %v2831_v30 = vsub.f32 %v2821_v26, %v2829_v25  ;;  %v2828_v32 = vmul.f32 0.03125, %v2824_v60 }
0x16b6   :  { %v2830_v35 = vsub.f32 %v2820_v28, %v2828_v32  ;;  %v2833_v13 = vmul.f32 %v2831_v30, %v2831_v30 }
0x16b8   :  { %v2837_v19 = vsel %vm95_vm0, %v2833_v13, 0.0  ;;  %v2832_v12 = vmul.f32 %v2830_v35, %v2830_v35 }
0x16b9   :  { %2838 = vadd.xlane.f32.xlu0 %v2837_v19 }
0x16ba   :  { %v2834_v50 = vsel %vm95_vm0, %v2832_v12, 0.0 }
0x16bb   :  { %2835 = vadd.xlane.f32.xlu1 %v2834_v50 }
0x1742   :  { %v2839_v44 = vpop.xlane.xlu0 %2838 }
0x1743   :  { %v2841_v45 = vmul.f32 0.03125, %v2839_v44 }
0x1744   :  { %v2836_v34 = vpop.xlane.xlu1 %2835 }
0x1745   :  { %v2843_v56 = vadd.f32 1e-05, %v2841_v45  ;;  %v2840_v33 = vmul.f32 0.03125, %v2836_v34 }
0x1747   :  { %5812 = vrsqrt.f32 %v2843_v56  ;;  %v2842_v47 = vadd.f32 1e-05, %v2840_v33 }
0x1749   :  { %5814 = vrsqrt.f32 %v2842_v47 }
0x1754   :  { %v5813_v51 = vpop.eup %5812 }
0x1755   :  { %v2847_v52 = vmul.f32 %v5813_v51, %v2831_v30 }
0x1756   :  { %v5815_v54 = vpop.eup %5814 }
0x1757   :  { %v2846_v57 = vmul.f32 %v5815_v54, %v2830_v35  ;;  %v2853_v59 = vmul.f32 %v2851_v46, %v2847_v52 }
0x1759   :  { %v2852_v0 = vmul.f32 %v2851_v46, %v2846_v57  ;;  %v6625_v2 = vadd.f32 %v2857_v63, %v2853_v59 }
0x175b   :  { %v6623_v1 = vadd.f32 %v2857_v63, %v2852_v0 }
0x175d   :  { %5583 = vmatprep.mubr.msk.f32.mxu1 %vm95_vm0, %v6623_v1  ;;  %5605 = vmatprep.mubr.msk.f32.mxu0 %vm95_vm0, %v6623_v1 }
0x175e   :  { %5584 = vmatmul.mubr.msk.f32.vlgmr.msra.gmra.mxu1 %vm95_vm0, %v6625_v2  ;;  %5606 = vmatmul.mubr.msk.f32.vlgmr.msra.gmra.mxu0 %vm95_vm0, %v6625_v2 }
0x175f   :  { %5587 = vmatpush3.msra.mxu1 %v4948_v43  ;;  %5594 = vmatprep.mubr.msk.f32.mxu1 %vm95_vm0, %v6623_v1 }
0x1760   :  { %5588 = vmatprep.subr.mxu1 %v4947_v3 }
0x1761   :  { %5589 = vmatpush3.msra.mxu1 %v4947_v3 }
0x1762   :  { %5590 = vmatprep.subr.mxu1 %v4946_v4 }
0x1763   :  { %5591 = vmatpush3.msra.mxu1 %v4946_v4 }
0x1764   :  { %5592 = vmatprep.subr.mxu1 %v4945_v6 }
0x1765   :  { %5593 = vmatpush3.msra.mxu1 %v4945_v6 }
0x1766   :  { %5595 = vmatmul.mubr.msk.f32.vlgmr.msra.gmra.mxu1 %vm95_vm0, %v6625_v2 }
0x181e   :  { %v5585_v9 = vpop.f32.mrf.mxu1  ;;  %v5607_v26 = vpop.f32.mrf.mxu0 }
0x181f   :  { %v6675_v60 = vadd.f32 %v5607_v26, %v3045_v61  ;;  %v6693_v12 = vadd.f32 %v5585_v9, %v2871_v10 }
0x1820   :  { %v2944_v15 = vpop.f32.mrf.mxu1  ;;  %v3112_v32 = vpop.f32.mrf.mxu0 }
0x1821   :  { %v6655_v16 = vadd.f32 %v2944_v15, %v2871_v10  ;;  %v6686_v35 = vadd.f32 %v3112_v32, %v3045_v61  ;;  %v3340_v13 = vmul.f32 %v5860_v23, %v6675_v60  ;;  %v6708_v31 = vmul.f32 %v6469_v5, %v6675_v60 }
0x1822   :  { %v3799_v39 = vmul.f32 %v6715_v38, %v6675_v60 }
0x1823   :  { %5612 = vmatprep.mubr.msk.f32.mxu1 %vm95_vm0, %v6655_v16  ;;  %5619 = vmatprep.mubr.msk.f32.mxu0 %vm95_vm0, %v6655_v16  ;;  %v3339_v50 = vmul.f32 %v5860_v23, %v6686_v35  ;;  %v3798_v21 = vmul.f32 %v6715_v38, %v6686_v35 }
0x1826   :  { %v5596_v18 = vpop.f32.mrf.mxu1 }
0x1827   :  { %v6665_v20 = vadd.f32 %v5596_v18, %v2961_v53 }
0x1828   :  { %v3028_v36 = vpop.f32.mrf.mxu1 }
0x1829   :  { %v6667_v28 = vadd.f32 %v3028_v36, %v2961_v53  ;;  %v3122_v22 = vmul.f32 %v6469_v5, %v6665_v20  ;;  %v3235_v25 = vmul.f32 %v5860_v23, %v6665_v20  ;;  %v3504_v19 = vmul.f32 %v6477_v8, %v6665_v20 }
0x182b   :  { %5608 = vmatprep.subr.msk.mxu1 %vm95_vm0, %v3122_v22  ;;  %5615 = vmatprep.subr.msk.mxu0 %vm95_vm0, %v3235_v25  ;;  %v3121_v37 = vmul.f32 %v6469_v5, %v6667_v28  ;;  %v3234_v30 = vmul.f32 %v5860_v23, %v6667_v28  ;;  %v3503_v58 = vmul.f32 %v6477_v8, %v6667_v28 }
0x182c   :  { %5609 = vmatpush3.xpose.msk.msra.mxu1 %vm95_vm0, %v3122_v22  ;;  %5616 = vmatpush3.xpose.msk.msra.mxu0 %vm95_vm0, %v3235_v25 }
0x182d   :  { %5610 = vmatprep.subr.msk.mxu1 %vm95_vm0, %v3121_v37  ;;  %5617 = vmatprep.subr.msk.mxu0 %vm95_vm0, %v3234_v30 }
0x1830   :  { %5611 = vmatpush3.xpose.msk.msra.mxu1 %vm95_vm0, %v3121_v37  ;;  %5618 = vmatpush3.xpose.msk.msra.mxu0 %vm95_vm0, %v3234_v30 }
0x1831   :  { %5622 = vmatprep.subr.mxu1 %v3340_v13  ;;  %5636 = vmatprep.subr.msk.mxu0 %vm95_vm0, %v3504_v19 }
0x1833   :  { %5613 = vmatmul.mubr.msk.f32.vlgmr.msra.gmra.mxu1 %vm95_vm0, %v6693_v12  ;;  %5620 = vmatmul.mubr.msk.f32.vlgmr.msra.gmra.mxu0 %vm95_vm0, %v6693_v12 }
0x1834   :  { %5623 = vmatpush3.msra.mxu1 %v3340_v13  ;;  %5637 = vmatpush3.xpose.msk.msra.mxu0 %vm95_vm0, %v3504_v19 }
0x1835   :  { %5640 = vmatprep.mubr.msk.f32.mxu0 %vm95_vm0, %v6655_v16  ;;  %5624 = vmatprep.subr.mxu1 %v3339_v50 }
0x1836   :  { %5638 = vmatprep.subr.msk.mxu0 %vm95_vm0, %v3503_v58  ;;  %5625 = vmatpush3.msra.mxu1 %v3339_v50 }
0x1837   :  { %5629 = vmatprep.subr.mxu1 %v6708_v31 }
0x1838   :  { %5639 = vmatpush3.xpose.msk.msra.mxu0 %vm95_vm0, %v3503_v58 }
0x1839   :  { %5657 = vmatprep.subr.mxu0 %v3799_v39 }
0x183b   :  { %5641 = vmatmul.mubr.msk.f32.vlgmr.msra.gmra.mxu0 %vm95_vm0, %v6693_v12 }
0x183c   :  { %5658 = vmatpush3.msra.mxu0 %v3799_v39 }
0x183d   :  { %5659 = vmatprep.subr.mxu0 %v3798_v21 }
0x183e   :  { %5660 = vmatpush3.msra.mxu0 %v3798_v21 }
0x18f3   :  { %v5614_v17 = vpop.f32.mrf.mxu1  ;;  %v5621_v41 = vpop.f32.mrf.mxu0 }
0x18f4   :  { %v3314_v42 = vadd.f32 %v6502_v24, %v5621_v41  ;;  %v3207_v45 = vadd.f32 %v6502_v24, %v5614_v17 }
0x18f5   :  { %v3201_v43 = vpop.f32.mrf.mxu1  ;;  %v3308_v44 = vpop.f32.mrf.mxu0 }
0x18f6   :  { %v3309_v34 = vadd.f32 %v6508_v40, %v3308_v44  ;;  %v3320_v56 = vsel %vm437_vm1, %v3314_v42, -inf  ;;  %v3202_v33 = vadd.f32 %v6508_v40, %v3201_v43  ;;  %v3213_v49 = vsel %vm437_vm1, %v3207_v45, -inf }
0x18f7   :  { %3321 = vmax.xlane.f32.xlu0 %v3320_v56 }
0x18f8   :  { %v3317_v47 = vsel %vm437_vm1, %v3309_v34, -inf  ;;  %v3210_v52 = vsel %vm437_vm1, %v3202_v33, -inf }
0x18f9   :  { %3318 = vmax.xlane.f32.xlu1 %v3317_v47 }
0x18fb   :  { %v5642_v51 = vpop.f32.mrf.mxu0  ;;  %3214 = vmax.xlane.f32.xlu0 %v3213_v49 }
0x18fc   :  { %v3583_v46 = vadd.f32 %v6502_v24, %v5642_v51 }
0x18fd   :  { %v3577_v54 = vpop.f32.mrf.mxu0  ;;  %3211 = vmax.xlane.f32.xlu1 %v3210_v52 }
0x18fe   :  { %v3578_v57 = vadd.f32 %v6508_v40, %v3577_v54  ;;  %v3589_v59 = vsel %vm437_vm1, %v3583_v46, -inf }
0x18ff   :  { %3590 = vmax.xlane.f32.xlu0 %v3589_v59 }
0x1900   :  { %v3586_v63 = vsel %vm437_vm1, %v3578_v57, -inf }
0x1901   :  { %3587 = vmax.xlane.f32.xlu1 %v3586_v63 }
0x1980   :  { %v3322_v0 = vpop.xlane.xlu0 %3321 }
0x1981   :  { %v3324_v3 = vsub.f32 %v3314_v42, %v3322_v0  ;;  %v3232_v0 = vmul.f32 %v6469_v5, %v6686_v35 }
0x1982   :  { %v3319_v4 = vpop.xlane.xlu1 %3318 }
0x1983   :  { %v3327_v6 = vmul.f32 1.442695, %v3324_v3  ;;  %v3323_v9 = vsub.f32 %v3309_v34, %v3319_v4  ;;  %v3609_v4 = vmul.f32 %v6477_v8, %v6675_v60  ;;  %v3693_v60 = vmul.f32 %v6715_v38, %v6667_v28 }
0x1984   :  { %v3215_v10 = vpop.xlane.xlu0 %3214 }
0x1985   :  { %5816 = vpow2.f32 %v3327_v6  ;;  %v3325_v15 = vmul.f32 1.442695, %v3323_v9  ;;  %v3217_v53 = vsub.f32 %v3207_v45, %v3215_v10 }
0x1986   :  { %v3212_v18 = vpop.xlane.xlu1 %3211 }
0x1987   :  { %5818 = vpow2.f32 %v3325_v15  ;;  %v3220_v61 = vmul.f32 1.442695, %v3217_v53  ;;  %v3216_v26 = vsub.f32 %v3202_v33, %v3212_v18  ;;  %v3608_v15 = vmul.f32 %v6477_v8, %v6686_v35 }
0x1988   :  { %v3591_v36 = vpop.xlane.xlu0 %3590 }
0x1989   :  { %5820 = vpow2.f32 %v3220_v61  ;;  %v3218_v22 = vmul.f32 1.442695, %v3216_v26  ;;  %v3593_v23 = vsub.f32 %v3583_v46, %v3591_v36 }
0x198a   :  { %v3588_v25 = vpop.xlane.xlu1 %3587 }
0x198b   :  { %5822 = vpow2.f32 %v3218_v22  ;;  %v3596_v37 = vmul.f32 1.442695, %v3593_v23  ;;  %v3592_v30 = vsub.f32 %v3578_v57, %v3588_v25 }
0x198d   :  { %5824 = vpow2.f32 %v3596_v37  ;;  %v3594_v32 = vmul.f32 1.442695, %v3592_v30 }
0x198f   :  { %5826 = vpow2.f32 %v3594_v32 }
0x1992   :  { %v5817_v13 = vpop.eup %5816 }
0x1993   :  { %v3332_v19 = vsel %vm437_vm1, %v5817_v13, 0.0 }
0x1994   :  { %v5819_v50 = vpop.eup %5818  ;;  %3333 = vadd.xlane.f32.xlu0 %v3332_v19 }
0x1995   :  { %v3329_v58 = vsel %vm437_vm1, %v5819_v50, 0.0 }
0x1996   :  { %v5821_v39 = vpop.eup %5820  ;;  %3330 = vadd.xlane.f32.xlu1 %v3329_v58 }
0x1997   :  { %v3225_v21 = vsel %vm437_vm1, %v5821_v39, 0.0 }
0x1998   :  { %v5823_v17 = vpop.eup %5822  ;;  %3226 = vadd.xlane.f32.xlu0 %v3225_v21 }
0x1999   :  { %v3222_v41 = vsel %vm437_vm1, %v5823_v17, 0.0 }
0x199a   :  { %v5825_v42 = vpop.eup %5824  ;;  %3223 = vadd.xlane.f32.xlu1 %v3222_v41  ;;  %v4984_v41 = vld [vmem:[%s7192_s6 + $0x58] sm:$0xff] }
0x199b   :  { %v3601_v43 = vsel %vm437_vm1, %v5825_v42, 0.0  ;;  %5664 = vmatprep.subr.mxu0 %v4984_v41 }
0x199c   :  { %v5827_v44 = vpop.eup %5826  ;;  %3602 = vadd.xlane.f32.xlu0 %v3601_v43 }
0x199d   :  { %v3598_v45 = vsel %vm437_vm1, %v5827_v44, 0.0 }
0x199e   :  { %3599 = vadd.xlane.f32.xlu1 %v3598_v45 }
0x1a1d   :  { %v3334_v34 = vpop.xlane.xlu0 %3333 }
0x1a1e   :  { %5828 = vrcp.f32 %v3334_v34 }
0x1a1f   :  { %v3331_v56 = vpop.xlane.xlu1 %3330 }
0x1a20   :  { %5830 = vrcp.f32 %v3331_v56 }
0x1a21   :  { %v3227_v33 = vpop.xlane.xlu0 %3226 }
0x1a22   :  { %5832 = vrcp.f32 %v3227_v33  ;;  %v4983_v33 = vld [vmem:[%s7192_s6 + $0x50] sm:$0xff] }
0x1a23   :  { %v3224_v47 = vpop.xlane.xlu1 %3223 }
0x1a24   :  { %5834 = vrcp.f32 %v3224_v47  ;;  %v4982_v47 = vld [vmem:[%s7192_s6 + $0x48] sm:$0xff] }
0x1a25   :  { %v3603_v49 = vpop.xlane.xlu0 %3602 }
0x1a26   :  { %5836 = vrcp.f32 %v3603_v49  ;;  %v4981_v49 = vld [vmem:[%s7192_s6 + $0x40] sm:$0xff] }
0x1a27   :  { %v3600_v51 = vpop.xlane.xlu1 %3599 }
0x1a28   :  { %5838 = vrcp.f32 %v3600_v51 }
0x1a2b   :  { %v5829_v46 = vpop.eup %5828 }
0x1a2c   :  { %v3338_v57 = vmul.f32 %v5829_v46, %v5817_v13 }
0x1a2d   :  { %v5831_v52 = vpop.eup %5830 }
0x1a2e   :  { %v3336_v54 = vmul.f32 %v5831_v52, %v5819_v50 }
0x1a2f   :  { %v5833_v59 = vpop.eup %5832 }
0x1a30   :  { %5626 = vmatprep.mubr.msk.f32.mxu1 %vm437_vm1, %v3336_v54  ;;  %v3231_v6 = vmul.f32 %v5833_v59, %v5821_v39 }
0x1a31   :  { %v5835_v63 = vpop.eup %5834  ;;  %5627 = vmatmul.mubr.msk.f32.vlgmr.msra.gmra.mxu1 %vm437_vm1, %v3338_v57  ;;  %v3891_v57 = vrot.slane %v6651_v7, %v6243_v14 }
0x1a32   :  { %5630 = vmatpush3.msra.mxu1 %v6708_v31  ;;  %v3229_v3 = vmul.f32 %v5835_v63, %v5823_v17  ;;  %v3694_v31 = vmul.f32 %v6715_v38, %v6665_v20 }
0x1a33   :  { %5631 = vmatprep.subr.mxu1 %v3232_v0  ;;  %v5837_v9 = vpop.eup %5836 }
0x1a34   :  { %5632 = vmatpush3.msra.mxu1 %v3232_v0  ;;  %5633 = vmatprep.mubr.msk.f32.mxu1 %vm437_vm1, %v3229_v3  ;;  %v3607_v53 = vmul.f32 %v5837_v9, %v5825_v42 }
0x1a35   :  { %v5839_v10 = vpop.eup %5838  ;;  %5643 = vmatprep.subr.mxu1 %v3609_v4  ;;  %5634 = vmatmul.mubr.msk.f32.vlgmr.msra.gmra.mxu1 %vm437_vm1, %v3231_v6 }
0x1a36   :  { %5644 = vmatpush3.msra.mxu1 %v3609_v4  ;;  %v3605_v5 = vmul.f32 %v5839_v10, %v5827_v44 }
0x1a37   :  { %5645 = vmatprep.subr.mxu1 %v3608_v15 }
0x1a38   :  { %5646 = vmatpush3.msra.mxu1 %v3608_v15  ;;  %5647 = vmatprep.mubr.msk.f32.mxu1 %vm437_vm1, %v3605_v5 }
0x1a39   :  { %5650 = vmatprep.subr.msk.mxu1 %vm95_vm0, %v3694_v31  ;;  %5648 = vmatmul.mubr.msk.f32.vlgmr.msra.gmra.mxu1 %vm437_vm1, %v3607_v53 }
0x1a3a   :  { %5651 = vmatpush3.xpose.msk.msra.mxu1 %vm95_vm0, %v3694_v31  ;;  %5654 = vmatprep.mubr.msk.f32.mxu1 %vm95_vm0, %v6655_v16 }
0x1a3b   :  { %5652 = vmatprep.subr.msk.mxu1 %vm95_vm0, %v3693_v60 }
0x1a3e   :  { %5653 = vmatpush3.xpose.msk.msra.mxu1 %vm95_vm0, %v3693_v60 }
0x1a41   :  { %5655 = vmatmul.mubr.msk.f32.vlgmr.msra.gmra.mxu1 %vm95_vm0, %v6693_v12 }
0x1af1   :  { %v5628_v8 = vpop.f32.mrf.mxu1 }
0x1af3   :  { %v3413_v20 = vpop.f32.mrf.mxu1 }
0x1af5   :  { %v5635_v35 = vpop.f32.mrf.mxu1 }
0x1af6   :  { %v3500_v18 = vadd.f32 %v5635_v35, %v5628_v8 }
0x1af7   :  { %v3494_v61 = vpop.f32.mrf.mxu1 }
0x1af8   :  { %v3495_v26 = vadd.f32 %v3494_v61, %v3413_v20  ;;  %v4988_v61 = vld [vmem:[%s7193_s7 + $0x48] sm:$0xff] }
0x1af9   :  { %v5649_v36 = vpop.f32.mrf.mxu1 }
0x1afa   :  { %v3692_v28 = vadd.f32 %v5649_v36, %v3500_v18  ;;  %v4989_v18 = vld [vmem:[%s7193_s7 + $0x50] sm:$0xff]  ;;  %v5000_v36 = vld [vmem:[%s7194_s8 + $0xb8] sm:$0xff] }
0x1afb   :  { %v3682_v38 = vpop.f32.mrf.mxu1 }
0x1afc   :  { %v3691_v22 = vadd.f32 %v3682_v38, %v3495_v26  ;;  %v4987_v26 = vld [vmem:[%s7193_s7 + $0x40] sm:$0xff]  ;;  %v4998_v38 = vld [vmem:[%s7194_s8 + $0xa8] sm:$0xff] }
0x1b01   :  { %v5656_v23 = vpop.f32.mrf.mxu1 }
0x1b02   :  { %v3773_v16 = vadd.f32 %v6502_v24, %v5656_v23 }
0x1b03   :  { %v3767_v25 = vpop.f32.mrf.mxu1 }
0x1b04   :  { %v3768_v37 = vadd.f32 %v6508_v40, %v3767_v25  ;;  %v3779_v30 = vsel %vm437_vm1, %v3773_v16, -inf }
0x1b05   :  { %3780 = vmax.xlane.f32.xlu0 %v3779_v30 }
0x1b06   :  { %v3776_v12 = vsel %vm437_vm1, %v3768_v37, -inf }
0x1b07   :  { %3777 = vmax.xlane.f32.xlu1 %v3776_v12 }
0x1b8e   :  { %v3781_v32 = vpop.xlane.xlu0 %3780 }
0x1b8f   :  { %v3783_v13 = vsub.f32 %v3773_v16, %v3781_v32 }
0x1b90   :  { %v3778_v19 = vpop.xlane.xlu1 %3777 }
0x1b91   :  { %v3786_v50 = vmul.f32 1.442695, %v3783_v13  ;;  %v3782_v58 = vsub.f32 %v3768_v37, %v3778_v19  ;;  %v4004_v13 = vrot.slane %v6651_v7, %v6278_v55  ;;  %v4995_v55 = vld [vmem:[%s7194_s8 + $0x90] sm:$0xff] }
0x1b93   :  { %5840 = vpow2.f32 %v3786_v50  ;;  %v3784_v39 = vmul.f32 1.442695, %v3782_v58 }
0x1b95   :  { %5842 = vpow2.f32 %v3784_v39 }
0x1ba0   :  { %v5841_v21 = vpop.eup %5840 }
0x1ba1   :  { %v3791_v24 = vsel %vm437_vm1, %v5841_v21, 0.0 }
0x1ba2   :  { %v5843_v17 = vpop.eup %5842  ;;  %3792 = vadd.xlane.f32.xlu0 %v3791_v24 }
0x1ba3   :  { %v3788_v40 = vsel %vm437_vm1, %v5843_v17, 0.0 }
0x1ba4   :  { %3789 = vadd.xlane.f32.xlu1 %v3788_v40 }
0x1c2b   :  { %v3793_v42 = vpop.xlane.xlu0 %3792 }
0x1c2c   :  { %5844 = vrcp.f32 %v3793_v42  ;;  %v4993_v42 = vld [vmem:[%s7194_s8 + $0x80] sm:$0xff] }
0x1c2d   :  { %v3790_v43 = vpop.xlane.xlu1 %3789 }
0x1c2e   :  { %5846 = vrcp.f32 %v3790_v43  ;;  %v4021_v43 = vrot.slane %v6651_v7, %v6302_v11 }
0x1c39   :  { %v5845_v44 = vpop.eup %5844 }
0x1c3a   :  { %v3797_v56 = vmul.f32 %v5845_v44, %v5841_v21  ;;  %v4010_v21 = vrot.slane %v6651_v7, %v6283_v62  ;;  %v4994_v62 = vld [vmem:[%s7194_s8 + $0x88] sm:$0xff] }
0x1c3b   :  { %v5847_v45 = vpop.eup %5846 }
0x1c3c   :  { %v3795_v34 = vmul.f32 %v5847_v45, %v5843_v17 }
0x1c3e   :  { %5661 = vmatprep.mubr.msk.f32.mxu0 %vm437_vm1, %v3795_v34 }
0x1c3f   :  { %5662 = vmatmul.mubr.msk.f32.vlgmr.msra.gmra.mxu0 %vm437_vm1, %v3797_v56 }
0x1c40   :  { %5665 = vmatpush3.msra.mxu0 %v4984_v41  ;;  %v4996_v41 = vld [vmem:[%s7194_s8 + $0x98] sm:$0xff] }
0x1c41   :  { %5666 = vmatprep.subr.mxu0 %v4983_v33 }
0x1c42   :  { %5667 = vmatpush3.msra.mxu0 %v4983_v33 }
0x1c43   :  { %5668 = vmatprep.subr.mxu0 %v4982_v47 }
0x1c44   :  { %5669 = vmatpush3.msra.mxu0 %v4982_v47 }
0x1c45   :  { %5670 = vmatprep.subr.mxu0 %v4981_v49 }
0x1c46   :  { %5671 = vmatpush3.msra.mxu0 %v4981_v49  ;;  %v4117_v49 = vrot.slane %v6651_v7, %v6309_v48 }
0x1c47   :  { %5686 = vmatprep.subr.mxu0 %v5000_v36 }
0x1cff   :  { %v5663_v51 = vpop.f32.mrf.mxu0 }
0x1d00   :  { %v3882_v54 = vadd.f32 %v5663_v51, %v3692_v28  ;;  %v4999_v28 = vld [vmem:[%s7194_s8 + $0xb0] sm:$0xff] }
0x1d01   :  { %v3872_v46 = vpop.f32.mrf.mxu0 }
0x1d02   :  { %v3881_v52 = vadd.f32 %v3872_v46, %v3691_v22  ;;  %v4997_v22 = vld [vmem:[%s7194_s8 + $0xa0] sm:$0xff] }
0x1d04   :  { %5672 = vmatprep.mubr.msk.f32.mxu0 %vm95_vm0, %v3881_v52 }
0x1d05   :  { %5673 = vmatmul.mubr.msk.f32.vlgmr.msra.gmra.mxu0 %vm95_vm0, %v3882_v54 }
0x1d06   :  { %5687 = vmatpush3.msra.mxu0 %v5000_v36  ;;  %v4461_v36 = vld [vmem:[%s7200_s14 + $0xf0] sm:$0xff] }
0x1d07   :  { %5688 = vmatprep.subr.mxu0 %v4999_v28 }
0x1d08   :  { %5689 = vmatpush3.msra.mxu0 %v4999_v28  ;;  %v4445_v28 = vld [vmem:[%s7200_s14 + $0x70] sm:$0xff] }
0x1d09   :  { %5690 = vmatprep.subr.mxu0 %v4998_v38 }
0x1d0a   :  { %5691 = vmatpush3.msra.mxu0 %v4998_v38  ;;  %v4460_v38 = vld [vmem:[%s7200_s14 + $0xe8] sm:$0xff] }
0x1d0b   :  { %5692 = vmatprep.subr.mxu0 %v4997_v22 }
0x1d0c   :  { %5693 = vmatpush3.msra.mxu0 %v4997_v22  ;;  %v4444_v22 = vld [vmem:[%s7200_s14 + $0x68] sm:$0xff] }
0x1d0d   :  { %5694 = vmatprep.subr.mxu0 %v4996_v41 }
0x1d0e   :  { %5695 = vmatpush3.msra.mxu0 %v4996_v41  ;;  %v4451_v41 = vld [vmem:[%s7200_s14 + $0xa0] sm:$0xff] }
0x1d0f   :  { %5696 = vmatprep.subr.mxu0 %v4995_v55 }
0x1d10   :  { %5697 = vmatpush3.msra.mxu0 %v4995_v55  ;;  %v4435_v55 = vld [vmem:[%s7200_s14 + $0x20] sm:$0xff] }
0x1d11   :  { %5698 = vmatprep.subr.mxu0 %v4994_v62 }
0x1d12   :  { %5699 = vmatpush3.msra.mxu0 %v4994_v62  ;;  %v4450_v62 = vld [vmem:[%s7200_s14 + $0x98] sm:$0xff] }
0x1d13   :  { %5700 = vmatprep.subr.mxu0 %v4993_v42 }
0x1d14   :  { %5701 = vmatpush3.msra.mxu0 %v4993_v42  ;;  %v4434_v42 = vld [vmem:[%s7200_s14 + $0x18] sm:$0xff] }
0x1dc5   :  { %v5674_v59 = vpop.f32.mrf.mxu0 }
0x1dc6   :  { %v3970_v63 = vadd.f32 %v5674_v59, %v3891_v57 }
0x1dc7   :  { %v3964_v0 = vpop.f32.mrf.mxu0 }
0x1dc8   :  { %v3965_v3 = vadd.f32 %v3964_v0, %v3891_v57  ;;  %v3974_v4 = vadd.f32 %v3970_v63, %v6625_v2 }
0x1dca   :  { %v3978_v6 = vsel %vm95_vm0, %v3974_v4, 0.0  ;;  %v3973_v9 = vadd.f32 %v3965_v3, %v6623_v1  ;;  %v4990_v1 = vld [vmem:[%s7193_s7 + $0x58] sm:$0xff] }
0x1dcb   :  { %3979 = vadd.xlane.f32.xlu0 %v3978_v6  ;;  %5675 = vmatprep.subr.mxu1 %v4990_v1 }
0x1dcc   :  { %v3975_v10 = vsel %vm95_vm0, %v3973_v9, 0.0  ;;  %5676 = vmatpush3.msra.mxu1 %v4990_v1  ;;  %v4239_v1 = vld [vmem:[%s7198_s12] sm:$0xff] }
0x1dcd   :  { %3976 = vadd.xlane.f32.xlu1 %v3975_v10  ;;  %5677 = vmatprep.subr.mxu1 %v4989_v18 }
0x1dce   :  { %5678 = vmatpush3.msra.mxu1 %v4989_v18  ;;  %v4254_v18 = vld [vmem:[%s7198_s12 + $0x78] sm:$0xff] }
0x1dcf   :  { %5679 = vmatprep.subr.mxu1 %v4988_v61 }
0x1dd0   :  { %5680 = vmatpush3.msra.mxu1 %v4988_v61  ;;  %v4462_v61 = vld [vmem:[%s7200_s14 + $0xf8] sm:$0xff] }
0x1dd1   :  { %5681 = vmatprep.subr.mxu1 %v4987_v26  ;;  %5227 = vmatprep.subr.mxu0 %v4462_v61  ;;  %v4472_v61 = vld [vmem:[%s7200_s14 + $0x148] sm:$0xff] }
0x1dd2   :  { %5682 = vmatpush3.msra.mxu1 %v4987_v26  ;;  %v4446_v26 = vld [vmem:[%s7200_s14 + $0x78] sm:$0xff] }
0x1e54   :  { %v3980_v15 = vpop.xlane.xlu0 %3979 }
0x1e55   :  { %v3982_v5 = vmul.f32 0.03125, %v3980_v15 }
0x1e56   :  { %v3977_v31 = vpop.xlane.xlu1 %3976 }
0x1e57   :  { %v3984_v53 = vsub.f32 %v3974_v4, %v3982_v5  ;;  %v3981_v60 = vmul.f32 0.03125, %v3977_v31  ;;  %v4252_v31 = vld [vmem:[%s7198_s12 + $0x68] sm:$0xff] }
0x1e58   :  { %4285 = vmatprep.subr.mxu1 %v4252_v31  ;;  %v4492_v31 = vld [vmem:[%s7200_s14 + $0x1e8] sm:$0xff] }
0x1e59   :  { %v3983_v14 = vsub.f32 %v3973_v9, %v3981_v60  ;;  %v3986_v8 = vmul.f32 %v3984_v53, %v3984_v53  ;;  %v4248_v60 = vld [vmem:[%s7198_s12 + $0x48] sm:$0xff] }
0x1e5b   :  { %v3990_v20 = vsel %vm95_vm0, %v3986_v8, 0.0  ;;  %v3985_v35 = vmul.f32 %v3983_v14, %v3983_v14  ;;  %v4244_v8 = vld [vmem:[%s7198_s12 + $0x28] sm:$0xff] }
0x1e5c   :  { %3991 = vadd.xlane.f32.xlu0 %v3990_v20  ;;  %v4243_v20 = vld [vmem:[%s7198_s12 + $0x20] sm:$0xff] }
0x1e5d   :  { %v3987_v2 = vsel %vm95_vm0, %v3985_v35, 0.0  ;;  %v4240_v35 = vld [vmem:[%s7198_s12 + $0x8] sm:$0xff] }
0x1e5e   :  { %3988 = vadd.xlane.f32.xlu1 %v3987_v2  ;;  %v5885_v2 = vmov 0.0  }
0x1ee5   :  { %v3992_v23 = vpop.xlane.xlu0 %3991 }
0x1ee6   :  { %v3994_v16 = vmul.f32 0.03125, %v3992_v23  ;;  %v4459_v23 = vld [vmem:[%s7200_s14 + $0xe0] sm:$0xff] }
0x1ee7   :  { %v3989_v25 = vpop.xlane.xlu1 %3988 }
0x1ee8   :  { %v3996_v37 = vadd.f32 1e-05, %v3994_v16  ;;  %v3993_v30 = vmul.f32 0.03125, %v3989_v25  ;;  %v4443_v16 = vld [vmem:[%s7200_s14 + $0x60] sm:$0xff]  ;;  %v4458_v25 = vld [vmem:[%s7200_s14 + $0xd8] sm:$0xff] }
0x1eea   :  { %5848 = vrsqrt.f32 %v3996_v37  ;;  %v3995_v12 = vadd.f32 1e-05, %v3993_v30  ;;  %v4442_v37 = vld [vmem:[%s7200_s14 + $0x58] sm:$0xff]  ;;  %v4457_v30 = vld [vmem:[%s7200_s14 + $0xd0] sm:$0xff] }
0x1eec   :  { %5850 = vrsqrt.f32 %v3995_v12  ;;  %v4441_v12 = vld [vmem:[%s7200_s14 + $0x50] sm:$0xff] }
0x1ef7   :  { %v5849_v32 = vpop.eup %5848 }
0x1ef8   :  { %v4000_v19 = vmul.f32 %v5849_v32, %v3984_v53  ;;  %v4251_v53 = vld [vmem:[%s7198_s12 + $0x60] sm:$0xff]  ;;  %v4456_v32 = vld [vmem:[%s7200_s14 + $0xc8] sm:$0xff] }
0x1ef9   :  { %v5851_v50 = vpop.eup %5850 }
0x1efa   :  { %v3999_v58 = vmul.f32 %v5851_v50, %v3983_v14  ;;  %v4006_v39 = vmul.f32 %v4004_v13, %v4000_v19  ;;  %v4247_v14 = vld [vmem:[%s7198_s12 + $0x40] sm:$0xff] }
0x1efb   :  { %v4455_v19 = vld [vmem:[%s7200_s14 + $0xc0] sm:$0xff] }
0x1efc   :  { %v4005_v24 = vmul.f32 %v4004_v13, %v3999_v58  ;;  %v4012_v40 = vadd.f32 %v4010_v21, %v4006_v39  ;;  %v4440_v13 = vld [vmem:[%s7200_s14 + $0x48] sm:$0xff]  ;;  %v4439_v50 = vld [vmem:[%s7200_s14 + $0x40] sm:$0xff]  ;;  %v4454_v58 = vld [vmem:[%s7200_s14 + $0xb8] sm:$0xff] }
0x1efd   :  { %v4438_v39 = vld [vmem:[%s7200_s14 + $0x38] sm:$0xff] }
0x1efe   :  { %v4011_v17 = vadd.f32 %v4010_v21, %v4005_v24  ;;  %v4453_v21 = vld [vmem:[%s7200_s14 + $0xb0] sm:$0xff] }
0x1eff   :  { %v4437_v24 = vld [vmem:[%s7200_s14 + $0x30] sm:$0xff] }
0x1f00   :  { %5683 = vmatprep.mubr.msk.f32.mxu1 %vm95_vm0, %v4011_v17 }
0x1f01   :  { %5684 = vmatmul.mubr.msk.f32.vlgmr.msra.gmra.mxu1 %vm95_vm0, %v4012_v40 }
0x1f02   :  { %4286 = vmatpush1.msra.mxu1 %v4251_v53  ;;  %4325 = vmatprep.mubr.f32.mxu1 %v5885_v2  ;;  %v4476_v53 = vld [vmem:[%s7200_s14 + $0x168] sm:$0xff] }
0x1f03   :  { %4287 = vmatprep.subr.mxu1 %v4248_v60  ;;  %v4491_v60 = vld [vmem:[%s7200_s14 + $0x1e0] sm:$0xff] }
0x1f04   :  { %4288 = vmatpush1.msra.mxu1 %v4247_v14  ;;  %v4475_v14 = vld [vmem:[%s7200_s14 + $0x160] sm:$0xff] }
0x1f05   :  { %4289 = vmatprep.subr.mxu1 %v4244_v8  ;;  %v4490_v8 = vld [vmem:[%s7200_s14 + $0x1d8] sm:$0xff] }
0x1f06   :  { %4290 = vmatpush1.msra.mxu1 %v4243_v20  ;;  %v4474_v20 = vld [vmem:[%s7200_s14 + $0x158] sm:$0xff] }
0x1f07   :  { %4291 = vmatprep.subr.mxu1 %v4240_v35  ;;  %v4489_v35 = vld [vmem:[%s7200_s14 + $0x1d0] sm:$0xff] }
0x1f08   :  { %4292 = vmatpush1.msra.mxu1 %v4239_v1  ;;  %v4473_v1 = vld [vmem:[%s7200_s14 + $0x150] sm:$0xff] }
0x1f09   :  { %4362 = vmatprep.subr.mxu1 %v4254_v18  ;;  %v4488_v18 = vld [vmem:[%s7200_s14 + $0x1c8] sm:$0xff] }
0x1fc1   :  { %v5685_v44 = vpop.f32.mrf.mxu1 }
0x1fc2   :  { %v4100_v45 = vadd.f32 %v5685_v44, %v4021_v43 }
0x1fc3   :  { %v4094_v34 = vpop.f32.mrf.mxu1 }
0x1fc4   :  { %v4095_v56 = vadd.f32 %v4094_v34, %v4021_v43  ;;  %v4104_v47 = vmax.f32 %v4100_v45, 0.0 }
0x1fc6   :  { %v4103_v33 = vmax.f32 %v4095_v56, 0.0 }
0x1fc8   :  { %5702 = vmatprep.mubr.msk.f32.mxu0 %vm1359_vm2, %v4103_v33 }
0x1fc9   :  { %5703 = vmatmul.mubr.msk.f32.vlgmr.msra.gmra.mxu0 %vm1359_vm2, %v4104_v47 }
0x1fca   :  { %5228 = vmatpush3.msra.mxu0 %v4446_v26  ;;  %v4487_v26 = vld [vmem:[%s7200_s14 + $0x1c0] sm:$0xff] }
0x1fcb   :  { %5229 = vmatprep.subr.mxu0 %v4461_v36  ;;  %v4471_v36 = vld [vmem:[%s7200_s14 + $0x140] sm:$0xff] }
0x1fcc   :  { %5230 = vmatpush3.msra.mxu0 %v4445_v28  ;;  %v4486_v28 = vld [vmem:[%s7200_s14 + $0x1b8] sm:$0xff] }
0x1fcd   :  { %5231 = vmatprep.subr.mxu0 %v4460_v38  ;;  %v4470_v38 = vld [vmem:[%s7200_s14 + $0x138] sm:$0xff] }
0x1fce   :  { %5232 = vmatpush3.msra.mxu0 %v4444_v22  ;;  %v4449_v22 = vld [vmem:[%s7200_s14 + $0x90] sm:$0xff] }
0x1fcf   :  { %5233 = vmatprep.subr.mxu0 %v4459_v23  ;;  %v4485_v23 = vld [vmem:[%s7200_s14 + $0x1b0] sm:$0xff] }
0x1fd0   :  { %5234 = vmatpush3.msra.mxu0 %v4443_v16  ;;  %v4433_v16 = vld [vmem:[%s7200_s14 + $0x10] sm:$0xff] }
0x1fd1   :  { %5235 = vmatprep.subr.mxu0 %v4458_v25  ;;  %v4469_v25 = vld [vmem:[%s7200_s14 + $0x130] sm:$0xff] }
0x1fd2   :  { %5236 = vmatpush3.msra.mxu0 %v4442_v37  ;;  %v4448_v37 = vld [vmem:[%s7200_s14 + $0x88] sm:$0xff] }
0x1fd3   :  { %5237 = vmatprep.subr.mxu0 %v4457_v30  ;;  %v4484_v30 = vld [vmem:[%s7200_s14 + $0x1a8] sm:$0xff] }
0x1fd4   :  { %5238 = vmatpush3.msra.mxu0 %v4441_v12  ;;  %v4432_v12 = vld [vmem:[%s7200_s14 + $0x8] sm:$0xff] }
0x1fd5   :  { %5239 = vmatprep.subr.mxu0 %v4456_v32  ;;  %v4468_v32 = vld [vmem:[%s7200_s14 + $0x128] sm:$0xff] }
0x1fd6   :  { %5240 = vmatpush3.msra.mxu0 %v4440_v13  ;;  %v4447_v13 = vld [vmem:[%s7200_s14 + $0x80] sm:$0xff] }
0x1fd7   :  { %5241 = vmatprep.subr.mxu0 %v4455_v19  ;;  %v4483_v19 = vld [vmem:[%s7200_s14 + $0x1a0] sm:$0xff] }
0x1fd8   :  { %5242 = vmatpush3.msra.mxu0 %v4439_v50  ;;  %v4431_v50 = vld [vmem:[%s7200_s14] sm:$0xff] }
0x1fd9   :  { %5243 = vmatprep.subr.mxu0 %v4454_v58  ;;  %v4467_v58 = vld [vmem:[%s7200_s14 + $0x120] sm:$0xff] }
0x1fda   :  { %5244 = vmatpush3.msra.mxu0 %v4438_v39  ;;  %v4482_v39 = vld [vmem:[%s7200_s14 + $0x198] sm:$0xff] }
0x1fdb   :  { %5245 = vmatprep.subr.mxu0 %v4453_v21  ;;  %v4466_v21 = vld [vmem:[%s7200_s14 + $0x118] sm:$0xff] }
0x1fdc   :  { %5246 = vmatpush3.msra.mxu0 %v4437_v24  ;;  %v4481_v24 = vld [vmem:[%s7200_s14 + $0x190] sm:$0xff] }
0x2089   :  { %v5704_v51 = vpop.f32.mrf.mxu0 }
0x208a   :  { %v4196_v46 = vadd.f32 %v5704_v51, %v4117_v49 }
0x208b   :  { %v4190_v52 = vpop.f32.mrf.mxu0 }
0x208c   :  { %v4191_v54 = vadd.f32 %v4190_v52, %v4117_v49  ;;  %v4200_v57 = vadd.f32 %v4196_v46, %v4012_v40  ;;  %v4436_v40 = vld [vmem:[%s7200_s14 + $0x28] sm:$0xff] }
0x208d   :  { %v4938_v49 = vld [vmem:[%s7195_s9 + $0x28] sm:$0xff] }
0x208e   :  { %v4204_v11 = vsel %vm95_vm0, %v4200_v57, 0.0  ;;  %v4199_v59 = vadd.f32 %v4191_v54, %v4011_v17  ;;  %v4452_v17 = vld [vmem:[%s7200_s14 + $0xa8] sm:$0xff]  ;;  %v4230_v52 = vrot.slane %v4938_v49, %v6069_v29  ;;  %v4249_v29 = vld [vmem:[%s7198_s12 + $0x50] sm:$0xff] }
0x208f   :  { %4205 = vadd.xlane.f32.xlu0 %v4204_v11  ;;  %5247 = vmatprep.subr.mxu0 %v4452_v17  ;;  %v4236_v11 = vrot.slane %v4938_v49, %v6061_v27  ;;  %v4246_v27 = vld [vmem:[%s7198_s12 + $0x38] sm:$0xff]  ;;  %v4465_v17 = vld [vmem:[%s7200_s14 + $0x110] sm:$0xff]  ;;  %v4419_v49 = vld [vmem:[%s7220_s5 + $0x20] sm:$0xff] }
0x2090   :  { %v4201_v63 = vsel %vm95_vm0, %v4199_v59, 0.0  ;;  %5248 = vmatpush3.msra.mxu0 %v4436_v40  ;;  %v4480_v40 = vld [vmem:[%s7200_s14 + $0x188] sm:$0xff] }
0x2091   :  { %4202 = vadd.xlane.f32.xlu1 %v4201_v63  ;;  %5249 = vmatprep.subr.mxu0 %v4451_v41  ;;  %v4253_v63 = vld [vmem:[%s7198_s12 + $0x70] sm:$0xff]  ;;  %v4464_v41 = vld [vmem:[%s7200_s14 + $0x108] sm:$0xff] }
0x2092   :  { %5250 = vmatpush3.msra.mxu0 %v4435_v55  ;;  %v4479_v55 = vld [vmem:[%s7200_s14 + $0x180] sm:$0xff] }
0x2093   :  { %5251 = vmatprep.subr.mxu0 %v4450_v62  ;;  %v4463_v62 = vld [vmem:[%s7200_s14 + $0x100] sm:$0xff] }
0x2094   :  { %5252 = vmatpush3.msra.mxu0 %v4434_v42 }
0x2095   :  { %5253 = vmatprep.subr.mxu0 %v4449_v22  ;;  %v4645_v22 = vld [vmem:[%s7201_s15] sm:$0x3] }
0x2096   :  { %5254 = vmatpush3.msra.mxu0 %v4433_v16  ;;  %v4728_v16 = vld [vmem:[%s7203_s17 + $0x8] sm:$0xff] }
0x2097   :  { %5255 = vmatprep.subr.mxu0 %v4448_v37  ;;  %v5007_v37 = vld [vmem:[%s7202_s16] ss:$0 sm:$0xff] }
0x2098   :  { %5256 = vmatpush3.msra.mxu0 %v4432_v12 }
0x2099   :  { %5257 = vmatprep.subr.mxu0 %v4447_v13 }
0x209a   :  { %5258 = vmatpush3.msra.mxu0 %v4431_v50 }
0x209b   :  { %5705 = vmatprep.subr.mxu0 %v5885_v2 }
0x2118   :  { %v4206_v0 = vpop.xlane.xlu0 %4205 }
0x2119   :  { %v4208_v3 = vmul.f32 0.03125, %v4206_v0 }
0x211a   :  { %v4203_v4 = vpop.xlane.xlu1 %4202 }
0x211b   :  { %v6847_v6 = vsub.f32 %v4200_v57, %v4208_v3  ;;  %v4207_v9 = vmul.f32 0.03125, %v4203_v4  ;;  %v4250_v3 = vld [vmem:[%s7198_s12 + $0x58] sm:$0xff] }
0x211d   :  { %v6849_v10 = vsub.f32 %v4199_v59, %v4207_v9  ;;  %v4212_v48 = vmul.f32 %v6847_v6, %v6847_v6  ;;  %v4242_v9 = vld [vmem:[%s7198_s12 + $0x18] sm:$0xff] }
0x211f   :  { %v4216_v7 = vsel %vm95_vm0, %v4212_v48, 0.0  ;;  %v4211_v15 = vmul.f32 %v6849_v10, %v6849_v10  ;;  %v4494_v48 = vld [vmem:[%s7200_s14 + $0x1f8] sm:$0xff] }
0x2120   :  { %4217 = vadd.xlane.f32.xlu0 %v4216_v7  ;;  %v4478_v7 = vld [vmem:[%s7200_s14 + $0x178] sm:$0xff] }
0x2121   :  { %v4213_v5 = vsel %vm95_vm0, %v4211_v15, 0.0  ;;  %v4493_v15 = vld [vmem:[%s7200_s14 + $0x1f0] sm:$0xff] }
0x2122   :  { %4214 = vadd.xlane.f32.xlu1 %v4213_v5  ;;  %v4477_v5 = vld [vmem:[%s7200_s14 + $0x170] sm:$0xff] }
0x21a9   :  { %v4218_v43 = vpop.xlane.xlu0 %4217 }
0x21aa   :  { %v4220_v44 = vmul.f32 0.03125, %v4218_v43  ;;  %v4416_v43 = vld [vmem:[%s7220_s5 + $0x8] sm:$0xff] }
0x21ab   :  { %v4215_v45 = vpop.xlane.xlu1 %4214 }
0x21ac   :  { %v4222_v34 = vadd.f32 1e-05, %v4220_v44  ;;  %v4219_v56 = vmul.f32 0.03125, %v4215_v45  ;;  %v4415_v44 = vld [vmem:[%s7220_s5] sm:$0xff] }
0x21ae   :  { %5852 = vrsqrt.f32 %v4222_v34  ;;  %v4221_v33 = vadd.f32 1e-05, %v4219_v56 }
0x21b0   :  { %5854 = vrsqrt.f32 %v4221_v33 }
0x21bb   :  { %v5853_v47 = vpop.eup %5852 }
0x21bc   :  { %v4226_v54 = vmul.f32 %v5853_v47, %v6847_v6  ;;  %v4245_v6 = vld [vmem:[%s7198_s12 + $0x30] sm:$0xff]  ;;  %v4420_v47 = vld [vmem:[%s7220_s5 + $0x28] sm:$0xff] }
0x21bd   :  { %v5855_v51 = vpop.eup %5854 }
0x21be   :  { %v4225_v46 = vmul.f32 %v5855_v51, %v6849_v10  ;;  %v4232_v0 = vmul.f32 %v4230_v52, %v4226_v54  ;;  %v4241_v10 = vld [vmem:[%s7198_s12 + $0x10] sm:$0xff] }
0x21c0   :  { %v4231_v57 = vmul.f32 %v4230_v52, %v4225_v46  ;;  %v4238_v4 = vadd.f32 %v4236_v11, %v4232_v0 }
0x21c2   :  { %v4237_v59 = vadd.f32 %v4236_v11, %v4231_v57  ;;  %v4418_v57 = vld [vmem:[%s7220_s5 + $0x18] sm:$0xff]  ;;  %v4417_v11 = vld [vmem:[%s7220_s5 + $0x10] sm:$0xff] }
0x21c4   :  { %5003 = vmatmul.mubr.msk.f32.vlgmr.msra.gmra.mxu1 %vm95_vm0, %v4237_v59 }
0x21c5   :  { %4363 = vmatpush1.msra.mxu1 %v4253_v63  ;;  %4331 = vmatprep.mubr.f32.mxu1 %v5885_v2 }
0x21c6   :  { %4364 = vmatprep.subr.mxu1 %v4250_v3 }
0x21c7   :  { %4365 = vmatpush1.msra.mxu1 %v4249_v29  ;;  %v4422_v29 = vld [vmem:[%s7220_s5 + $0x38] sm:$0xff] }
0x21c8   :  { %5004 = vmatmul.mubr.msk.f32.gmra.mxu1 %vm95_vm0, %v4238_v4  ;;  %4366 = vmatprep.subr.mxu1 %v4246_v27  ;;  %v4421_v27 = vld [vmem:[%s7220_s5 + $0x30] sm:$0xff] }
0x21c9   :  { %4367 = vmatpush1.msra.mxu1 %v4245_v6  ;;  %4402 = vmatprep.mubr.f32.mxu1 %v5885_v2 }
0x21ca   :  { %4368 = vmatprep.subr.mxu1 %v4242_v9 }
0x21cb   :  { %4369 = vmatpush1.msra.mxu1 %v4241_v10  ;;  %v4734_v10 = vld [vmem:[%s7203_s17 + $0x38] sm:$0xff] }
0x21cc   :  { %5005 = vmatmul.mubr.msk.f32.vlgmr.msra.gmra.mxu1 %vm95_vm0, %v4237_v59  ;;  %5265 = vmatprep.subr.mxu1 %v4494_v48  ;;  %v4733_v48 = vld [vmem:[%s7203_s17 + $0x30] sm:$0xff] }
0x21cd   :  { %4408 = vmatprep.mubr.f32.mxu1 %v5885_v2  ;;  %5266 = vmatpush3.msra.mxu1 %v4478_v7  ;;  %v4732_v7 = vld [vmem:[%s7203_s17 + $0x28] sm:$0xff] }
0x21ce   :  { %5267 = vmatprep.subr.mxu1 %v4493_v15  ;;  %v4731_v15 = vld [vmem:[%s7203_s17 + $0x20] sm:$0xff] }
0x21cf   :  { %5268 = vmatpush3.msra.mxu1 %v4477_v5  ;;  %v4730_v5 = vld [vmem:[%s7203_s17 + $0x18] sm:$0xff] }
0x21d0   :  { %5006 = vmatmul.mubr.msk.f32.gmra.mxu1 %vm95_vm0, %v4238_v4  ;;  %5269 = vmatprep.subr.mxu1 %v4492_v31 }
0x21d1   :  { %5270 = vmatpush3.msra.mxu1 %v4476_v53 }
0x21d2   :  { %5271 = vmatprep.subr.mxu1 %v4491_v60 }
0x21d3   :  { %5272 = vmatpush3.msra.mxu1 %v4475_v14 }
0x21d4   :  { %5273 = vmatprep.subr.mxu1 %v4490_v8 }
0x21d5   :  { %5274 = vmatpush3.msra.mxu1 %v4474_v20 }
0x21d6   :  { %5275 = vmatprep.subr.mxu1 %v4489_v35 }
0x21d7   :  { %5276 = vmatpush3.msra.mxu1 %v4473_v1 }
0x21d8   :  { %5277 = vmatprep.subr.mxu1 %v4488_v18 }
0x21d9   :  { %5278 = vmatpush3.msra.mxu1 %v4472_v61 }
0x21da   :  { %5279 = vmatprep.subr.mxu1 %v4487_v26 }
0x21db   :  { %5280 = vmatpush3.msra.mxu1 %v4471_v36 }
0x21dc   :  { %5281 = vmatprep.subr.mxu1 %v4486_v28 }
0x21dd   :  { %5282 = vmatpush3.msra.mxu1 %v4470_v38 }
0x21de   :  { %5283 = vmatprep.subr.mxu1 %v4485_v23  ;;  %v4729_v23 = vld [vmem:[%s7203_s17 + $0x10] sm:$0xff] }
0x21df   :  { %5284 = vmatpush3.msra.mxu1 %v4469_v25  ;;  %v4727_v25 = vld [vmem:[%s7203_s17] sm:$0xff]  ;;  %s5862_s17 = scalar_lea.vmem %s4824_s23, 32 }
0x21e0   :  { %5285 = vmatprep.subr.mxu1 %v4484_v30  ;;  %p5863_p0 = scmp.ne.s32.totalorder %s4824_s23, %s5862_s17  ;;  %p5868_p2 = scmp.lt.s32.totalorder %s5862_s17, %s5862_s17 }
0x21e1   :  { %5286 = vmatpush3.msra.mxu1 %v4468_v32 }
0x21e2   :  { %5287 = vmatprep.subr.mxu1 %v4483_v19  ;;  %v5009_v19 = vld [vmem:[%s7204_s18] ss:$0 sm:$0xff]  ;;  %p5869_p3 = por %p5868_p2, %p5867_p1 }
0x21e3   :  { %5288 = vmatpush3.msra.mxu1 %v4467_v58 }
0x21e4   :  { %5289 = vmatprep.subr.mxu1 %v4482_v39  ;;  %p5870_p4 = pnand %p5869_p3, %p5863_p0 }
0x21e5   :  { %5290 = vmatpush3.msra.mxu1 %v4466_v21 }
0x21e6   :  { %5291 = vmatprep.subr.mxu1 %v4481_v24 }
0x21e7   :  { %5292 = vmatpush3.msra.mxu1 %v4465_v17 }
0x21e8   :  { %5293 = vmatprep.subr.mxu1 %v4480_v40 }
0x21e9   :  { %5294 = vmatpush3.msra.mxu1 %v4464_v41 }
0x21ea   :  { %5295 = vmatprep.subr.mxu1 %v4479_v55 }
0x21eb   :  { %5296 = vmatpush3.msra.mxu1 %v4463_v62 }
0x21ec   :  { %5712 = vmatprep.subr.mxu1 %v5885_v2 }
0x2284   :  { %v4327_v42 = vpop.f32.mrf.mxu1 }
0x2285   :  { %v4423_v56 = vmul.f32 %v4415_v44, %v4327_v42 }
0x2286   :  { %v4329_v45 = vpop.f32.mrf.mxu1 }
0x2287   :  { %v4424_v34 = vmul.f32 %v4416_v43, %v4329_v45 }
0x2288   :  { %v4333_v33 = vpop.f32.mrf.mxu1 }
0x2289   :  { %4559 = vmatprep.mubr.f32.mxu0 %v4424_v34  ;;  %v4427_v52 = vmul.f32 %v4419_v49, %v4333_v33 }
0x228a   :  { %v4335_v51 = vpop.f32.mrf.mxu1  ;;  %4560 = vmatmul.mubr.f32.vlgmr.msra.gmra.mxu0 %v4423_v56 }
0x228b   :  { %v4428_v46 = vmul.f32 %v4420_v47, %v4335_v51 }
0x228c   :  { %v4404_v54 = vpop.f32.mrf.mxu1 }
0x228d   :  { %4564 = vmatprep.mubr.f32.mxu0 %v4428_v46  ;;  %v4425_v0 = vmul.f32 %v4417_v11, %v4404_v54 }
0x228e   :  { %v4406_v59 = vpop.f32.mrf.mxu1  ;;  %4565 = vmatmul.mubr.f32.gmra.mxu0 %v4427_v52 }
0x228f   :  { %v4426_v63 = vmul.f32 %v4418_v57, %v4406_v59  ;;  %5709 = vmatprep.mubr.msk.f32.mxu0 %vm5886_vm3, %v5885_v2 }
0x2290   :  { %v4410_v3 = vpop.f32.mrf.mxu1 }
0x2291   :  { %4634 = vmatprep.mubr.f32.mxu1 %v4426_v63  ;;  %v4429_v9 = vmul.f32 %v4421_v27, %v4410_v3 }
0x2292   :  { %v4412_v4 = vpop.f32.mrf.mxu1  ;;  %4635 = vmatmul.mubr.f32.vlgmr.msra.gmra.mxu1 %v4425_v0 }
0x2293   :  { %v4430_v6 = vmul.f32 %v4422_v29, %v4412_v4  ;;  %5713 = vmatpush3.msra.mxu1 %v4734_v10 }
0x2294   :  { %5714 = vmatprep.subr.mxu1 %v5885_v2 }
0x2295   :  { %4639 = vmatprep.mubr.f32.mxu1 %v4430_v6  ;;  %5715 = vmatpush3.msra.mxu1 %v4733_v48 }
0x2296   :  { %4640 = vmatmul.mubr.f32.gmra.mxu1 %v4429_v9  ;;  %5716 = vmatprep.subr.mxu1 %v5885_v2 }
0x2297   :  { %5728 = vmatprep.mubr.msk.f32.mxu1 %vm5886_vm3, %v5885_v2  ;;  %5717 = vmatpush3.msra.mxu1 %v4732_v7 }
0x2298   :  { %5718 = vmatprep.subr.mxu1 %v5885_v2 }
0x2299   :  { %5719 = vmatpush3.msra.mxu1 %v4731_v15 }
0x229a   :  { %5720 = vmatprep.subr.mxu1 %v5885_v2 }
0x229b   :  { %5721 = vmatpush3.msra.mxu1 %v4730_v5 }
0x229c   :  { %5722 = vmatprep.subr.mxu1 %v5885_v2 }
0x229d   :  { %5723 = vmatpush3.msra.mxu1 %v4729_v23 }
0x229e   :  { %5724 = vmatprep.subr.mxu1 %v5885_v2 }
0x229f   :  { %5725 = vmatpush3.msra.mxu1 %v4728_v16 }
0x22a0   :  { %5726 = vmatprep.subr.mxu1 %v5885_v2 }
0x22a1   :  { %5727 = vmatpush3.msra.mxu1 %v4727_v25 }
0x234a   :  { %v5259_v31 = vpop.f32.mrf.mxu0 }
0x234c   :  { %v5260_v53 = vpop.f32.mrf.mxu0 }
0x234d   :  { %v5261_v36 = vadd.f32 %v5260_v53, %v5259_v31 }
0x234e   :  { %v5262_v60 = vpop.f32.mrf.mxu0 }
0x2350   :  { %v5263_v20 = vpop.f32.mrf.mxu0 }
0x2351   :  { %v5264_v18 = vadd.f32 %v5263_v20, %v5262_v60 }
0x2352   :  { %v5297_v14 = vpop.f32.mrf.mxu1 }
0x2354   :  { %v5298_v8 = vpop.f32.mrf.mxu1 }
0x2355   :  { %v5299_v61 = vadd.f32 %v5298_v8, %v5297_v14 }
0x2356   :  { %v5300_v35 = vpop.f32.mrf.mxu1 }
0x2357   :  { %v4637_v38 = vadd.f32 %v5299_v61, %v5261_v36 }
0x2358   :  { %v5301_v1 = vpop.f32.mrf.mxu1 }
0x2359   :  { %v5302_v26 = vadd.f32 %v5301_v1, %v5300_v35 }
0x235b   :  { %v4642_v28 = vadd.f32 %v5302_v26, %v5264_v18 }
0x235d   :  { %5706 = vmatpush3.msra.mxu0 %v4642_v28 }
0x235e   :  { %5707 = vmatprep.subr.mxu0 %v5885_v2 }
0x235f   :  { %5708 = vmatpush3.msra.mxu0 %v4637_v38 }
0x2360   :  { %5710 = vmatmul.mubr.msk.f32.vlgmr.msra.gmra.mxu0 %vm437_vm1, %v4645_v22 }
0x2420   :  { %v4722_v30 = vpop.f32.mrf.mxu0 }
0x2421   :  { %v4723_v12 = vadd.f32 %v5007_v37, %v4722_v30 }
0x2422   :  { %v5711_v32 = vpop.f32.mrf.mxu0 }
0x2423   :  { %v4726_v13 = vmax.f32 %v4723_v12, 0.0 }
0x2425   :  { %5729 = vmatmul.mubr.msk.f32.vlgmr.msra.gmra.mxu1 %vm1359_vm2, %v4726_v13 }
0x24e5   :  { %v4811_v2 = vpop.f32.mrf.mxu1 }
0x24e6   :  { %v4812_v50 = vadd.f32 %v5009_v19, %v4811_v2 }
0x24e7   :  { %v5730_v58 = vpop.f32.mrf.mxu1 }
0x24e8   :  { %4816 = vst.msk [vmem:[#allocation2] sm:$0x3] %vm4815_vm4, %v4812_v50 }
0x24e9   :  { %5873 = shalt.err (!%p5870_p4)
}
0x24ea   :  { %4826 = dma.vmem_to_hbm [thread:$0]  %s4824_s23, 32, %s7205_s19, [#allocation3]  }
0x24eb   :  { %5882 = dma.done.wait [#allocation3], 32  }
0x24ec   :  { %5883 = vsyncadd [#allocation3], 4294967264 }
0x24ed   :  { %4830 = vsyncpa [#allocation3], 1 }

</bundles_post_ra>
